<compile_context>
chip_gen: v5e
topology: v5e:2x2
jax: 0.10.0
libtpu: 0.0.40
codegen_flags: <defaults>
</compile_context>

<pallas_src>
import math

import jax
import jax.numpy as jnp
from jax.experimental import pallas as pl
from jax.experimental.pallas import tpu as pltpu


def _round_up(v, m):
    return (v + m - 1) // m * m


def _pad2(a, rows, cols):
    return jnp.pad(a, ((0, rows - a.shape[0]), (0, cols - a.shape[1])))


# ----------------------------------------------------------------------------
# Pallas kernel: one T-chunk of the n_layers GRU recurrence per grid step.
# ----------------------------------------------------------------------------
def _make_gru_decoder_kernel(n_layers, Hp, Tt):
    unroll = True if Tt <= 16 else 8

    def kernel(*refs):
        gi_ref = refs[0]              # (Tt, Bp, 3Hp) per-step layer-0 input gates
        w_refs = refs[1:-2]
        out_ref = refs[-2]            # (Tt, Bp, Hp)
        h_ref = refs[-1]              # scratch (n_layers, Bp, Hp), persists across grid

        @pl.when(pl.program_id(0) == 0)
        def _():
            h_ref[...] = jnp.zeros_like(h_ref)

        # Hoist loop-invariant weight / bias loads out of the time loop.
        layers = []
        idx = 0
        for l in range(n_layers):
            if l == 0:
                whh = w_refs[idx][...]
                bhn = w_refs[idx + 1][...]
                idx += 2
                layers.append((None, None, whh, bhn))
            else:
                wih = w_refs[idx][...]
                bi = w_refs[idx + 1][...]
                whh = w_refs[idx + 2][...]
                bhn = w_refs[idx + 3][...]
                idx += 4
                layers.append((wih, bi, whh, bhn))

        def step(t, hs):
            gi0 = gi_ref[t]                               # (Bp, 3Hp)
            x_in = None
            new_hs = []
            for l, (wih, bi, whh, bhn) in enumerate(layers):
                h_prev = hs[l]
                if l == 0:
                    gi = gi0                              # precomputed in XLA
                else:
                    gi = jnp.dot(x_in, wih,
                                 preferred_element_type=jnp.float32) + bi
                gh = jnp.dot(h_prev, whh, preferred_element_type=jnp.float32)

                # Fused r/z sigmoid over the combined lane-aligned slice.
                rz = jax.nn.sigmoid(gi[:, :2 * Hp] + gh[:, :2 * Hp])
                r = rz[:, 0 * Hp:1 * Hp]
                z = rz[:, 1 * Hp:2 * Hp]
                n = jnp.tanh(gi[:, 2 * Hp:3 * Hp]
                             + r * (gh[:, 2 * Hp:3 * Hp] + bhn))
                h_new = n + z * (h_prev - n)              # == (1-z)*n + z*h_prev

                new_hs.append(h_new)
                x_in = h_new

            out_ref[t] = x_in                             # top-layer hidden state
            return tuple(new_hs)

        hs0 = tuple(h_ref[l] for l in range(n_layers))
        hs_final = jax.lax.fori_loop(0, Tt, step, hs0, unroll=unroll)
        for l in range(n_layers):
            h_ref[l] = hs_final[l]

    return kernel


# ----------------------------------------------------------------------------
# Wrapper: hoisted layer-0 gates (all steps), packed/padded weights, FC head.
# ----------------------------------------------------------------------------
def gru_decoder_forward(x, params, time_step):
    B, _in_dim = x.shape
    T = time_step
    n_layers = params["n_layers"]
    H = params["hid_dim"]

    Hp = _round_up(H, 128)          # lane-aligned per-gate width
    Bp = _round_up(B, 8)            # sublane-aligned batch
    Tt = min(T, 32)                 # time-chunk size (one grid step per chunk)
    T_pad = _round_up(T, Tt)
    num_chunks = T_pad // Tt
    hi = jax.lax.Precision.HIGHEST

    # ---- literal PyTorch repeat_interleave(T, dim=1).view(B, T, -1) ---------
    h_rep = jnp.repeat(x, T, axis=1).reshape(B, T, -1)            # (B, T, in_dim)
    x_steps = jnp.transpose(h_rep, (1, 0, 2)).astype(jnp.float32)  # (T, B, in_dim)

    # ---- layer-0 input gates for all steps, hoisted to XLA -------------------
    W_ih0 = params["weight_ih_l0"]
    b_ih0 = params["bias_ih_l0"]
    b_hh0 = params["bias_hh_l0"]
    gi_raw = jnp.einsum("tbd,gd->tbg", x_steps, W_ih0, precision=hi)  # (T, B, 3H)
    bias0 = jnp.concatenate([b_ih0[0:H] + b_hh0[0:H],
                             b_ih0[H:2 * H] + b_hh0[H:2 * H],
                             b_ih0[2 * H:3 * H]])
    gi_raw = gi_raw + bias0

    def pad_gate(seg):                                    # (T,B,H) -> (T_pad,Bp,Hp)
        return jnp.pad(seg, ((0, T_pad - T), (0, Bp - B), (0, Hp - H)))

    gi_all = jnp.concatenate(
        [pad_gate(gi_raw[..., g * H:(g + 1) * H]) for g in range(3)], axis=-1
    ).astype(jnp.float32)                                 # (T_pad, Bp, 3Hp)

    # ---- packed, padded recurrent weights (f32 for accuracy) -----------------
    weight_args = []
    for l in range(n_layers):
        W_hh = params[f"weight_hh_l{l}"]
        b_hh = params[f"bias_hh_l{l}"]
        Whh_packed = jnp.concatenate(
            [_pad2(W_hh[g * H:(g + 1) * H].T, Hp, Hp) for g in range(3)], axis=1
        ).astype(jnp.float32)                             # (Hp, 3Hp)
        bhn = jnp.pad(b_hh[2 * H:3 * H], (0, Hp - H))[None, :].astype(jnp.float32)
        if l == 0:
            weight_args += [Whh_packed, bhn]
        else:
            W_ih = params[f"weight_ih_l{l}"]
            b_ih = params[f"bias_ih_l{l}"]
            Wih_packed = jnp.concatenate(
                [_pad2(W_ih[g * H:(g + 1) * H].T, Hp, Hp) for g in range(3)], axis=1
            ).astype(jnp.float32)                         # (Hp, 3Hp)
            bi = jnp.concatenate([
                jnp.pad(b_ih[0:H] + b_hh[0:H], (0, Hp - H)),
                jnp.pad(b_ih[H:2 * H] + b_hh[H:2 * H], (0, Hp - H)),
                jnp.pad(b_ih[2 * H:3 * H], (0, Hp - H)),
            ])[None, :].astype(jnp.float32)               # (1, 3Hp)
            weight_args += [Wih_packed, bi, Whh_packed, bhn]

    weight_specs = [pl.BlockSpec(w.shape, lambda t: (0, 0)) for w in weight_args]

    # ---- advisory cost estimate ----------------------------------------------
    flops = 2 * T_pad * Bp * Hp * 3 * Hp * (2 * n_layers - 1)
    transcendentals = T_pad * n_layers * Bp * 3 * Hp
    bytes_accessed = int(gi_all.size * 4
                         + sum(int(w.size) * 4 for w in weight_args)
                         + T_pad * Bp * Hp * 4)
    cost = pl.CostEstimate(flops=int(flops),
                           transcendentals=int(transcendentals),
                           bytes_accessed=bytes_accessed)

    # ---- VMEM budget derived from buffer sizes (capped v7x-safe) -------------
    block_bytes = (2 * Tt * Bp * 3 * Hp * 4           # gi chunk, double-buffered
                   + 2 * Tt * Bp * Hp * 4             # out chunk, double-buffered
                   + sum(int(w.size) * 4 for w in weight_args)
                   + n_layers * Bp * Hp * 4)          # hidden-state scratch
    vmem_limit = int(min(max(4 * block_bytes, 32 * 1024 * 1024), 48 * 1024 * 1024))

    # ---- T-chunked pallas_call: recurrence inside, hidden state in scratch ---
    hseq = pl.pallas_call(
        _make_gru_decoder_kernel(n_layers, Hp, Tt),
        out_shape=jax.ShapeDtypeStruct((T_pad, Bp, Hp), jnp.float32),
        grid_spec=pltpu.PrefetchScalarGridSpec(
            num_scalar_prefetch=0,
            grid=(num_chunks,),
            in_specs=[pl.BlockSpec((Tt, Bp, 3 * Hp), lambda t: (t, 0, 0))]
                     + weight_specs,
            out_specs=pl.BlockSpec((Tt, Bp, Hp), lambda t: (t, 0, 0)),
            scratch_shapes=[pltpu.VMEM((n_layers, Bp, Hp), jnp.float32)]),
        compiler_params=pltpu.CompilerParams(
            dimension_semantics=("arbitrary",),
            vmem_limit_bytes=vmem_limit),
        cost_estimate=cost,
    )(gi_all, *weight_args)

    # ---- FC head hoisted; lane-dense matmul on the padded slab ---------------
    fcW_p = jnp.pad(params["fc_weight"], ((0, 0), (0, Hp - H)))       # (O, Hp)
    out_full = jnp.einsum("tbh,oh->tbo", hseq, fcW_p, precision=hi)   # (T_pad, Bp, O)
    out = out_full[:T, :B, :] + params["fc_bias"]
    return jnp.transpose(out, (1, 0, 2)).astype(x.dtype)              # (B, T, O)


# ----------------------------------------------------------------------------
# Pure-JAX f32 reference (exact PyTorch GRU + Linear semantics, eval mode).
# ----------------------------------------------------------------------------
def gru_decoder_ref(x, params, time_step):
    B, _D = x.shape
    T = time_step
    n_layers = params["n_layers"]
    H = params["hid_dim"]
    hi = jax.lax.Precision.HIGHEST

    # repeat_interleave(T, dim=1).view(B, T, -1) for 2-D x.
    h_rep = jnp.repeat(x, T, axis=1).reshape(B, T, -1)
    h = [jnp.zeros((B, H), jnp.float32) for _ in range(n_layers)]
    outs = []
    for t in range(T):
        inp = h_rep[:, t, :]
        for l in range(n_layers):
            W_ih = params[f"weight_ih_l{l}"]
            W_hh = params[f"weight_hh_l{l}"]
            b_ih = params[f"bias_ih_l{l}"]
            b_hh = params[f"bias_hh_l{l}"]
            gi = jnp.dot(inp, W_ih.T, precision=hi) + b_ih
            gh = jnp.dot(h[l], W_hh.T, precision=hi) + b_hh
            r = jax.nn.sigmoid(gi[:, :H] + gh[:, :H])
            z = jax.nn.sigmoid(gi[:, H:2 * H] + gh[:, H:2 * H])
            n = jnp.tanh(gi[:, 2 * H:] + r * gh[:, 2 * H:])
            h[l] = (1.0 - z) * n + z * h[l]
            inp = h[l]
        outs.append(inp)
    dec = jnp.stack(outs, axis=1)                         # (B, T, H)
    return jnp.dot(dec, params["fc_weight"].T, precision=hi) + params["fc_bias"]


# ----------------------------------------------------------------------------
# Deterministic parameter init (PyTorch-style uniform(-1/sqrt(H), 1/sqrt(H))).
# ----------------------------------------------------------------------------
def init_params(key, in_dim, hid_dim, out_dim, n_layers):
    params = {"n_layers": n_layers, "hid_dim": hid_dim, "out_dim": out_dim}
    bound = 1.0 / math.sqrt(hid_dim)
    for l in range(n_layers):
        in_l = in_dim if l == 0 else hid_dim
        for name, shape in [
            (f"weight_ih_l{l}", (3 * hid_dim, in_l)),
            (f"weight_hh_l{l}", (3 * hid_dim, hid_dim)),
            (f"bias_ih_l{l}", (3 * hid_dim,)),
            (f"bias_hh_l{l}", (3 * hid_dim,)),
        ]:
            key, sub = jax.random.split(key)
            params[name] = jax.random.uniform(
                sub, shape, jnp.float32, minval=-bound, maxval=bound)
    key, sub = jax.random.split(key)
    params["fc_weight"] = jax.random.uniform(
        sub, (out_dim, hid_dim), jnp.float32, minval=-bound, maxval=bound)
    key, sub = jax.random.split(key)
    params["fc_bias"] = jax.random.uniform(
        sub, (out_dim,), jnp.float32, minval=-bound, maxval=bound)
    return params


if __name__ == "__main__":
    # Small shapes consistent with the module.
    B, in_dim, hid_dim, out_dim = 2, 32, 32, 16
    time_step, n_layers = 8, 2

    key = jax.random.PRNGKey(0)
    key, pkey, xkey = jax.random.split(key, 3)
    params = init_params(pkey, in_dim, hid_dim, out_dim, n_layers)
    x = jax.random.normal(xkey, (B, in_dim), jnp.float32)

    out = gru_decoder_forward(x, params, time_step)
    out = jax.block_until_ready(out)

    ref = gru_decoder_ref(x, params, time_step)

    assert out.shape == (B, time_step, out_dim), out.shape
    max_err = float(jnp.max(jnp.abs(out - ref)))
    assert max_err < 3e-2, max_err

    print("KERNEL_OK")
</pallas_src>

<mosaic_0001>
module attributes {stable_mosaic.version = 11 : i64} {
  func.func @kernel(%arg0: i32, %arg1: memref<8x8x384xf32, #tpu.memory_space<vmem>>, %arg2: memref<128x384xf32, #tpu.memory_space<vmem>>, %arg3: memref<1x128xf32, #tpu.memory_space<vmem>>, %arg4: memref<128x384xf32, #tpu.memory_space<vmem>>, %arg5: memref<1x384xf32, #tpu.memory_space<vmem>>, %arg6: memref<128x384xf32, #tpu.memory_space<vmem>>, %arg7: memref<1x128xf32, #tpu.memory_space<vmem>>, %arg8: memref<8x8x128xf32, #tpu.memory_space<vmem>>, %arg9: memref<2x8x128xf32, #tpu.memory_space<vmem>>) attributes {dimension_semantics = [#tpu.dimension_semantics<arbitrary>], iteration_bounds = array<i64: 1>, scalar_prefetch = 0 : i64, scratch_operands = 1 : i64, tpu.core_type = #tpu.core_type<tc>, window_params = [{transform_indices = @transform_0, window_bounds = array<i64: 8, 8, 384>}, {pipeline_mode = #tpu.pipeline_mode<synchronous>, transform_indices = @transform_1, window_bounds = array<i64: 128, 384>}, {pipeline_mode = #tpu.pipeline_mode<synchronous>, transform_indices = @transform_2, window_bounds = array<i64: 1, 128>}, {pipeline_mode = #tpu.pipeline_mode<synchronous>, transform_indices = @transform_3, window_bounds = array<i64: 128, 384>}, {pipeline_mode = #tpu.pipeline_mode<synchronous>, transform_indices = @transform_4, window_bounds = array<i64: 1, 384>}, {pipeline_mode = #tpu.pipeline_mode<synchronous>, transform_indices = @transform_5, window_bounds = array<i64: 128, 384>}, {pipeline_mode = #tpu.pipeline_mode<synchronous>, transform_indices = @transform_6, window_bounds = array<i64: 1, 128>}, {transform_indices = @transform_7, window_bounds = array<i64: 8, 8, 128>}]} {
    %c0_i32 = arith.constant 0 : i32
    %0 = arith.cmpi eq, %arg0, %c0_i32 : i32
    %1 = arith.extui %0 : i1 to i32
    %c0_i32_0 = arith.constant 0 : i32
    %2 = arith.cmpi ne, %1, %c0_i32_0 : i32
    scf.if %2 {
      %cst_95 = arith.constant 0.000000e+00 : f32
      %435 = vector.broadcast %cst_95 : f32 to vector<2x8x128xf32>
      %c0_96 = arith.constant 0 : index
      %c0_97 = arith.constant 0 : index
      %c0_98 = arith.constant 0 : index
      %436 = vector.load %arg9[%c0_96, %c0_97, %c0_98] : memref<2x8x128xf32, #tpu.memory_space<vmem>>, vector<2x8x128xf32>
      tpu.vector_store %arg9[%c0_96, %c0_97, %c0_98], %435 {strides = array<i32>} : memref<2x8x128xf32, #tpu.memory_space<vmem>>, vector<2x8x128xf32>,
    } else {
    }
    %c0 = arith.constant 0 : index
    %c0_1 = arith.constant 0 : index
    %3 = vector.load %arg2[%c0, %c0_1] : memref<128x384xf32, #tpu.memory_space<vmem>>, vector<128x384xf32>
    %c0_2 = arith.constant 0 : index
    %c0_3 = arith.constant 0 : index
    %4 = vector.load %arg3[%c0_2, %c0_3] : memref<1x128xf32, #tpu.memory_space<vmem>>, vector<1x128xf32>
    %c0_4 = arith.constant 0 : index
    %c0_5 = arith.constant 0 : index
    %5 = vector.load %arg4[%c0_4, %c0_5] : memref<128x384xf32, #tpu.memory_space<vmem>>, vector<128x384xf32>
    %c0_6 = arith.constant 0 : index
    %c0_7 = arith.constant 0 : index
    %6 = vector.load %arg5[%c0_6, %c0_7] : memref<1x384xf32, #tpu.memory_space<vmem>>, vector<1x384xf32>
    %c0_8 = arith.constant 0 : index
    %c0_9 = arith.constant 0 : index
    %7 = vector.load %arg6[%c0_8, %c0_9] : memref<128x384xf32, #tpu.memory_space<vmem>>, vector<128x384xf32>
    %c0_10 = arith.constant 0 : index
    %c0_11 = arith.constant 0 : index
    %8 = vector.load %arg7[%c0_10, %c0_11] : memref<1x128xf32, #tpu.memory_space<vmem>>, vector<1x128xf32>
    %c0_12 = arith.constant 0 : index
    %c0_13 = arith.constant 0 : index
    %c0_14 = arith.constant 0 : index
    %9 = vector.load %arg9[%c0_12, %c0_13, %c0_14] : memref<2x8x128xf32, #tpu.memory_space<vmem>>, vector<1x8x128xf32>
    %10 = vector.shape_cast %9 : vector<1x8x128xf32> to vector<8x128xf32>
    %c1 = arith.constant 1 : index
    %c0_15 = arith.constant 0 : index
    %c0_16 = arith.constant 0 : index
    %11 = vector.load %arg9[%c1, %c0_15, %c0_16] : memref<2x8x128xf32, #tpu.memory_space<vmem>>, vector<1x8x128xf32>
    %12 = vector.shape_cast %11 : vector<1x8x128xf32> to vector<8x128xf32>
    %c0_i32_17 = arith.constant 0 : i32
    %13 = arith.index_cast %c0_i32_17 : i32 to index
    %c0_18 = arith.constant 0 : index
    %c0_19 = arith.constant 0 : index
    %14 = vector.load %arg1[%13, %c0_18, %c0_19] : memref<8x8x384xf32, #tpu.memory_space<vmem>>, vector<1x8x384xf32>
    %15 = vector.shape_cast %14 : vector<1x8x384xf32> to vector<8x384xf32>
    %cst = arith.constant dense<0.000000e+00> : vector<8x384xf32>
    %16 = tpu.matmul %10, %3, %cst {dimension_numbers = #tpu.dot_dimension_numbers<[1], [0], [0], [1], [0, 0, 1, 1], [], []>} : vector<8x128xf32>, vector<128x384xf32>, vector<8x384xf32> -> vector<8x384xf32>
    %17 = vector.extract_strided_slice %15 {offsets = [0, 0], sizes = [8, 256], strides = [1, 1]} : vector<8x384xf32> to vector<8x256xf32>
    %18 = vector.extract_strided_slice %16 {offsets = [0, 0], sizes = [8, 256], strides = [1, 1]} : vector<8x384xf32> to vector<8x256xf32>
    %19 = arith.addf %17, %18 : vector<8x256xf32>
    %20 = arith.negf %19 : vector<8x256xf32>
    %21 = math.exp %20 : vector<8x256xf32>
    %cst_20 = arith.constant 1.000000e+00 : f32
    %22 = vector.broadcast %cst_20 : f32 to vector<8x256xf32>
    %23 = arith.addf %22, %21 : vector<8x256xf32>
    %24 = arith.divf %22, %23 : vector<8x256xf32>
    %25 = vector.extract_strided_slice %24 {offsets = [0, 0], sizes = [8, 128], strides = [1, 1]} : vector<8x256xf32> to vector<8x128xf32>
    %26 = vector.extract_strided_slice %24 {offsets = [0, 128], sizes = [8, 128], strides = [1, 1]} : vector<8x256xf32> to vector<8x128xf32>
    %27 = vector.extract_strided_slice %15 {offsets = [0, 256], sizes = [8, 128], strides = [1, 1]} : vector<8x384xf32> to vector<8x128xf32>
    %28 = vector.extract_strided_slice %16 {offsets = [0, 256], sizes = [8, 128], strides = [1, 1]} : vector<8x384xf32> to vector<8x128xf32>
    %29 = vector.broadcast %4 : vector<1x128xf32> to vector<8x128xf32>
    %30 = arith.addf %28, %29 : vector<8x128xf32>
    %31 = arith.mulf %25, %30 : vector<8x128xf32>
    %32 = arith.addf %27, %31 : vector<8x128xf32>
    %33 = math.tanh %32 : vector<8x128xf32>
    %34 = arith.subf %10, %33 : vector<8x128xf32>
    %35 = arith.mulf %26, %34 : vector<8x128xf32>
    %36 = arith.addf %33, %35 : vector<8x128xf32>
    %cst_21 = arith.constant dense<0.000000e+00> : vector<8x384xf32>
    %37 = tpu.matmul %36, %5, %cst_21 {dimension_numbers = #tpu.dot_dimension_numbers<[1], [0], [0], [1], [0, 0, 1, 1], [], []>} : vector<8x128xf32>, vector<128x384xf32>, vector<8x384xf32> -> vector<8x384xf32>
    %38 = vector.broadcast %6 : vector<1x384xf32> to vector<8x384xf32>
    %39 = arith.addf %37, %38 : vector<8x384xf32>
    %cst_22 = arith.constant dense<0.000000e+00> : vector<8x384xf32>
    %40 = tpu.matmul %12, %7, %cst_22 {dimension_numbers = #tpu.dot_dimension_numbers<[1], [0], [0], [1], [0, 0, 1, 1], [], []>} : vector<8x128xf32>, vector<128x384xf32>, vector<8x384xf32> -> vector<8x384xf32>
    %41 = vector.extract_strided_slice %39 {offsets = [0, 0], sizes = [8, 256], strides = [1, 1]} : vector<8x384xf32> to vector<8x256xf32>
    %42 = vector.extract_strided_slice %40 {offsets = [0, 0], sizes = [8, 256], strides = [1, 1]} : vector<8x384xf32> to vector<8x256xf32>
    %43 = arith.addf %41, %42 : vector<8x256xf32>
    %44 = arith.negf %43 : vector<8x256xf32>
    %45 = math.exp %44 : vector<8x256xf32>
    %cst_23 = arith.constant 1.000000e+00 : f32
    %46 = vector.broadcast %cst_23 : f32 to vector<8x256xf32>
    %47 = arith.addf %46, %45 : vector<8x256xf32>
    %48 = arith.divf %46, %47 : vector<8x256xf32>
    %49 = vector.extract_strided_slice %48 {offsets = [0, 0], sizes = [8, 128], strides = [1, 1]} : vector<8x256xf32> to vector<8x128xf32>
    %50 = vector.extract_strided_slice %48 {offsets = [0, 128], sizes = [8, 128], strides = [1, 1]} : vector<8x256xf32> to vector<8x128xf32>
    %51 = vector.extract_strided_slice %39 {offsets = [0, 256], sizes = [8, 128], strides = [1, 1]} : vector<8x384xf32> to vector<8x128xf32>
    %52 = vector.extract_strided_slice %40 {offsets = [0, 256], sizes = [8, 128], strides = [1, 1]} : vector<8x384xf32> to vector<8x128xf32>
    %53 = vector.broadcast %8 : vector<1x128xf32> to vector<8x128xf32>
    %54 = arith.addf %52, %53 : vector<8x128xf32>
    %55 = arith.mulf %49, %54 : vector<8x128xf32>
    %56 = arith.addf %51, %55 : vector<8x128xf32>
    %57 = math.tanh %56 : vector<8x128xf32>
    %58 = arith.subf %12, %57 : vector<8x128xf32>
    %59 = arith.mulf %50, %58 : vector<8x128xf32>
    %60 = arith.addf %57, %59 : vector<8x128xf32>
    %61 = arith.index_cast %c0_i32_17 : i32 to index
    %c0_24 = arith.constant 0 : index
    %c0_25 = arith.constant 0 : index
    %62 = vector.load %arg8[%61, %c0_24, %c0_25] : memref<8x8x128xf32, #tpu.memory_space<vmem>>, vector<1x8x128xf32>
    %63 = vector.shape_cast %62 : vector<1x8x128xf32> to vector<8x128xf32>
    %64 = vector.shape_cast %60 : vector<8x128xf32> to vector<1x8x128xf32>
    tpu.vector_store %arg8[%61, %c0_24, %c0_25], %64 {strides = array<i32>} : memref<8x8x128xf32, #tpu.memory_space<vmem>>, vector<1x8x128xf32>,
    %c1_i32 = arith.constant 1 : i32
    %65 = arith.index_cast %c1_i32 : i32 to index
    %c0_26 = arith.constant 0 : index
    %c0_27 = arith.constant 0 : index
    %66 = vector.load %arg1[%65, %c0_26, %c0_27] : memref<8x8x384xf32, #tpu.memory_space<vmem>>, vector<1x8x384xf32>
    %67 = vector.shape_cast %66 : vector<1x8x384xf32> to vector<8x384xf32>
    %cst_28 = arith.constant dense<0.000000e+00> : vector<8x384xf32>
    %68 = tpu.matmul %36, %3, %cst_28 {dimension_numbers = #tpu.dot_dimension_numbers<[1], [0], [0], [1], [0, 0, 1, 1], [], []>} : vector<8x128xf32>, vector<128x384xf32>, vector<8x384xf32> -> vector<8x384xf32>
    %69 = vector.extract_strided_slice %67 {offsets = [0, 0], sizes = [8, 256], strides = [1, 1]} : vector<8x384xf32> to vector<8x256xf32>
    %70 = vector.extract_strided_slice %68 {offsets = [0, 0], sizes = [8, 256], strides = [1, 1]} : vector<8x384xf32> to vector<8x256xf32>
    %71 = arith.addf %69, %70 : vector<8x256xf32>
    %72 = arith.negf %71 : vector<8x256xf32>
    %73 = math.exp %72 : vector<8x256xf32>
    %cst_29 = arith.constant 1.000000e+00 : f32
    %74 = vector.broadcast %cst_29 : f32 to vector<8x256xf32>
    %75 = arith.addf %74, %73 : vector<8x256xf32>
    %76 = arith.divf %74, %75 : vector<8x256xf32>
    %77 = vector.extract_strided_slice %76 {offsets = [0, 0], sizes = [8, 128], strides = [1, 1]} : vector<8x256xf32> to vector<8x128xf32>
    %78 = vector.extract_strided_slice %76 {offsets = [0, 128], sizes = [8, 128], strides = [1, 1]} : vector<8x256xf32> to vector<8x128xf32>
    %79 = vector.extract_strided_slice %67 {offsets = [0, 256], sizes = [8, 128], strides = [1, 1]} : vector<8x384xf32> to vector<8x128xf32>
    %80 = vector.extract_strided_slice %68 {offsets = [0, 256], sizes = [8, 128], strides = [1, 1]} : vector<8x384xf32> to vector<8x128xf32>
    %81 = vector.broadcast %4 : vector<1x128xf32> to vector<8x128xf32>
    %82 = arith.addf %80, %81 : vector<8x128xf32>
    %83 = arith.mulf %77, %82 : vector<8x128xf32>
    %84 = arith.addf %79, %83 : vector<8x128xf32>
    %85 = math.tanh %84 : vector<8x128xf32>
    %86 = arith.subf %36, %85 : vector<8x128xf32>
    %87 = arith.mulf %78, %86 : vector<8x128xf32>
    %88 = arith.addf %85, %87 : vector<8x128xf32>
    %cst_30 = arith.constant dense<0.000000e+00> : vector<8x384xf32>
    %89 = tpu.matmul %88, %5, %cst_30 {dimension_numbers = #tpu.dot_dimension_numbers<[1], [0], [0], [1], [0, 0, 1, 1], [], []>} : vector<8x128xf32>, vector<128x384xf32>, vector<8x384xf32> -> vector<8x384xf32>
    %90 = vector.broadcast %6 : vector<1x384xf32> to vector<8x384xf32>
    %91 = arith.addf %89, %90 : vector<8x384xf32>
    %cst_31 = arith.constant dense<0.000000e+00> : vector<8x384xf32>
    %92 = tpu.matmul %60, %7, %cst_31 {dimension_numbers = #tpu.dot_dimension_numbers<[1], [0], [0], [1], [0, 0, 1, 1], [], []>} : vector<8x128xf32>, vector<128x384xf32>, vector<8x384xf32> -> vector<8x384xf32>
    %93 = vector.extract_strided_slice %91 {offsets = [0, 0], sizes = [8, 256], strides = [1, 1]} : vector<8x384xf32> to vector<8x256xf32>
    %94 = vector.extract_strided_slice %92 {offsets = [0, 0], sizes = [8, 256], strides = [1, 1]} : vector<8x384xf32> to vector<8x256xf32>
    %95 = arith.addf %93, %94 : vector<8x256xf32>
    %96 = arith.negf %95 : vector<8x256xf32>
    %97 = math.exp %96 : vector<8x256xf32>
    %cst_32 = arith.constant 1.000000e+00 : f32
    %98 = vector.broadcast %cst_32 : f32 to vector<8x256xf32>
    %99 = arith.addf %98, %97 : vector<8x256xf32>
    %100 = arith.divf %98, %99 : vector<8x256xf32>
    %101 = vector.extract_strided_slice %100 {offsets = [0, 0], sizes = [8, 128], strides = [1, 1]} : vector<8x256xf32> to vector<8x128xf32>
    %102 = vector.extract_strided_slice %100 {offsets = [0, 128], sizes = [8, 128], strides = [1, 1]} : vector<8x256xf32> to vector<8x128xf32>
    %103 = vector.extract_strided_slice %91 {offsets = [0, 256], sizes = [8, 128], strides = [1, 1]} : vector<8x384xf32> to vector<8x128xf32>
    %104 = vector.extract_strided_slice %92 {offsets = [0, 256], sizes = [8, 128], strides = [1, 1]} : vector<8x384xf32> to vector<8x128xf32>
    %105 = vector.broadcast %8 : vector<1x128xf32> to vector<8x128xf32>
    %106 = arith.addf %104, %105 : vector<8x128xf32>
    %107 = arith.mulf %101, %106 : vector<8x128xf32>
    %108 = arith.addf %103, %107 : vector<8x128xf32>
    %109 = math.tanh %108 : vector<8x128xf32>
    %110 = arith.subf %60, %109 : vector<8x128xf32>
    %111 = arith.mulf %102, %110 : vector<8x128xf32>
    %112 = arith.addf %109, %111 : vector<8x128xf32>
    %113 = arith.index_cast %c1_i32 : i32 to index
    %c0_33 = arith.constant 0 : index
    %c0_34 = arith.constant 0 : index
    %114 = vector.load %arg8[%113, %c0_33, %c0_34] : memref<8x8x128xf32, #tpu.memory_space<vmem>>, vector<1x8x128xf32>
    %115 = vector.shape_cast %114 : vector<1x8x128xf32> to vector<8x128xf32>
    %116 = vector.shape_cast %112 : vector<8x128xf32> to vector<1x8x128xf32>
    tpu.vector_store %arg8[%113, %c0_33, %c0_34], %116 {strides = array<i32>} : memref<8x8x128xf32, #tpu.memory_space<vmem>>, vector<1x8x128xf32>,
    %c2_i32 = arith.constant 2 : i32
    %117 = arith.index_cast %c2_i32 : i32 to index
    %c0_35 = arith.constant 0 : index
    %c0_36 = arith.constant 0 : index
    %118 = vector.load %arg1[%117, %c0_35, %c0_36] : memref<8x8x384xf32, #tpu.memory_space<vmem>>, vector<1x8x384xf32>
    %119 = vector.shape_cast %118 : vector<1x8x384xf32> to vector<8x384xf32>
    %cst_37 = arith.constant dense<0.000000e+00> : vector<8x384xf32>
    %120 = tpu.matmul %88, %3, %cst_37 {dimension_numbers = #tpu.dot_dimension_numbers<[1], [0], [0], [1], [0, 0, 1, 1], [], []>} : vector<8x128xf32>, vector<128x384xf32>, vector<8x384xf32> -> vector<8x384xf32>
    %121 = vector.extract_strided_slice %119 {offsets = [0, 0], sizes = [8, 256], strides = [1, 1]} : vector<8x384xf32> to vector<8x256xf32>
    %122 = vector.extract_strided_slice %120 {offsets = [0, 0], sizes = [8, 256], strides = [1, 1]} : vector<8x384xf32> to vector<8x256xf32>
    %123 = arith.addf %121, %122 : vector<8x256xf32>
    %124 = arith.negf %123 : vector<8x256xf32>
    %125 = math.exp %124 : vector<8x256xf32>
    %cst_38 = arith.constant 1.000000e+00 : f32
    %126 = vector.broadcast %cst_38 : f32 to vector<8x256xf32>
    %127 = arith.addf %126, %125 : vector<8x256xf32>
    %128 = arith.divf %126, %127 : vector<8x256xf32>
    %129 = vector.extract_strided_slice %128 {offsets = [0, 0], sizes = [8, 128], strides = [1, 1]} : vector<8x256xf32> to vector<8x128xf32>
    %130 = vector.extract_strided_slice %128 {offsets = [0, 128], sizes = [8, 128], strides = [1, 1]} : vector<8x256xf32> to vector<8x128xf32>
    %131 = vector.extract_strided_slice %119 {offsets = [0, 256], sizes = [8, 128], strides = [1, 1]} : vector<8x384xf32> to vector<8x128xf32>
    %132 = vector.extract_strided_slice %120 {offsets = [0, 256], sizes = [8, 128], strides = [1, 1]} : vector<8x384xf32> to vector<8x128xf32>
    %133 = vector.broadcast %4 : vector<1x128xf32> to vector<8x128xf32>
    %134 = arith.addf %132, %133 : vector<8x128xf32>
    %135 = arith.mulf %129, %134 : vector<8x128xf32>
    %136 = arith.addf %131, %135 : vector<8x128xf32>
    %137 = math.tanh %136 : vector<8x128xf32>
    %138 = arith.subf %88, %137 : vector<8x128xf32>
    %139 = arith.mulf %130, %138 : vector<8x128xf32>
    %140 = arith.addf %137, %139 : vector<8x128xf32>
    %cst_39 = arith.constant dense<0.000000e+00> : vector<8x384xf32>
    %141 = tpu.matmul %140, %5, %cst_39 {dimension_numbers = #tpu.dot_dimension_numbers<[1], [0], [0], [1], [0, 0, 1, 1], [], []>} : vector<8x128xf32>, vector<128x384xf32>, vector<8x384xf32> -> vector<8x384xf32>
    %142 = vector.broadcast %6 : vector<1x384xf32> to vector<8x384xf32>
    %143 = arith.addf %141, %142 : vector<8x384xf32>
    %cst_40 = arith.constant dense<0.000000e+00> : vector<8x384xf32>
    %144 = tpu.matmul %112, %7, %cst_40 {dimension_numbers = #tpu.dot_dimension_numbers<[1], [0], [0], [1], [0, 0, 1, 1], [], []>} : vector<8x128xf32>, vector<128x384xf32>, vector<8x384xf32> -> vector<8x384xf32>
    %145 = vector.extract_strided_slice %143 {offsets = [0, 0], sizes = [8, 256], strides = [1, 1]} : vector<8x384xf32> to vector<8x256xf32>
    %146 = vector.extract_strided_slice %144 {offsets = [0, 0], sizes = [8, 256], strides = [1, 1]} : vector<8x384xf32> to vector<8x256xf32>
    %147 = arith.addf %145, %146 : vector<8x256xf32>
    %148 = arith.negf %147 : vector<8x256xf32>
    %149 = math.exp %148 : vector<8x256xf32>
    %cst_41 = arith.constant 1.000000e+00 : f32
    %150 = vector.broadcast %cst_41 : f32 to vector<8x256xf32>
    %151 = arith.addf %150, %149 : vector<8x256xf32>
    %152 = arith.divf %150, %151 : vector<8x256xf32>
    %153 = vector.extract_strided_slice %152 {offsets = [0, 0], sizes = [8, 128], strides = [1, 1]} : vector<8x256xf32> to vector<8x128xf32>
    %154 = vector.extract_strided_slice %152 {offsets = [0, 128], sizes = [8, 128], strides = [1, 1]} : vector<8x256xf32> to vector<8x128xf32>
    %155 = vector.extract_strided_slice %143 {offsets = [0, 256], sizes = [8, 128], strides = [1, 1]} : vector<8x384xf32> to vector<8x128xf32>
    %156 = vector.extract_strided_slice %144 {offsets = [0, 256], sizes = [8, 128], strides = [1, 1]} : vector<8x384xf32> to vector<8x128xf32>
    %157 = vector.broadcast %8 : vector<1x128xf32> to vector<8x128xf32>
    %158 = arith.addf %156, %157 : vector<8x128xf32>
    %159 = arith.mulf %153, %158 : vector<8x128xf32>
    %160 = arith.addf %155, %159 : vector<8x128xf32>
    %161 = math.tanh %160 : vector<8x128xf32>
    %162 = arith.subf %112, %161 : vector<8x128xf32>
    %163 = arith.mulf %154, %162 : vector<8x128xf32>
    %164 = arith.addf %161, %163 : vector<8x128xf32>
    %165 = arith.index_cast %c2_i32 : i32 to index
    %c0_42 = arith.constant 0 : index
    %c0_43 = arith.constant 0 : index
    %166 = vector.load %arg8[%165, %c0_42, %c0_43] : memref<8x8x128xf32, #tpu.memory_space<vmem>>, vector<1x8x128xf32>
    %167 = vector.shape_cast %166 : vector<1x8x128xf32> to vector<8x128xf32>
    %168 = vector.shape_cast %164 : vector<8x128xf32> to vector<1x8x128xf32>
    tpu.vector_store %arg8[%165, %c0_42, %c0_43], %168 {strides = array<i32>} : memref<8x8x128xf32, #tpu.memory_space<vmem>>, vector<1x8x128xf32>,
    %c3_i32 = arith.constant 3 : i32
    %169 = arith.index_cast %c3_i32 : i32 to index
    %c0_44 = arith.constant 0 : index
    %c0_45 = arith.constant 0 : index
    %170 = vector.load %arg1[%169, %c0_44, %c0_45] : memref<8x8x384xf32, #tpu.memory_space<vmem>>, vector<1x8x384xf32>
    %171 = vector.shape_cast %170 : vector<1x8x384xf32> to vector<8x384xf32>
    %cst_46 = arith.constant dense<0.000000e+00> : vector<8x384xf32>
    %172 = tpu.matmul %140, %3, %cst_46 {dimension_numbers = #tpu.dot_dimension_numbers<[1], [0], [0], [1], [0, 0, 1, 1], [], []>} : vector<8x128xf32>, vector<128x384xf32>, vector<8x384xf32> -> vector<8x384xf32>
    %173 = vector.extract_strided_slice %171 {offsets = [0, 0], sizes = [8, 256], strides = [1, 1]} : vector<8x384xf32> to vector<8x256xf32>
    %174 = vector.extract_strided_slice %172 {offsets = [0, 0], sizes = [8, 256], strides = [1, 1]} : vector<8x384xf32> to vector<8x256xf32>
    %175 = arith.addf %173, %174 : vector<8x256xf32>
    %176 = arith.negf %175 : vector<8x256xf32>
    %177 = math.exp %176 : vector<8x256xf32>
    %cst_47 = arith.constant 1.000000e+00 : f32
    %178 = vector.broadcast %cst_47 : f32 to vector<8x256xf32>
    %179 = arith.addf %178, %177 : vector<8x256xf32>
    %180 = arith.divf %178, %179 : vector<8x256xf32>
    %181 = vector.extract_strided_slice %180 {offsets = [0, 0], sizes = [8, 128], strides = [1, 1]} : vector<8x256xf32> to vector<8x128xf32>
    %182 = vector.extract_strided_slice %180 {offsets = [0, 128], sizes = [8, 128], strides = [1, 1]} : vector<8x256xf32> to vector<8x128xf32>
    %183 = vector.extract_strided_slice %171 {offsets = [0, 256], sizes = [8, 128], strides = [1, 1]} : vector<8x384xf32> to vector<8x128xf32>
    %184 = vector.extract_strided_slice %172 {offsets = [0, 256], sizes = [8, 128], strides = [1, 1]} : vector<8x384xf32> to vector<8x128xf32>
    %185 = vector.broadcast %4 : vector<1x128xf32> to vector<8x128xf32>
    %186 = arith.addf %184, %185 : vector<8x128xf32>
    %187 = arith.mulf %181, %186 : vector<8x128xf32>
    %188 = arith.addf %183, %187 : vector<8x128xf32>
    %189 = math.tanh %188 : vector<8x128xf32>
    %190 = arith.subf %140, %189 : vector<8x128xf32>
    %191 = arith.mulf %182, %190 : vector<8x128xf32>
    %192 = arith.addf %189, %191 : vector<8x128xf32>
    %cst_48 = arith.constant dense<0.000000e+00> : vector<8x384xf32>
    %193 = tpu.matmul %192, %5, %cst_48 {dimension_numbers = #tpu.dot_dimension_numbers<[1], [0], [0], [1], [0, 0, 1, 1], [], []>} : vector<8x128xf32>, vector<128x384xf32>, vector<8x384xf32> -> vector<8x384xf32>
    %194 = vector.broadcast %6 : vector<1x384xf32> to vector<8x384xf32>
    %195 = arith.addf %193, %194 : vector<8x384xf32>
    %cst_49 = arith.constant dense<0.000000e+00> : vector<8x384xf32>
    %196 = tpu.matmul %164, %7, %cst_49 {dimension_numbers = #tpu.dot_dimension_numbers<[1], [0], [0], [1], [0, 0, 1, 1], [], []>} : vector<8x128xf32>, vector<128x384xf32>, vector<8x384xf32> -> vector<8x384xf32>
    %197 = vector.extract_strided_slice %195 {offsets = [0, 0], sizes = [8, 256], strides = [1, 1]} : vector<8x384xf32> to vector<8x256xf32>
    %198 = vector.extract_strided_slice %196 {offsets = [0, 0], sizes = [8, 256], strides = [1, 1]} : vector<8x384xf32> to vector<8x256xf32>
    %199 = arith.addf %197, %198 : vector<8x256xf32>
    %200 = arith.negf %199 : vector<8x256xf32>
    %201 = math.exp %200 : vector<8x256xf32>
    %cst_50 = arith.constant 1.000000e+00 : f32
    %202 = vector.broadcast %cst_50 : f32 to vector<8x256xf32>
    %203 = arith.addf %202, %201 : vector<8x256xf32>
    %204 = arith.divf %202, %203 : vector<8x256xf32>
    %205 = vector.extract_strided_slice %204 {offsets = [0, 0], sizes = [8, 128], strides = [1, 1]} : vector<8x256xf32> to vector<8x128xf32>
    %206 = vector.extract_strided_slice %204 {offsets = [0, 128], sizes = [8, 128], strides = [1, 1]} : vector<8x256xf32> to vector<8x128xf32>
    %207 = vector.extract_strided_slice %195 {offsets = [0, 256], sizes = [8, 128], strides = [1, 1]} : vector<8x384xf32> to vector<8x128xf32>
    %208 = vector.extract_strided_slice %196 {offsets = [0, 256], sizes = [8, 128], strides = [1, 1]} : vector<8x384xf32> to vector<8x128xf32>
    %209 = vector.broadcast %8 : vector<1x128xf32> to vector<8x128xf32>
    %210 = arith.addf %208, %209 : vector<8x128xf32>
    %211 = arith.mulf %205, %210 : vector<8x128xf32>
    %212 = arith.addf %207, %211 : vector<8x128xf32>
    %213 = math.tanh %212 : vector<8x128xf32>
    %214 = arith.subf %164, %213 : vector<8x128xf32>
    %215 = arith.mulf %206, %214 : vector<8x128xf32>
    %216 = arith.addf %213, %215 : vector<8x128xf32>
    %217 = arith.index_cast %c3_i32 : i32 to index
    %c0_51 = arith.constant 0 : index
    %c0_52 = arith.constant 0 : index
    %218 = vector.load %arg8[%217, %c0_51, %c0_52] : memref<8x8x128xf32, #tpu.memory_space<vmem>>, vector<1x8x128xf32>
    %219 = vector.shape_cast %218 : vector<1x8x128xf32> to vector<8x128xf32>
    %220 = vector.shape_cast %216 : vector<8x128xf32> to vector<1x8x128xf32>
    tpu.vector_store %arg8[%217, %c0_51, %c0_52], %220 {strides = array<i32>} : memref<8x8x128xf32, #tpu.memory_space<vmem>>, vector<1x8x128xf32>,
    %c4_i32 = arith.constant 4 : i32
    %221 = arith.index_cast %c4_i32 : i32 to index
    %c0_53 = arith.constant 0 : index
    %c0_54 = arith.constant 0 : index
    %222 = vector.load %arg1[%221, %c0_53, %c0_54] : memref<8x8x384xf32, #tpu.memory_space<vmem>>, vector<1x8x384xf32>
    %223 = vector.shape_cast %222 : vector<1x8x384xf32> to vector<8x384xf32>
    %cst_55 = arith.constant dense<0.000000e+00> : vector<8x384xf32>
    %224 = tpu.matmul %192, %3, %cst_55 {dimension_numbers = #tpu.dot_dimension_numbers<[1], [0], [0], [1], [0, 0, 1, 1], [], []>} : vector<8x128xf32>, vector<128x384xf32>, vector<8x384xf32> -> vector<8x384xf32>
    %225 = vector.extract_strided_slice %223 {offsets = [0, 0], sizes = [8, 256], strides = [1, 1]} : vector<8x384xf32> to vector<8x256xf32>
    %226 = vector.extract_strided_slice %224 {offsets = [0, 0], sizes = [8, 256], strides = [1, 1]} : vector<8x384xf32> to vector<8x256xf32>
    %227 = arith.addf %225, %226 : vector<8x256xf32>
    %228 = arith.negf %227 : vector<8x256xf32>
    %229 = math.exp %228 : vector<8x256xf32>
    %cst_56 = arith.constant 1.000000e+00 : f32
    %230 = vector.broadcast %cst_56 : f32 to vector<8x256xf32>
    %231 = arith.addf %230, %229 : vector<8x256xf32>
    %232 = arith.divf %230, %231 : vector<8x256xf32>
    %233 = vector.extract_strided_slice %232 {offsets = [0, 0], sizes = [8, 128], strides = [1, 1]} : vector<8x256xf32> to vector<8x128xf32>
    %234 = vector.extract_strided_slice %232 {offsets = [0, 128], sizes = [8, 128], strides = [1, 1]} : vector<8x256xf32> to vector<8x128xf32>
    %235 = vector.extract_strided_slice %223 {offsets = [0, 256], sizes = [8, 128], strides = [1, 1]} : vector<8x384xf32> to vector<8x128xf32>
    %236 = vector.extract_strided_slice %224 {offsets = [0, 256], sizes = [8, 128], strides = [1, 1]} : vector<8x384xf32> to vector<8x128xf32>
    %237 = vector.broadcast %4 : vector<1x128xf32> to vector<8x128xf32>
    %238 = arith.addf %236, %237 : vector<8x128xf32>
    %239 = arith.mulf %233, %238 : vector<8x128xf32>
    %240 = arith.addf %235, %239 : vector<8x128xf32>
    %241 = math.tanh %240 : vector<8x128xf32>
    %242 = arith.subf %192, %241 : vector<8x128xf32>
    %243 = arith.mulf %234, %242 : vector<8x128xf32>
    %244 = arith.addf %241, %243 : vector<8x128xf32>
    %cst_57 = arith.constant dense<0.000000e+00> : vector<8x384xf32>
    %245 = tpu.matmul %244, %5, %cst_57 {dimension_numbers = #tpu.dot_dimension_numbers<[1], [0], [0], [1], [0, 0, 1, 1], [], []>} : vector<8x128xf32>, vector<128x384xf32>, vector<8x384xf32> -> vector<8x384xf32>
    %246 = vector.broadcast %6 : vector<1x384xf32> to vector<8x384xf32>
    %247 = arith.addf %245, %246 : vector<8x384xf32>
    %cst_58 = arith.constant dense<0.000000e+00> : vector<8x384xf32>
    %248 = tpu.matmul %216, %7, %cst_58 {dimension_numbers = #tpu.dot_dimension_numbers<[1], [0], [0], [1], [0, 0, 1, 1], [], []>} : vector<8x128xf32>, vector<128x384xf32>, vector<8x384xf32> -> vector<8x384xf32>
    %249 = vector.extract_strided_slice %247 {offsets = [0, 0], sizes = [8, 256], strides = [1, 1]} : vector<8x384xf32> to vector<8x256xf32>
    %250 = vector.extract_strided_slice %248 {offsets = [0, 0], sizes = [8, 256], strides = [1, 1]} : vector<8x384xf32> to vector<8x256xf32>
    %251 = arith.addf %249, %250 : vector<8x256xf32>
    %252 = arith.negf %251 : vector<8x256xf32>
    %253 = math.exp %252 : vector<8x256xf32>
    %cst_59 = arith.constant 1.000000e+00 : f32
    %254 = vector.broadcast %cst_59 : f32 to vector<8x256xf32>
    %255 = arith.addf %254, %253 : vector<8x256xf32>
    %256 = arith.divf %254, %255 : vector<8x256xf32>
    %257 = vector.extract_strided_slice %256 {offsets = [0, 0], sizes = [8, 128], strides = [1, 1]} : vector<8x256xf32> to vector<8x128xf32>
    %258 = vector.extract_strided_slice %256 {offsets = [0, 128], sizes = [8, 128], strides = [1, 1]} : vector<8x256xf32> to vector<8x128xf32>
    %259 = vector.extract_strided_slice %247 {offsets = [0, 256], sizes = [8, 128], strides = [1, 1]} : vector<8x384xf32> to vector<8x128xf32>
    %260 = vector.extract_strided_slice %248 {offsets = [0, 256], sizes = [8, 128], strides = [1, 1]} : vector<8x384xf32> to vector<8x128xf32>
    %261 = vector.broadcast %8 : vector<1x128xf32> to vector<8x128xf32>
    %262 = arith.addf %260, %261 : vector<8x128xf32>
    %263 = arith.mulf %257, %262 : vector<8x128xf32>
    %264 = arith.addf %259, %263 : vector<8x128xf32>
    %265 = math.tanh %264 : vector<8x128xf32>
    %266 = arith.subf %216, %265 : vector<8x128xf32>
    %267 = arith.mulf %258, %266 : vector<8x128xf32>
    %268 = arith.addf %265, %267 : vector<8x128xf32>
    %269 = arith.index_cast %c4_i32 : i32 to index
    %c0_60 = arith.constant 0 : index
    %c0_61 = arith.constant 0 : index
    %270 = vector.load %arg8[%269, %c0_60, %c0_61] : memref<8x8x128xf32, #tpu.memory_space<vmem>>, vector<1x8x128xf32>
    %271 = vector.shape_cast %270 : vector<1x8x128xf32> to vector<8x128xf32>
    %272 = vector.shape_cast %268 : vector<8x128xf32> to vector<1x8x128xf32>
    tpu.vector_store %arg8[%269, %c0_60, %c0_61], %272 {strides = array<i32>} : memref<8x8x128xf32, #tpu.memory_space<vmem>>, vector<1x8x128xf32>,
    %c5_i32 = arith.constant 5 : i32
    %273 = arith.index_cast %c5_i32 : i32 to index
    %c0_62 = arith.constant 0 : index
    %c0_63 = arith.constant 0 : index
    %274 = vector.load %arg1[%273, %c0_62, %c0_63] : memref<8x8x384xf32, #tpu.memory_space<vmem>>, vector<1x8x384xf32>
    %275 = vector.shape_cast %274 : vector<1x8x384xf32> to vector<8x384xf32>
    %cst_64 = arith.constant dense<0.000000e+00> : vector<8x384xf32>
    %276 = tpu.matmul %244, %3, %cst_64 {dimension_numbers = #tpu.dot_dimension_numbers<[1], [0], [0], [1], [0, 0, 1, 1], [], []>} : vector<8x128xf32>, vector<128x384xf32>, vector<8x384xf32> -> vector<8x384xf32>
    %277 = vector.extract_strided_slice %275 {offsets = [0, 0], sizes = [8, 256], strides = [1, 1]} : vector<8x384xf32> to vector<8x256xf32>
    %278 = vector.extract_strided_slice %276 {offsets = [0, 0], sizes = [8, 256], strides = [1, 1]} : vector<8x384xf32> to vector<8x256xf32>
    %279 = arith.addf %277, %278 : vector<8x256xf32>
    %280 = arith.negf %279 : vector<8x256xf32>
    %281 = math.exp %280 : vector<8x256xf32>
    %cst_65 = arith.constant 1.000000e+00 : f32
    %282 = vector.broadcast %cst_65 : f32 to vector<8x256xf32>
    %283 = arith.addf %282, %281 : vector<8x256xf32>
    %284 = arith.divf %282, %283 : vector<8x256xf32>
    %285 = vector.extract_strided_slice %284 {offsets = [0, 0], sizes = [8, 128], strides = [1, 1]} : vector<8x256xf32> to vector<8x128xf32>
    %286 = vector.extract_strided_slice %284 {offsets = [0, 128], sizes = [8, 128], strides = [1, 1]} : vector<8x256xf32> to vector<8x128xf32>
    %287 = vector.extract_strided_slice %275 {offsets = [0, 256], sizes = [8, 128], strides = [1, 1]} : vector<8x384xf32> to vector<8x128xf32>
    %288 = vector.extract_strided_slice %276 {offsets = [0, 256], sizes = [8, 128], strides = [1, 1]} : vector<8x384xf32> to vector<8x128xf32>
    %289 = vector.broadcast %4 : vector<1x128xf32> to vector<8x128xf32>
    %290 = arith.addf %288, %289 : vector<8x128xf32>
    %291 = arith.mulf %285, %290 : vector<8x128xf32>
    %292 = arith.addf %287, %291 : vector<8x128xf32>
    %293 = math.tanh %292 : vector<8x128xf32>
    %294 = arith.subf %244, %293 : vector<8x128xf32>
    %295 = arith.mulf %286, %294 : vector<8x128xf32>
    %296 = arith.addf %293, %295 : vector<8x128xf32>
    %cst_66 = arith.constant dense<0.000000e+00> : vector<8x384xf32>
    %297 = tpu.matmul %296, %5, %cst_66 {dimension_numbers = #tpu.dot_dimension_numbers<[1], [0], [0], [1], [0, 0, 1, 1], [], []>} : vector<8x128xf32>, vector<128x384xf32>, vector<8x384xf32> -> vector<8x384xf32>
    %298 = vector.broadcast %6 : vector<1x384xf32> to vector<8x384xf32>
    %299 = arith.addf %297, %298 : vector<8x384xf32>
    %cst_67 = arith.constant dense<0.000000e+00> : vector<8x384xf32>
    %300 = tpu.matmul %268, %7, %cst_67 {dimension_numbers = #tpu.dot_dimension_numbers<[1], [0], [0], [1], [0, 0, 1, 1], [], []>} : vector<8x128xf32>, vector<128x384xf32>, vector<8x384xf32> -> vector<8x384xf32>
    %301 = vector.extract_strided_slice %299 {offsets = [0, 0], sizes = [8, 256], strides = [1, 1]} : vector<8x384xf32> to vector<8x256xf32>
    %302 = vector.extract_strided_slice %300 {offsets = [0, 0], sizes = [8, 256], strides = [1, 1]} : vector<8x384xf32> to vector<8x256xf32>
    %303 = arith.addf %301, %302 : vector<8x256xf32>
    %304 = arith.negf %303 : vector<8x256xf32>
    %305 = math.exp %304 : vector<8x256xf32>
    %cst_68 = arith.constant 1.000000e+00 : f32
    %306 = vector.broadcast %cst_68 : f32 to vector<8x256xf32>
    %307 = arith.addf %306, %305 : vector<8x256xf32>
    %308 = arith.divf %306, %307 : vector<8x256xf32>
    %309 = vector.extract_strided_slice %308 {offsets = [0, 0], sizes = [8, 128], strides = [1, 1]} : vector<8x256xf32> to vector<8x128xf32>
    %310 = vector.extract_strided_slice %308 {offsets = [0, 128], sizes = [8, 128], strides = [1, 1]} : vector<8x256xf32> to vector<8x128xf32>
    %311 = vector.extract_strided_slice %299 {offsets = [0, 256], sizes = [8, 128], strides = [1, 1]} : vector<8x384xf32> to vector<8x128xf32>
    %312 = vector.extract_strided_slice %300 {offsets = [0, 256], sizes = [8, 128], strides = [1, 1]} : vector<8x384xf32> to vector<8x128xf32>
    %313 = vector.broadcast %8 : vector<1x128xf32> to vector<8x128xf32>
    %314 = arith.addf %312, %313 : vector<8x128xf32>
    %315 = arith.mulf %309, %314 : vector<8x128xf32>
    %316 = arith.addf %311, %315 : vector<8x128xf32>
    %317 = math.tanh %316 : vector<8x128xf32>
    %318 = arith.subf %268, %317 : vector<8x128xf32>
    %319 = arith.mulf %310, %318 : vector<8x128xf32>
    %320 = arith.addf %317, %319 : vector<8x128xf32>
    %321 = arith.index_cast %c5_i32 : i32 to index
    %c0_69 = arith.constant 0 : index
    %c0_70 = arith.constant 0 : index
    %322 = vector.load %arg8[%321, %c0_69, %c0_70] : memref<8x8x128xf32, #tpu.memory_space<vmem>>, vector<1x8x128xf32>
    %323 = vector.shape_cast %322 : vector<1x8x128xf32> to vector<8x128xf32>
    %324 = vector.shape_cast %320 : vector<8x128xf32> to vector<1x8x128xf32>
    tpu.vector_store %arg8[%321, %c0_69, %c0_70], %324 {strides = array<i32>} : memref<8x8x128xf32, #tpu.memory_space<vmem>>, vector<1x8x128xf32>,
    %c6_i32 = arith.constant 6 : i32
    %325 = arith.index_cast %c6_i32 : i32 to index
    %c0_71 = arith.constant 0 : index
    %c0_72 = arith.constant 0 : index
    %326 = vector.load %arg1[%325, %c0_71, %c0_72] : memref<8x8x384xf32, #tpu.memory_space<vmem>>, vector<1x8x384xf32>
    %327 = vector.shape_cast %326 : vector<1x8x384xf32> to vector<8x384xf32>
    %cst_73 = arith.constant dense<0.000000e+00> : vector<8x384xf32>
    %328 = tpu.matmul %296, %3, %cst_73 {dimension_numbers = #tpu.dot_dimension_numbers<[1], [0], [0], [1], [0, 0, 1, 1], [], []>} : vector<8x128xf32>, vector<128x384xf32>, vector<8x384xf32> -> vector<8x384xf32>
    %329 = vector.extract_strided_slice %327 {offsets = [0, 0], sizes = [8, 256], strides = [1, 1]} : vector<8x384xf32> to vector<8x256xf32>
    %330 = vector.extract_strided_slice %328 {offsets = [0, 0], sizes = [8, 256], strides = [1, 1]} : vector<8x384xf32> to vector<8x256xf32>
    %331 = arith.addf %329, %330 : vector<8x256xf32>
    %332 = arith.negf %331 : vector<8x256xf32>
    %333 = math.exp %332 : vector<8x256xf32>
    %cst_74 = arith.constant 1.000000e+00 : f32
    %334 = vector.broadcast %cst_74 : f32 to vector<8x256xf32>
    %335 = arith.addf %334, %333 : vector<8x256xf32>
    %336 = arith.divf %334, %335 : vector<8x256xf32>
    %337 = vector.extract_strided_slice %336 {offsets = [0, 0], sizes = [8, 128], strides = [1, 1]} : vector<8x256xf32> to vector<8x128xf32>
    %338 = vector.extract_strided_slice %336 {offsets = [0, 128], sizes = [8, 128], strides = [1, 1]} : vector<8x256xf32> to vector<8x128xf32>
    %339 = vector.extract_strided_slice %327 {offsets = [0, 256], sizes = [8, 128], strides = [1, 1]} : vector<8x384xf32> to vector<8x128xf32>
    %340 = vector.extract_strided_slice %328 {offsets = [0, 256], sizes = [8, 128], strides = [1, 1]} : vector<8x384xf32> to vector<8x128xf32>
    %341 = vector.broadcast %4 : vector<1x128xf32> to vector<8x128xf32>
    %342 = arith.addf %340, %341 : vector<8x128xf32>
    %343 = arith.mulf %337, %342 : vector<8x128xf32>
    %344 = arith.addf %339, %343 : vector<8x128xf32>
    %345 = math.tanh %344 : vector<8x128xf32>
    %346 = arith.subf %296, %345 : vector<8x128xf32>
    %347 = arith.mulf %338, %346 : vector<8x128xf32>
    %348 = arith.addf %345, %347 : vector<8x128xf32>
    %cst_75 = arith.constant dense<0.000000e+00> : vector<8x384xf32>
    %349 = tpu.matmul %348, %5, %cst_75 {dimension_numbers = #tpu.dot_dimension_numbers<[1], [0], [0], [1], [0, 0, 1, 1], [], []>} : vector<8x128xf32>, vector<128x384xf32>, vector<8x384xf32> -> vector<8x384xf32>
    %350 = vector.broadcast %6 : vector<1x384xf32> to vector<8x384xf32>
    %351 = arith.addf %349, %350 : vector<8x384xf32>
    %cst_76 = arith.constant dense<0.000000e+00> : vector<8x384xf32>
    %352 = tpu.matmul %320, %7, %cst_76 {dimension_numbers = #tpu.dot_dimension_numbers<[1], [0], [0], [1], [0, 0, 1, 1], [], []>} : vector<8x128xf32>, vector<128x384xf32>, vector<8x384xf32> -> vector<8x384xf32>
    %353 = vector.extract_strided_slice %351 {offsets = [0, 0], sizes = [8, 256], strides = [1, 1]} : vector<8x384xf32> to vector<8x256xf32>
    %354 = vector.extract_strided_slice %352 {offsets = [0, 0], sizes = [8, 256], strides = [1, 1]} : vector<8x384xf32> to vector<8x256xf32>
    %355 = arith.addf %353, %354 : vector<8x256xf32>
    %356 = arith.negf %355 : vector<8x256xf32>
    %357 = math.exp %356 : vector<8x256xf32>
    %cst_77 = arith.constant 1.000000e+00 : f32
    %358 = vector.broadcast %cst_77 : f32 to vector<8x256xf32>
    %359 = arith.addf %358, %357 : vector<8x256xf32>
    %360 = arith.divf %358, %359 : vector<8x256xf32>
    %361 = vector.extract_strided_slice %360 {offsets = [0, 0], sizes = [8, 128], strides = [1, 1]} : vector<8x256xf32> to vector<8x128xf32>
    %362 = vector.extract_strided_slice %360 {offsets = [0, 128], sizes = [8, 128], strides = [1, 1]} : vector<8x256xf32> to vector<8x128xf32>
    %363 = vector.extract_strided_slice %351 {offsets = [0, 256], sizes = [8, 128], strides = [1, 1]} : vector<8x384xf32> to vector<8x128xf32>
    %364 = vector.extract_strided_slice %352 {offsets = [0, 256], sizes = [8, 128], strides = [1, 1]} : vector<8x384xf32> to vector<8x128xf32>
    %365 = vector.broadcast %8 : vector<1x128xf32> to vector<8x128xf32>
    %366 = arith.addf %364, %365 : vector<8x128xf32>
    %367 = arith.mulf %361, %366 : vector<8x128xf32>
    %368 = arith.addf %363, %367 : vector<8x128xf32>
    %369 = math.tanh %368 : vector<8x128xf32>
    %370 = arith.subf %320, %369 : vector<8x128xf32>
    %371 = arith.mulf %362, %370 : vector<8x128xf32>
    %372 = arith.addf %369, %371 : vector<8x128xf32>
    %373 = arith.index_cast %c6_i32 : i32 to index
    %c0_78 = arith.constant 0 : index
    %c0_79 = arith.constant 0 : index
    %374 = vector.load %arg8[%373, %c0_78, %c0_79] : memref<8x8x128xf32, #tpu.memory_space<vmem>>, vector<1x8x128xf32>
    %375 = vector.shape_cast %374 : vector<1x8x128xf32> to vector<8x128xf32>
    %376 = vector.shape_cast %372 : vector<8x128xf32> to vector<1x8x128xf32>
    tpu.vector_store %arg8[%373, %c0_78, %c0_79], %376 {strides = array<i32>} : memref<8x8x128xf32, #tpu.memory_space<vmem>>, vector<1x8x128xf32>,
    %c7_i32 = arith.constant 7 : i32
    %377 = arith.index_cast %c7_i32 : i32 to index
    %c0_80 = arith.constant 0 : index
    %c0_81 = arith.constant 0 : index
    %378 = vector.load %arg1[%377, %c0_80, %c0_81] : memref<8x8x384xf32, #tpu.memory_space<vmem>>, vector<1x8x384xf32>
    %379 = vector.shape_cast %378 : vector<1x8x384xf32> to vector<8x384xf32>
    %cst_82 = arith.constant dense<0.000000e+00> : vector<8x384xf32>
    %380 = tpu.matmul %348, %3, %cst_82 {dimension_numbers = #tpu.dot_dimension_numbers<[1], [0], [0], [1], [0, 0, 1, 1], [], []>} : vector<8x128xf32>, vector<128x384xf32>, vector<8x384xf32> -> vector<8x384xf32>
    %381 = vector.extract_strided_slice %379 {offsets = [0, 0], sizes = [8, 256], strides = [1, 1]} : vector<8x384xf32> to vector<8x256xf32>
    %382 = vector.extract_strided_slice %380 {offsets = [0, 0], sizes = [8, 256], strides = [1, 1]} : vector<8x384xf32> to vector<8x256xf32>
    %383 = arith.addf %381, %382 : vector<8x256xf32>
    %384 = arith.negf %383 : vector<8x256xf32>
    %385 = math.exp %384 : vector<8x256xf32>
    %cst_83 = arith.constant 1.000000e+00 : f32
    %386 = vector.broadcast %cst_83 : f32 to vector<8x256xf32>
    %387 = arith.addf %386, %385 : vector<8x256xf32>
    %388 = arith.divf %386, %387 : vector<8x256xf32>
    %389 = vector.extract_strided_slice %388 {offsets = [0, 0], sizes = [8, 128], strides = [1, 1]} : vector<8x256xf32> to vector<8x128xf32>
    %390 = vector.extract_strided_slice %388 {offsets = [0, 128], sizes = [8, 128], strides = [1, 1]} : vector<8x256xf32> to vector<8x128xf32>
    %391 = vector.extract_strided_slice %379 {offsets = [0, 256], sizes = [8, 128], strides = [1, 1]} : vector<8x384xf32> to vector<8x128xf32>
    %392 = vector.extract_strided_slice %380 {offsets = [0, 256], sizes = [8, 128], strides = [1, 1]} : vector<8x384xf32> to vector<8x128xf32>
    %393 = vector.broadcast %4 : vector<1x128xf32> to vector<8x128xf32>
    %394 = arith.addf %392, %393 : vector<8x128xf32>
    %395 = arith.mulf %389, %394 : vector<8x128xf32>
    %396 = arith.addf %391, %395 : vector<8x128xf32>
    %397 = math.tanh %396 : vector<8x128xf32>
    %398 = arith.subf %348, %397 : vector<8x128xf32>
    %399 = arith.mulf %390, %398 : vector<8x128xf32>
    %400 = arith.addf %397, %399 : vector<8x128xf32>
    %cst_84 = arith.constant dense<0.000000e+00> : vector<8x384xf32>
    %401 = tpu.matmul %400, %5, %cst_84 {dimension_numbers = #tpu.dot_dimension_numbers<[1], [0], [0], [1], [0, 0, 1, 1], [], []>} : vector<8x128xf32>, vector<128x384xf32>, vector<8x384xf32> -> vector<8x384xf32>
    %402 = vector.broadcast %6 : vector<1x384xf32> to vector<8x384xf32>
    %403 = arith.addf %401, %402 : vector<8x384xf32>
    %cst_85 = arith.constant dense<0.000000e+00> : vector<8x384xf32>
    %404 = tpu.matmul %372, %7, %cst_85 {dimension_numbers = #tpu.dot_dimension_numbers<[1], [0], [0], [1], [0, 0, 1, 1], [], []>} : vector<8x128xf32>, vector<128x384xf32>, vector<8x384xf32> -> vector<8x384xf32>
    %405 = vector.extract_strided_slice %403 {offsets = [0, 0], sizes = [8, 256], strides = [1, 1]} : vector<8x384xf32> to vector<8x256xf32>
    %406 = vector.extract_strided_slice %404 {offsets = [0, 0], sizes = [8, 256], strides = [1, 1]} : vector<8x384xf32> to vector<8x256xf32>
    %407 = arith.addf %405, %406 : vector<8x256xf32>
    %408 = arith.negf %407 : vector<8x256xf32>
    %409 = math.exp %408 : vector<8x256xf32>
    %cst_86 = arith.constant 1.000000e+00 : f32
    %410 = vector.broadcast %cst_86 : f32 to vector<8x256xf32>
    %411 = arith.addf %410, %409 : vector<8x256xf32>
    %412 = arith.divf %410, %411 : vector<8x256xf32>
    %413 = vector.extract_strided_slice %412 {offsets = [0, 0], sizes = [8, 128], strides = [1, 1]} : vector<8x256xf32> to vector<8x128xf32>
    %414 = vector.extract_strided_slice %412 {offsets = [0, 128], sizes = [8, 128], strides = [1, 1]} : vector<8x256xf32> to vector<8x128xf32>
    %415 = vector.extract_strided_slice %403 {offsets = [0, 256], sizes = [8, 128], strides = [1, 1]} : vector<8x384xf32> to vector<8x128xf32>
    %416 = vector.extract_strided_slice %404 {offsets = [0, 256], sizes = [8, 128], strides = [1, 1]} : vector<8x384xf32> to vector<8x128xf32>
    %417 = vector.broadcast %8 : vector<1x128xf32> to vector<8x128xf32>
    %418 = arith.addf %416, %417 : vector<8x128xf32>
    %419 = arith.mulf %413, %418 : vector<8x128xf32>
    %420 = arith.addf %415, %419 : vector<8x128xf32>
    %421 = math.tanh %420 : vector<8x128xf32>
    %422 = arith.subf %372, %421 : vector<8x128xf32>
    %423 = arith.mulf %414, %422 : vector<8x128xf32>
    %424 = arith.addf %421, %423 : vector<8x128xf32>
    %425 = arith.index_cast %c7_i32 : i32 to index
    %c0_87 = arith.constant 0 : index
    %c0_88 = arith.constant 0 : index
    %426 = vector.load %arg8[%425, %c0_87, %c0_88] : memref<8x8x128xf32, #tpu.memory_space<vmem>>, vector<1x8x128xf32>
    %427 = vector.shape_cast %426 : vector<1x8x128xf32> to vector<8x128xf32>
    %428 = vector.shape_cast %424 : vector<8x128xf32> to vector<1x8x128xf32>
    tpu.vector_store %arg8[%425, %c0_87, %c0_88], %428 {strides = array<i32>} : memref<8x8x128xf32, #tpu.memory_space<vmem>>, vector<1x8x128xf32>,
    %c8_i32 = arith.constant 8 : i32
    %c0_89 = arith.constant 0 : index
    %c0_90 = arith.constant 0 : index
    %c0_91 = arith.constant 0 : index
    %429 = vector.load %arg9[%c0_89, %c0_90, %c0_91] : memref<2x8x128xf32, #tpu.memory_space<vmem>>, vector<1x8x128xf32>
    %430 = vector.shape_cast %429 : vector<1x8x128xf32> to vector<8x128xf32>
    %431 = vector.shape_cast %400 : vector<8x128xf32> to vector<1x8x128xf32>
    tpu.vector_store %arg9[%c0_89, %c0_90, %c0_91], %431 {strides = array<i32>} : memref<2x8x128xf32, #tpu.memory_space<vmem>>, vector<1x8x128xf32>,
    %c1_92 = arith.constant 1 : index
    %c0_93 = arith.constant 0 : index
    %c0_94 = arith.constant 0 : index
    %432 = vector.load %arg9[%c1_92, %c0_93, %c0_94] : memref<2x8x128xf32, #tpu.memory_space<vmem>>, vector<1x8x128xf32>
    %433 = vector.shape_cast %432 : vector<1x8x128xf32> to vector<8x128xf32>
    %434 = vector.shape_cast %424 : vector<8x128xf32> to vector<1x8x128xf32>
    tpu.vector_store %arg9[%c1_92, %c0_93, %c0_94], %434 {strides = array<i32>} : memref<2x8x128xf32, #tpu.memory_space<vmem>>, vector<1x8x128xf32>,
    return
  }
  func.func @transform_0(%arg0: i32) -> (i32, i32, i32) {
    %c0_i32 = arith.constant 0 : i32
    %c0_i32_0 = arith.constant 0 : i32
    %c0_i32_1 = arith.constant 0 : i32
    return %arg0, %c0_i32, %c0_i32_0 : i32, i32, i32
  }
  func.func @transform_1(%arg0: i32) -> (i32, i32) {
    %c0_i32 = arith.constant 0 : i32
    %c0_i32_0 = arith.constant 0 : i32
    %c0_i32_1 = arith.constant 0 : i32
    return %c0_i32, %c0_i32_0 : i32, i32
  }
  func.func @transform_2(%arg0: i32) -> (i32, i32) {
    %c0_i32 = arith.constant 0 : i32
    %c0_i32_0 = arith.constant 0 : i32
    %c0_i32_1 = arith.constant 0 : i32
    return %c0_i32, %c0_i32_0 : i32, i32
  }
  func.func @transform_3(%arg0: i32) -> (i32, i32) {
    %c0_i32 = arith.constant 0 : i32
    %c0_i32_0 = arith.constant 0 : i32
    %c0_i32_1 = arith.constant 0 : i32
    return %c0_i32, %c0_i32_0 : i32, i32
  }
  func.func @transform_4(%arg0: i32) -> (i32, i32) {
    %c0_i32 = arith.constant 0 : i32
    %c0_i32_0 = arith.constant 0 : i32
    %c0_i32_1 = arith.constant 0 : i32
    return %c0_i32, %c0_i32_0 : i32, i32
  }
  func.func @transform_5(%arg0: i32) -> (i32, i32) {
    %c0_i32 = arith.constant 0 : i32
    %c0_i32_0 = arith.constant 0 : i32
    %c0_i32_1 = arith.constant 0 : i32
    return %c0_i32, %c0_i32_0 : i32, i32
  }
  func.func @transform_6(%arg0: i32) -> (i32, i32) {
    %c0_i32 = arith.constant 0 : i32
    %c0_i32_0 = arith.constant 0 : i32
    %c0_i32_1 = arith.constant 0 : i32
    return %c0_i32, %c0_i32_0 : i32, i32
  }
  func.func @transform_7(%arg0: i32) -> (i32, i32, i32) {
    %c0_i32 = arith.constant 0 : i32
    %c0_i32_0 = arith.constant 0 : i32
    %c0_i32_1 = arith.constant 0 : i32
    return %arg0, %c0_i32, %c0_i32_0 : i32, i32, i32
  }
}

</mosaic_0001>

<bundles_post_ra>
// kernel: tpu_custom_call.1
= control target key start
LH: loop header
LB: loop body
LE: loop exit
PB: predicated region body
PF: predicated region fallthrough
CT: control target
= control target key end

     0   :  { %12 = vsyncpa [#allocation4], 0  ;;  %s5788_s0 = inlined_call_operand.hbm [shape: f32[8,8,384], index: 0, kind: input, shape index: {}]   ;;  %s5789_s1 = inlined_call_operand.hbm [shape: f32[128,384], index: 1, kind: input, shape index: {}]   ;;  %s5790_s2 = inlined_call_operand.hbm [shape: f32[1,128], index: 2, kind: input, shape index: {}]   ;;  %s5791_s3 = inlined_call_operand.hbm [shape: f32[128,384], index: 3, kind: input, shape index: {}]   ;;  %s5792_s4 = inlined_call_operand.vmem [shape: f32[1,384], index: 4, kind: input, shape index: {}]   ;;  %s5793_s5 = inlined_call_operand.hbm [shape: f32[128,384], index: 5, kind: input, shape index: {}]   ;;  %s5794_s6 = inlined_call_operand.vmem [shape: f32[1,128], index: 6, kind: input, shape index: {}]   ;;  %s5795_s7 = inlined_call_operand.hbm [shape: f32[8,8,128], index: 7, kind: output, shape index: {}]  }
   0x1   :  { %13 = vsyncpa [#allocation7], 0 }
   0x2   :  { %14 = vsyncpa [#allocation10], 0 }
   0x3   :  { %15 = vsyncpa [#allocation5], 0  ;;  %s33_s26 = sshll.u32 %s5789_s1, 4  ;;  %s3311_s27 = smov [#allocation6]   ;;  %s34_s26 = int_to_ptr.hbm [resolvable:$true] %s33_s26 }
   0x4   :  { %s35_s28 = sshll.u32 %s3311_s27, 4  ;;  %s57_s8 = sshll.u32 %s5791_s3, 4  ;;  %s36_s28 = int_to_ptr.vmem [resolvable:$true] %s35_s28  ;;  %s58_s8 = int_to_ptr.hbm [resolvable:$true] %s57_s8 }
   0x5   :  { %s3312_s9 = smov 384   ;;  %s3313_s10 = smov 24  }
   0x6   :  { %41 = dma.hbm_to_vmem [thread:$0]  %s34_s26, 6144, %s36_s28, [#allocation7], %s3312_s9, %s3312_s9, %s3313_s10  }
   0x7   :  { %s3314_s11 = smov [#allocation9]   ;;  %s20_s15 = sshll.u32 %s5788_s0, 4  ;;  %s21_s15 = int_to_ptr.hbm [resolvable:$true] %s20_s15 }
   0x8   :  { %s59_s12 = sshll.u32 %s3314_s11, 4  ;;  %s47_s17 = sshll.u32 %s5790_s2, 4  ;;  %s60_s12 = int_to_ptr.vmem [resolvable:$true] %s59_s12  ;;  %s48_s17 = int_to_ptr.hbm [resolvable:$true] %s47_s17 }
   0x9   :  { %65 = dma.hbm_to_vmem [thread:$0]  %s58_s8, 6144, %s60_s12, [#allocation10], %s3312_s9, %s3312_s9, %s3313_s10  }
   0xa   :  { %s3315_s18 = smov [#allocation3]   ;;  %s3316_s3 = smov [#allocation8]  }
   0xb   :  { %s22_s19 = sshll.u32 %s3315_s18, 4  ;;  %s49_s20 = sshll.u32 %s3316_s3, 4  ;;  %s23_s19 = int_to_ptr.vmem [resolvable:$true] %s22_s19  ;;  %s50_s20 = int_to_ptr.vmem [resolvable:$true] %s49_s20 }
   0xc   :  { %28 = dma.hbm_to_vmem [thread:$0]  %s21_s15, 3072, %s23_s19, [#allocation4], %s3312_s9, %s3312_s9, %s3313_s10  }
   0xd   :  { %s72_s23 = sshll.u32 %s5793_s5, 4  ;;  %s3317_s0 = smov [#allocation11]   ;;  %s73_s23 = int_to_ptr.hbm [resolvable:$true] %s72_s23 }
   0xe   :  { %52 = dma.hbm_to_vmem [thread:$0]  %s48_s17, 16, %s50_s20, [#allocation7]  }
   0xf   :  { %s74_s24 = sshll.u32 %s3317_s0, 4  ;;  %s75_s24 = int_to_ptr.vmem [resolvable:$true] %s74_s24 }
  0x10   :  { %80 = dma.hbm_to_vmem [thread:$0]  %s73_s23, 6144, %s75_s24, [#allocation10], %s3312_s9, %s3312_s9, %s3313_s10  }
  0x11   :  { %3303 = dma.done.wait [#allocation4], 3072  }
  0x12   :  { %3304 = vsyncadd [#allocation4], 4294964224 }
  0x13   :  { %3305 = dma.done.wait [#allocation7], 6160  }
  0x14   :  { %3306 = vsyncadd [#allocation7], 4294961136 }
  0x15   :  { %3307 = dma.done.wait [#allocation10], 12288  }
  0x16   :  { %3308 = vsyncadd [#allocation10], 4294955008  ;;  %v3377_v0 = vld [vmem:[#allocation6 + $0x168] sm:$0xff]  ;;  %v3379_v1 = vld [vmem:[#allocation6 + $0x170] sm:$0xff]  ;;  %v5797_v52 = vmov 0.0   ;;  %s2518_s12 = sshll.u32 %s5795_s7, 4  ;;  %s2519_s12 = int_to_ptr.hbm [resolvable:$true] %s2518_s12 }
  0x17   :  { %v3381_v2 = vld [vmem:[#allocation6 + $0x150] sm:$0xff]  ;;  %262 = vmatpush.msra.mxu0 %v3377_v0  ;;  %282 = vmatpush.msra.mxu1 %v3379_v1  ;;  %v3385_v3 = vld [vmem:[#allocation6 + $0x158] sm:$0xff]  ;;  %v3389_v5 = vld [vmem:[#allocation6 + $0x140] sm:$0xff]  ;;  %s3320_s13 = smov 128   ;;  %s3321_s14 = smov 8  }
  0x18   :  { %6126 = vst [vmem:[#allocation17_spill] sm:$0xff] %v3385_v3  ;;  %v3387_v4 = vld [vmem:[#allocation6 + $0x138] sm:$0xff]  ;;  %v3393_v6 = vld [vmem:[#allocation6 + $0x120] sm:$0xff]  ;;  %v3395_v7 = vld [vmem:[#allocation6 + $0x128] sm:$0xff] }
  0x19   :  { %6127 = vst [vmem:[#allocation18_spill] sm:$0xff] %v3387_v4  ;;  %263 = vmatpush.msra.mxu0 %v3381_v2  ;;  %283 = vmatpush.msra.mxu1 %v3385_v3  ;;  %v3399_v8 = vld [vmem:[#allocation6 + $0x108] sm:$0xff]  ;;  %v3401_v9 = vld [vmem:[#allocation6 + $0x110] sm:$0xff]  ;;  %v3407_v11 = vld [vmem:[#allocation6 + $0xf8] sm:$0xff] }
  0x1a   :  { %6128 = vst [vmem:[#allocation19_spill] sm:$0xff] %v3395_v7  ;;  %v3405_v10 = vld [vmem:[#allocation6 + $0xf0] sm:$0xff]  ;;  %v3409_v12 = vld [vmem:[#allocation6 + $0x178] sm:$0xff]  ;;  %v3413_v13 = vld [vmem:[#allocation6 + $0x160] sm:$0xff] }
  0x1b   :  { %264 = vmatpush.msra.mxu0 %v3387_v4  ;;  %284 = vmatpush.msra.mxu1 %v3389_v5  ;;  %6129 = vst [vmem:[#allocation20_spill] sm:$0xff] %v3401_v9  ;;  %v3415_v14 = vld [vmem:[#allocation6 + $0xd8] sm:$0xff]  ;;  %v3417_v15 = vld [vmem:[#allocation6 + $0xe0] sm:$0xff]  ;;  %v3422_v16 = vld [vmem:[#allocation6 + $0x148] sm:$0xff] }
  0x1c   :  { %6130 = vst [vmem:[#allocation21_spill] sm:$0xff] %v3407_v11  ;;  %302 = vmatpush.msra.mxu2 %v3409_v12  ;;  %v3424_v17 = vld [vmem:[#allocation6 + $0xc0] sm:$0xff]  ;;  %v3426_v18 = vld [vmem:[#allocation6 + $0xc8] sm:$0xff]  ;;  %v3431_v19 = vld [vmem:[#allocation6 + $0x130] sm:$0xff] }
  0x1d   :  { %265 = vmatpush.msra.mxu0 %v3393_v6  ;;  %285 = vmatpush.msra.mxu1 %v3395_v7  ;;  %6131 = vst [vmem:[#allocation22_spill] sm:$0xff] %v3417_v15  ;;  %v3433_v20 = vld [vmem:[#allocation6 + $0xa8] sm:$0xff]  ;;  %v3435_v21 = vld [vmem:[#allocation6 + $0xb0] sm:$0xff]  ;;  %v3440_v22 = vld [vmem:[#allocation6 + $0x118] sm:$0xff] }
  0x1e   :  { %6132 = vst [vmem:[#allocation23_spill] sm:$0xff] %v3426_v18  ;;  %303 = vmatpush.msra.mxu2 %v3413_v13  ;;  %v3442_v23 = vld [vmem:[#allocation6 + $0x90] sm:$0xff]  ;;  %v3444_v24 = vld [vmem:[#allocation6 + $0x98] sm:$0xff]  ;;  %v3451_v26 = vld [vmem:[#allocation6 + $0x100] sm:$0xff] }
  0x1f   :  { %266 = vmatpush.msra.mxu0 %v3399_v8  ;;  %286 = vmatpush.msra.mxu1 %v3401_v9  ;;  %6133 = vst [vmem:[#allocation24_spill] sm:$0xff] %v3435_v21  ;;  %v3447_v25 = vld [vmem:[#allocation9 + $0x168] sm:$0xff]  ;;  %v3453_v27 = vld [vmem:[#allocation9 + $0x150] sm:$0xff]  ;;  %v3457_v29 = vld [vmem:[#allocation6 + $0x80] sm:$0xff] }
  0x20   :  { %304 = vmatpush.msra.mxu2 %v3422_v16  ;;  %6134 = vst [vmem:[#allocation25_spill] sm:$0xff] %v3444_v24  ;;  %v3455_v28 = vld [vmem:[#allocation6 + $0x78] sm:$0xff]  ;;  %379 = vmatpush.msra.mxu3 %v3447_v25  ;;  %v3463_v30 = vld [vmem:[#allocation6 + $0xe8] sm:$0xff]  ;;  %v3467_v32 = vld [vmem:[#allocation6 + $0x60] sm:$0xff] }
  0x21   :  { %267 = vmatpush.msra.mxu0 %v3405_v10  ;;  %287 = vmatpush.msra.mxu1 %v3407_v11  ;;  %6135 = vst [vmem:[#allocation26_spill] sm:$0xff] %v3451_v26  ;;  %v3465_v31 = vld [vmem:[#allocation9 + $0x138] sm:$0xff]  ;;  %v3469_v33 = vld [vmem:[#allocation6 + $0x68] sm:$0xff]  ;;  %v3475_v34 = vld [vmem:[#allocation6 + $0xd0] sm:$0xff] }
  0x22   :  { %305 = vmatpush.msra.mxu2 %v3431_v19  ;;  %6136 = vst [vmem:[#allocation27_spill] sm:$0xff] %v3457_v29  ;;  %380 = vmatpush.msra.mxu3 %v3453_v27  ;;  %v3477_v35 = vld [vmem:[#allocation9 + $0x120] sm:$0xff]  ;;  %v3481_v37 = vld [vmem:[#allocation6 + $0x50] sm:$0xff]  ;;  %v3487_v38 = vld [vmem:[#allocation6 + $0xb8] sm:$0xff] }
  0x23   :  { %268 = vmatpush.msra.mxu0 %v3415_v14  ;;  %288 = vmatpush.msra.mxu1 %v3417_v15  ;;  %6137 = vst [vmem:[#allocation28_spill] sm:$0xff] %v3463_v30  ;;  %v3479_v36 = vld [vmem:[#allocation6 + $0x48] sm:$0xff]  ;;  %v3491_v40 = vld [vmem:[#allocation6 + $0x30] sm:$0xff]  ;;  %v3493_v41 = vld [vmem:[#allocation6 + $0x38] sm:$0xff] }
  0x24   :  { %306 = vmatpush.msra.mxu2 %v3440_v22  ;;  %6138 = vst [vmem:[#allocation29_spill] sm:$0xff] %v3465_v31  ;;  %381 = vmatpush.msra.mxu3 %v3465_v31  ;;  %v3489_v39 = vld [vmem:[#allocation9 + $0x108] sm:$0xff]  ;;  %v3499_v42 = vld [vmem:[#allocation6 + $0xa0] sm:$0xff]  ;;  %v3501_v43 = vld [vmem:[#allocation9 + $0xf0] sm:$0xff] }
  0x25   :  { %269 = vmatpush.msra.mxu0 %v3424_v17  ;;  %289 = vmatpush.msra.mxu1 %v3426_v18  ;;  %6139 = vst [vmem:[#allocation30_spill] sm:$0xff] %v3469_v33  ;;  %v3503_v44 = vld [vmem:[#allocation6 + $0x18] sm:$0xff]  ;;  %v3505_v45 = vld [vmem:[#allocation6 + $0x20] sm:$0xff]  ;;  %v3511_v46 = vld [vmem:[#allocation6 + $0x88] sm:$0xff] }
  0x26   :  { %307 = vmatpush.msra.mxu2 %v3451_v26  ;;  %6140 = vst [vmem:[#allocation31_spill] sm:$0xff] %v3475_v34  ;;  %382 = vmatpush.msra.mxu3 %v3477_v35  ;;  %v3513_v47 = vld [vmem:[#allocation9 + $0xd8] sm:$0xff]  ;;  %v3517_v49 = vld [vmem:[#allocation6 + $0x8] sm:$0xff]  ;;  %v3524_v50 = vld [vmem:[#allocation6 + $0x70] sm:$0xff] }
  0x27   :  { %270 = vmatpush.msra.mxu0 %v3433_v20  ;;  %290 = vmatpush.msra.mxu1 %v3435_v21  ;;  %6141 = vst [vmem:[#allocation32_spill] sm:$0xff] %v3477_v35  ;;  %v3515_v48 = vld [vmem:[#allocation6] sm:$0xff]  ;;  %v3533_v53 = vld [vmem:[#allocation6 + $0x58] sm:$0xff]  ;;  %v3541_v56 = vld [vmem:[#allocation9 + $0x148] sm:$0xff] }
  0x28   :  { %6142 = vst [vmem:[#allocation33_spill] sm:$0xff] %v3481_v37  ;;  %308 = vmatpush.msra.mxu2 %v3463_v30  ;;  %383 = vmatpush.msra.mxu3 %v3489_v39  ;;  %v3526_v51 = vld [vmem:[#allocation9 + $0x178] sm:$0xff]  ;;  %v3535_v54 = vld [vmem:[#allocation9 + $0x160] sm:$0xff]  ;;  %v3549_v58 = vld [vmem:[#allocation6 + $0x10] sm:$0xff] }
  0x29   :  { %271 = vmatpush.msra.mxu0 %v3442_v23  ;;  %291 = vmatpush.msra.mxu1 %v3444_v24  ;;  %6143 = vst [vmem:[#allocation34_spill] sm:$0xff] %v3487_v38  ;;  %v3539_v55 = vld [vmem:[#allocation6 + $0x40] sm:$0xff]  ;;  %v3545_v57 = vld [vmem:[#allocation6 + $0x28] sm:$0xff]  ;;  %v3556_v60 = vld [vmem:[#allocation11 + $0x150] sm:$0xff] }
  0x2a   :  { %6144 = vst [vmem:[#allocation35_spill] sm:$0xff] %v3489_v39  ;;  %309 = vmatpush.msra.mxu2 %v3475_v34  ;;  %384 = vmatpush.msra.mxu3 %v3501_v43  ;;  %v3552_v59 = vld [vmem:[#allocation11 + $0x168] sm:$0xff]  ;;  %v3559_v61 = vld [vmem:[#allocation11 + $0x138] sm:$0xff]  ;;  %v3562_v62 = vld [vmem:[#allocation11 + $0x120] sm:$0xff] }
  0x2b   :  { %272 = vmatpush.msra.mxu0 %v3455_v28  ;;  %292 = vmatpush.msra.mxu1 %v3457_v29  ;;  %6145 = vst [vmem:[#allocation36_spill] sm:$0xff] %v3491_v40  ;;  %v3565_v63 = vld [vmem:[#allocation11 + $0x108] sm:$0xff]  ;;  %v3677_v39 = vld [vmem:[#allocation11 + $0x140] sm:$0xff]  ;;  %v3697_v35 = vld [vmem:[#allocation11 + $0x110] sm:$0xff] }
  0x2c   :  { %6146 = vst [vmem:[#allocation37_spill] sm:$0xff] %v3493_v41  ;;  %310 = vmatpush.msra.mxu2 %v3487_v38  ;;  %385 = vmatpush.msra.mxu3 %v3513_v47  ;;  %v3667_v38 = vld [vmem:[#allocation11 + $0x158] sm:$0xff]  ;;  %v3687_v34 = vld [vmem:[#allocation11 + $0x128] sm:$0xff] }
  0x2d   :  { %273 = vmatpush.msra.mxu0 %v3467_v32  ;;  %293 = vmatpush.msra.mxu1 %v3469_v33  ;;  %6147 = vst [vmem:[#allocation38_spill] sm:$0xff] %v3499_v42  ;;  %v259_v30 = vld [vmem:[#allocation3] sm:$0xff] }
  0x2e   :  { %6148 = vst [vmem:[#allocation39_spill] sm:$0xff] %v3501_v43  ;;  %311 = vmatpush.msra.mxu2 %v3499_v42  ;;  %v3649_v42 = vld [vmem:[#allocation9 + $0x70] sm:$0xff] }
  0x2f   :  { %274 = vmatpush.msra.mxu0 %v3479_v36  ;;  %294 = vmatpush.msra.mxu1 %v3481_v37  ;;  %6149 = vst [vmem:[#allocation40_spill] sm:$0xff] %v3503_v44  ;;  %v3657_v43 = vld [vmem:[#allocation11 + $0x170] sm:$0xff] }
  0x30   :  { %6150 = vst [vmem:[#allocation41_spill] sm:$0xff] %v3505_v45  ;;  %312 = vmatpush.msra.mxu2 %v3511_v46 }
  0x31   :  { %275 = vmatpush.msra.mxu0 %v3491_v40  ;;  %295 = vmatpush.msra.mxu1 %v3493_v41  ;;  %6151 = vst [vmem:[#allocation42_spill] sm:$0xff] %v3511_v46  ;;  %v3631_v46 = vld [vmem:[#allocation9 + $0xa0] sm:$0xff] }
  0x32   :  { %6152 = vst [vmem:[#allocation43_spill] sm:$0xff] %v3513_v47  ;;  %313 = vmatpush.msra.mxu2 %v3524_v50  ;;  %v3640_v47 = vld [vmem:[#allocation9 + $0x88] sm:$0xff] }
  0x33   :  { %6153 = vst [vmem:[#allocation44_spill] sm:$0xff] %v3517_v49  ;;  %276 = vmatpush.msra.mxu0 %v3503_v44  ;;  %296 = vmatpush.msra.mxu1 %v3505_v45 }
  0x34   :  { %6154 = vst [vmem:[#allocation45_spill] sm:$0xff] %v3524_v50  ;;  %314 = vmatpush.msra.mxu2 %v3533_v53  ;;  %v3613_v50 = vld [vmem:[#allocation9 + $0xd0] sm:$0xff] }
  0x35   :  { %277 = vmatpush.msra.mxu0 %v3515_v48  ;;  %297 = vmatpush.msra.mxu1 %v3517_v49  ;;  %6155 = vst [vmem:[#allocation46_spill] sm:$0xff] %v3533_v53  ;;  %v3604_v53 = vld [vmem:[#allocation9 + $0xe8] sm:$0xff] }
  0x36   :  { %278 = vmatmul.f32.vlgmr.msra.gmra.mxu0 %v5797_v52  ;;  %298 = vmatmul.f32.vlgmr.msra.gmra.mxu1 %v5797_v52  ;;  %6156 = vst [vmem:[#allocation47_spill] sm:$0xff] %v3539_v55 }
  0x37   :  { %419 = vmatpush.msrb.mxu1 %v3526_v51  ;;  %6157 = vst [vmem:[#allocation48_spill] sm:$0xff] %v3545_v57  ;;  %315 = vmatpush.msra.mxu2 %v3539_v55  ;;  %v3597_v55 = vld [vmem:[#allocation11 + $0x90] sm:$0xff] }
  0x38   :  { %6158 = vst [vmem:[#allocation49_spill] sm:$0xff] %v3549_v58 }
  0x39   :  { %420 = vmatpush.msrb.mxu1 %v3535_v54  ;;  %316 = vmatpush.msra.mxu2 %v3545_v57  ;;  %6159 = vst [vmem:[#allocation50_spill] sm:$0xff] %v3552_v59  ;;  %v3568_v57 = vld [vmem:[#allocation11 + $0xf0] sm:$0xff] }
  0x3a   :  { %6160 = vst [vmem:[#allocation51_spill] sm:$0xff] %v3556_v60 }
  0x3b   :  { %421 = vmatpush.msrb.mxu1 %v3541_v56  ;;  %317 = vmatpush.msra.mxu2 %v3549_v58  ;;  %6161 = vst [vmem:[#allocation52_spill] sm:$0xff] %v3559_v61  ;;  %v3588_v58 = vld [vmem:[#allocation11 + $0xa8] sm:$0xff] }
  0x3c   :  { %318 = vmatmul.f32.vlgmr.msra.gmra.mxu2 %v5797_v52  ;;  %6162 = vst [vmem:[#allocation53_spill] sm:$0xff] %v3562_v62  ;;  %v3571_v52 = vld [vmem:[#allocation11 + $0xd8] sm:$0xff] }
  0x3d   :  { %439 = vmatpush.msrb.mxu2 %v3552_v59  ;;  %6163 = vst [vmem:[#allocation54_spill] sm:$0xff] %v3565_v63  ;;  %v3575_v59 = vld [vmem:[#allocation9 + $0xc0] sm:$0xff] }
  0x3e   :  { %6164 = vst [vmem:[#allocation55_spill] sm:$0xff] %v3568_v57  ;;  %386 = vmatpush.msra.mxu3 %v3575_v59 }
  0x3f   :  { %440 = vmatpush.msrb.mxu2 %v3556_v60  ;;  %6165 = vst [vmem:[#allocation56_spill] sm:$0xff] %v3571_v52  ;;  %v3577_v60 = vld [vmem:[#allocation9 + $0x130] sm:$0xff] }
  0x40   :  { %6166 = vst [vmem:[#allocation57_spill] sm:$0xff] %v3575_v59  ;;  %422 = vmatpush.msrb.mxu1 %v3577_v60  ;;  %v3622_v59 = vld [vmem:[#allocation9 + $0xb8] sm:$0xff] }
  0x41   :  { %441 = vmatpush.msrb.mxu2 %v3559_v61  ;;  %v3581_v61 = vld [vmem:[#allocation11 + $0xc0] sm:$0xff]  ;;  %6169 = vst [vmem:[#allocation60_spill] sm:$0xff] %v3588_v58 }
  0x42   :  { %6167 = vst [vmem:[#allocation58_spill] sm:$0xff] %v3581_v61 }
  0x43   :  { %442 = vmatpush.msrb.mxu2 %v3562_v62  ;;  %v3584_v62 = vld [vmem:[#allocation9 + $0xa8] sm:$0xff]  ;;  %6171 = vst [vmem:[#allocation62_spill] sm:$0xff] %v3597_v55 }
  0x44   :  { %6168 = vst [vmem:[#allocation59_spill] sm:$0xff] %v3584_v62  ;;  %387 = vmatpush.msra.mxu3 %v3584_v62  ;;  %v3606_v62 = vld [vmem:[#allocation11 + $0x78] sm:$0xff] }
  0x45   :  { %443 = vmatpush.msrb.mxu2 %v3565_v63  ;;  %v3586_v63 = vld [vmem:[#allocation9 + $0x118] sm:$0xff]  ;;  %6173 = vst [vmem:[#allocation64_spill] sm:$0xff] %v3606_v62 }
  0x46   :  { %423 = vmatpush.msrb.mxu1 %v3586_v63  ;;  %6184 = vst [vmem:[#allocation75_spill] sm:$0xff] %v3657_v43 }
  0x47   :  { %444 = vmatpush.msrb.mxu2 %v3568_v57  ;;  %v3595_v57 = vld [vmem:[#allocation9 + $0x100] sm:$0xff]  ;;  %6185 = vst [vmem:[#allocation76_spill] sm:$0xff] %v3667_v38 }
  0x48   :  { %424 = vmatpush.msrb.mxu1 %v3595_v57  ;;  %6186 = vst [vmem:[#allocation77_spill] sm:$0xff] %v3677_v39 }
  0x49   :  { %445 = vmatpush.msrb.mxu2 %v3571_v52  ;;  %v3593_v52 = vld [vmem:[#allocation9 + $0x90] sm:$0xff]  ;;  %6187 = vst [vmem:[#allocation78_spill] sm:$0xff] %v3687_v34 }
  0x4a   :  { %6170 = vst [vmem:[#allocation61_spill] sm:$0xff] %v3593_v52  ;;  %388 = vmatpush.msra.mxu3 %v3593_v52  ;;  %425 = vmatpush.msrb.mxu1 %v3604_v53  ;;  %v3615_v52 = vld [vmem:[#allocation11 + $0x60] sm:$0xff] }
  0x4b   :  { %446 = vmatpush.msrb.mxu2 %v3581_v61  ;;  %v3602_v61 = vld [vmem:[#allocation9 + $0x78] sm:$0xff]  ;;  %6175 = vst [vmem:[#allocation66_spill] sm:$0xff] %v3615_v52 }
  0x4c   :  { %6172 = vst [vmem:[#allocation63_spill] sm:$0xff] %v3602_v61  ;;  %389 = vmatpush.msra.mxu3 %v3602_v61  ;;  %426 = vmatpush.msrb.mxu1 %v3613_v50  ;;  %v3624_v61 = vld [vmem:[#allocation11 + $0x48] sm:$0xff] }
  0x4d   :  { %447 = vmatpush.msrb.mxu2 %v3588_v58  ;;  %v3611_v58 = vld [vmem:[#allocation9 + $0x60] sm:$0xff]  ;;  %6177 = vst [vmem:[#allocation68_spill] sm:$0xff] %v3624_v61 }
  0x4e   :  { %6174 = vst [vmem:[#allocation65_spill] sm:$0xff] %v3611_v58  ;;  %390 = vmatpush.msra.mxu3 %v3611_v58  ;;  %427 = vmatpush.msrb.mxu1 %v3622_v59  ;;  %v3633_v58 = vld [vmem:[#allocation11 + $0x30] sm:$0xff] }
  0x4f   :  { %448 = vmatpush.msrb.mxu2 %v3597_v55  ;;  %v3620_v55 = vld [vmem:[#allocation9 + $0x48] sm:$0xff]  ;;  %6179 = vst [vmem:[#allocation70_spill] sm:$0xff] %v3633_v58 }
  0x50   :  { %6176 = vst [vmem:[#allocation67_spill] sm:$0xff] %v3620_v55  ;;  %391 = vmatpush.msra.mxu3 %v3620_v55  ;;  %428 = vmatpush.msrb.mxu1 %v3631_v46  ;;  %v3642_v55 = vld [vmem:[#allocation11 + $0x18] sm:$0xff] }
  0x51   :  { %449 = vmatpush.msrb.mxu2 %v3606_v62  ;;  %v3629_v62 = vld [vmem:[#allocation9 + $0x30] sm:$0xff]  ;;  %6181 = vst [vmem:[#allocation72_spill] sm:$0xff] %v3642_v55 }
  0x52   :  { %6178 = vst [vmem:[#allocation69_spill] sm:$0xff] %v3629_v62  ;;  %392 = vmatpush.msra.mxu3 %v3629_v62  ;;  %429 = vmatpush.msrb.mxu1 %v3640_v47  ;;  %v3651_v62 = vld [vmem:[#allocation11] sm:$0xff] }
  0x53   :  { %450 = vmatpush.msrb.mxu2 %v3615_v52  ;;  %v3638_v52 = vld [vmem:[#allocation9 + $0x18] sm:$0xff]  ;;  %6183 = vst [vmem:[#allocation74_spill] sm:$0xff] %v3651_v62 }
  0x54   :  { %6180 = vst [vmem:[#allocation71_spill] sm:$0xff] %v3638_v52  ;;  %393 = vmatpush.msra.mxu3 %v3638_v52  ;;  %430 = vmatpush.msrb.mxu1 %v3649_v42  ;;  %v3661_v52 = vld [vmem:[#allocation9 + $0x58] sm:$0xff] }
  0x55   :  { %451 = vmatpush.msrb.mxu2 %v3624_v61  ;;  %v3647_v61 = vld [vmem:[#allocation9] sm:$0xff]  ;;  %6189 = vst [vmem:[#allocation80_spill] sm:$0xff] %v3697_v35 }
  0x56   :  { %6182 = vst [vmem:[#allocation73_spill] sm:$0xff] %v3647_v61  ;;  %394 = vmatpush.msra.mxu3 %v3647_v61  ;;  %431 = vmatpush.msrb.mxu1 %v3661_v52  ;;  %v3671_v61 = vld [vmem:[#allocation9 + $0x40] sm:$0xff] }
  0x57   :  { %452 = vmatpush.msrb.mxu2 %v3633_v58  ;;  %v3655_v58 = vld [vmem:[#allocation9 + $0x170] sm:$0xff] }
  0x58   :  { %399 = vmatpush.msrb.mxu0 %v3655_v58  ;;  %459 = vmatpush.msrb.mxu3 %v3657_v43  ;;  %v3685_v43 = vld [vmem:[#allocation9 + $0x128] sm:$0xff] }
  0x59   :  { %453 = vmatpush.msrb.mxu2 %v3642_v55  ;;  %v3665_v55 = vld [vmem:[#allocation9 + $0x158] sm:$0xff]  ;;  %432 = vmatpush.msrb.mxu1 %v3671_v61 }
  0x5a   :  { %400 = vmatpush.msrb.mxu0 %v3665_v55  ;;  %460 = vmatpush.msrb.mxu3 %v3667_v38  ;;  %v3695_v38 = vld [vmem:[#allocation9 + $0x110] sm:$0xff] }
  0x5b   :  { %454 = vmatpush.msrb.mxu2 %v3651_v62  ;;  %v3675_v62 = vld [vmem:[#allocation9 + $0x140] sm:$0xff]  ;;  %6188 = vst [vmem:[#allocation79_spill] sm:$0xff] %v3695_v38 }
  0x5c   :  { %401 = vmatpush.msrb.mxu0 %v3675_v62  ;;  %461 = vmatpush.msrb.mxu3 %v3677_v39  ;;  %v3705_v39 = vld [vmem:[#allocation11 + $0xf8] sm:$0xff] }
  0x5d   :  { %574 = vmatpush.msra.mxu2 %v3379_v1  ;;  %v3681_v1 = vld [vmem:[#allocation9 + $0x28] sm:$0xff]  ;;  %6191 = vst [vmem:[#allocation82_spill] sm:$0xff] %v3705_v39 }
  0x5e   :  { %433 = vmatpush.msrb.mxu1 %v3681_v1  ;;  %402 = vmatpush.msrb.mxu0 %v3685_v43 }
  0x5f   :  { %575 = vmatpush.msra.mxu2 %v3385_v3  ;;  %v3691_v3 = vld [vmem:[#allocation9 + $0x10] sm:$0xff]  ;;  %462 = vmatpush.msrb.mxu3 %v3687_v34  ;;  %v3713_v34 = vld [vmem:[#allocation11 + $0xe0] sm:$0xff] }
  0x60   :  { %434 = vmatpush.msrb.mxu1 %v3691_v3  ;;  %403 = vmatpush.msrb.mxu0 %v3695_v38  ;;  %6193 = vst [vmem:[#allocation84_spill] sm:$0xff] %v3713_v34 }
  0x61   :  { %576 = vmatpush.msra.mxu2 %v3389_v5  ;;  %463 = vmatpush.msrb.mxu3 %v3697_v35  ;;  %v3703_v5 = vld [vmem:[#allocation9 + $0xf8] sm:$0xff]  ;;  %v260_v35 = vld [vmem:[#allocation3 + $0x8] sm:$0xff] }
  0x62   :  { %554 = vmatpush.msra.mxu1 %v3377_v0  ;;  %6190 = vst [vmem:[#allocation81_spill] sm:$0xff] %v3703_v5  ;;  %404 = vmatpush.msrb.mxu0 %v3703_v5  ;;  %v3721_v5 = vld [vmem:[#allocation11 + $0xc8] sm:$0xff] }
  0x63   :  { %577 = vmatpush.msra.mxu2 %v3395_v7  ;;  %464 = vmatpush.msrb.mxu3 %v3705_v39  ;;  %v3711_v7 = vld [vmem:[#allocation9 + $0xe0] sm:$0xff]  ;;  %6194 = vst [vmem:[#allocation85_spill] sm:$0xff] %v3721_v5 }
  0x64   :  { %555 = vmatpush.msra.mxu1 %v3381_v2  ;;  %6192 = vst [vmem:[#allocation83_spill] sm:$0xff] %v3711_v7  ;;  %405 = vmatpush.msrb.mxu0 %v3711_v7 }
  0x65   :  { %578 = vmatpush.msra.mxu2 %v3401_v9  ;;  %465 = vmatpush.msrb.mxu3 %v3713_v34  ;;  %v3719_v9 = vld [vmem:[#allocation9 + $0xc8] sm:$0xff]  ;;  %v3729_v34 = vld [vmem:[#allocation11 + $0xb0] sm:$0xff] }
  0x66   :  { %556 = vmatpush.msra.mxu1 %v3387_v4  ;;  %406 = vmatpush.msrb.mxu0 %v3719_v9  ;;  %6195 = vst [vmem:[#allocation86_spill] sm:$0xff] %v3729_v34 }
  0x67   :  { %579 = vmatpush.msra.mxu2 %v3407_v11  ;;  %466 = vmatpush.msrb.mxu3 %v3721_v5  ;;  %v3727_v11 = vld [vmem:[#allocation9 + $0xb0] sm:$0xff] }
  0x68   :  { %557 = vmatpush.msra.mxu1 %v3393_v6  ;;  %407 = vmatpush.msrb.mxu0 %v3727_v11 }
  0x69   :  { %580 = vmatpush.msra.mxu2 %v3417_v15  ;;  %467 = vmatpush.msrb.mxu3 %v3729_v34  ;;  %v3811_v34 = vld [vmem:[#allocation11 + $0x160] sm:$0xff] }
  0x6a   :  { %558 = vmatpush.msra.mxu1 %v3399_v8  ;;  %6205 = vst [vmem:[#allocation95_spill] sm:$0xff] %v3811_v34 }
  0x6b   :  { %581 = vmatpush.msra.mxu2 %v3426_v18  ;;  %v3769_v18 = vld [vmem:[#allocation11 + $0x38] sm:$0xff] }
  0x6c   :  { %559 = vmatpush.msra.mxu1 %v3405_v10  ;;  %6201 = vst [vmem:[#allocation91_spill] sm:$0xff] %v3769_v18 }
  0x6d   :  { %582 = vmatpush.msra.mxu2 %v3435_v21  ;;  %v6200_v21 = vmov 0.0  }
  0x6e   :  { %560 = vmatpush.msra.mxu1 %v3415_v14  ;;  %455 = vmatmul.f32.vlgmr.msrb.gmra.mxu2 %v6200_v21 }
  0x6f   :  { %583 = vmatpush.msra.mxu2 %v3444_v24 }
  0x70   :  { %561 = vmatpush.msra.mxu1 %v3424_v17 }
  0x71   :  { %584 = vmatpush.msra.mxu2 %v3457_v29  ;;  %v3767_v29 = vld [vmem:[#allocation9 + $0x38] sm:$0xff] }
  0x72   :  { %562 = vmatpush.msra.mxu1 %v3433_v20 }
  0x73   :  { %585 = vmatpush.msra.mxu2 %v3469_v33  ;;  %v3777_v33 = vld [vmem:[#allocation9 + $0x20] sm:$0xff] }
  0x74   :  { %563 = vmatpush.msra.mxu1 %v3442_v23 }
  0x75   :  { %586 = vmatpush.msra.mxu2 %v3481_v37 }
  0x76   :  { %564 = vmatpush.msra.mxu1 %v3455_v28 }
  0x77   :  { %587 = vmatpush.msra.mxu2 %v3493_v41 }
  0x78   :  { %565 = vmatpush.msra.mxu1 %v3467_v32 }
  0x79   :  { %588 = vmatpush.msra.mxu2 %v3505_v45  ;;  %v3802_v45 = vld [vmem:[#allocation11 + $0x178] sm:$0xff] }
  0x7a   :  { %566 = vmatpush.msra.mxu1 %v3479_v36  ;;  %6204 = vst [vmem:[#allocation94_spill] sm:$0xff] %v3802_v45 }
  0x7b   :  { %589 = vmatpush.msra.mxu2 %v3517_v49 }
  0x7c   :  { %567 = vmatpush.msra.mxu1 %v3491_v40 }
  0x7d   :  { %701 = vmatpush.msrb.mxu2 %v3526_v51 }
  0x7e   :  { %568 = vmatpush.msra.mxu1 %v3503_v44 }
  0x7f   :  { %702 = vmatpush.msrb.mxu2 %v3535_v54 }
  0x80   :  { %569 = vmatpush.msra.mxu1 %v3515_v48 }
  0x81   :  { %703 = vmatpush.msrb.mxu2 %v3541_v56 }
  0x83   :  { %704 = vmatpush.msrb.mxu2 %v3577_v60  ;;  %v261_v60 = vld [vmem:[#allocation3 + $0x10] sm:$0xff] }
  0x85   :  { %705 = vmatpush.msrb.mxu2 %v3586_v63 }
  0x87   :  { %706 = vmatpush.msrb.mxu2 %v3595_v57  ;;  %v3843_v57 = vld [vmem:[#allocation11 + $0xd0] sm:$0xff] }
  0x89   :  { %707 = vmatpush.msrb.mxu2 %v3604_v53 }
  0x8b   :  { %708 = vmatpush.msrb.mxu2 %v3613_v50  ;;  %v6235_v50 = vld [vmem:[#allocation63_spill] sm:$0xff] }
  0x8d   :  { %709 = vmatpush.msrb.mxu2 %v3622_v59 }
  0x8f   :  { %710 = vmatpush.msrb.mxu2 %v3631_v46 }
  0x91   :  { %711 = vmatpush.msrb.mxu2 %v3640_v47 }
  0x93   :  { %712 = vmatpush.msrb.mxu2 %v3649_v42  ;;  %v3878_v42 = vld [vmem:[#allocation11 + $0x40] sm:$0xff] }
  0x94   :  { %6211 = vst [vmem:[#allocation99_spill] sm:$0xff] %v3878_v42 }
  0x95   :  { %713 = vmatpush.msrb.mxu2 %v3661_v52  ;;  %v3882_v52 = vld [vmem:[#allocation11 + $0x28] sm:$0xff] }
  0x96   :  { %6212 = vst [vmem:[#allocation100_spill] sm:$0xff] %v3882_v52 }
  0x97   :  { %714 = vmatpush.msrb.mxu2 %v3671_v61  ;;  %v3886_v61 = vld [vmem:[#allocation11 + $0x10] sm:$0xff] }
  0x98   :  { %6213 = vst [vmem:[#allocation101_spill] sm:$0xff] %v3886_v61 }
  0x99   :  { %715 = vmatpush.msrb.mxu2 %v3681_v1  ;;  %v6225_v1 = vld [vmem:[#allocation39_spill] sm:$0xff] }
  0x9b   :  { %716 = vmatpush.msrb.mxu2 %v3691_v3  ;;  %v6215_v3 = vld [vmem:[#allocation29_spill] sm:$0xff] }
  0xb3   :  { %v279_v39 = vpop.f32.mrf.mxu0  ;;  %v299_v38 = vpop.f32.mrf.mxu1 }
  0xb4   :  { %v322_v31 = vadd.f32 %v279_v39, %v259_v30  ;;  %v323_v26 = vadd.f32 %v299_v38, %v260_v35  ;;  %v3735_v30 = vld [vmem:[#allocation9 + $0x98] sm:$0xff]  ;;  %v3743_v38 = vld [vmem:[#allocation9 + $0x80] sm:$0xff]  ;;  %v3761_v39 = vld [vmem:[#allocation11 + $0x50] sm:$0xff] }
  0xb5   :  { %v3737_v35 = vld [vmem:[#allocation11 + $0x98] sm:$0xff]  ;;  %408 = vmatpush.msrb.mxu0 %v3735_v30  ;;  %6199 = vst [vmem:[#allocation90_spill] sm:$0xff] %v3761_v39 }
  0xb6   :  { %v2533_v7 = vmul.f32 -1.442695, %v322_v31  ;;  %v2534_v4 = vmul.f32 -1.442695, %v323_v26  ;;  %6196 = vst [vmem:[#allocation87_spill] sm:$0xff] %v3737_v35  ;;  %468 = vmatpush.msrb.mxu3 %v3737_v35  ;;  %v3745_v26 = vld [vmem:[#allocation11 + $0x80] sm:$0xff] }
  0xb7   :  { %6197 = vst [vmem:[#allocation88_spill] sm:$0xff] %v3745_v26  ;;  %409 = vmatpush.msrb.mxu0 %v3743_v38  ;;  %v3751_v31 = vld [vmem:[#allocation9 + $0x68] sm:$0xff]  ;;  %v3779_v35 = vld [vmem:[#allocation11 + $0x20] sm:$0xff] }
  0xb8   :  { %2578 = vpow2.f32 %v2533_v7  ;;  %469 = vmatpush.msrb.mxu3 %v3745_v26  ;;  %v3753_v7 = vld [vmem:[#allocation11 + $0x68] sm:$0xff]  ;;  %6202 = vst [vmem:[#allocation92_spill] sm:$0xff] %v3779_v35 }
  0xb9   :  { %2580 = vpow2.f32 %v2534_v4  ;;  %6198 = vst [vmem:[#allocation89_spill] sm:$0xff] %v3753_v7  ;;  %410 = vmatpush.msrb.mxu0 %v3751_v31  ;;  %v3759_v4 = vld [vmem:[#allocation9 + $0x50] sm:$0xff] }
  0xba   :  { %470 = vmatpush.msrb.mxu3 %v3753_v7 }
  0xbb   :  { %411 = vmatpush.msrb.mxu0 %v3759_v4 }
  0xbc   :  { %471 = vmatpush.msrb.mxu3 %v3761_v39  ;;  %v3785_v39 = vld [vmem:[#allocation11 + $0x8] sm:$0xff] }
  0xbd   :  { %412 = vmatpush.msrb.mxu0 %v3767_v29  ;;  %6203 = vst [vmem:[#allocation93_spill] sm:$0xff] %v3785_v39 }
  0xbe   :  { %v2579_v24 = vpop.eup %2578  ;;  %472 = vmatpush.msrb.mxu3 %v3769_v18 }
  0xbf   :  { %v2581_v15 = vpop.eup %2580  ;;  %v330_v7 = vadd.f32 1.0, %v2579_v24  ;;  %v3783_v24 = vld [vmem:[#allocation9 + $0x8] sm:$0xff]  ;;  %413 = vmatpush.msrb.mxu0 %v3777_v33  ;;  %v319_v49 = vpop.f32.mrf.mxu2 }
  0xc0   :  { %v3773_v26 = vadd.f32 1.0, %v2581_v15  ;;  %473 = vmatpush.msrb.mxu3 %v3779_v35 }
  0xc1   :  { %2582 = vrcp.f32 %v330_v7  ;;  %414 = vmatpush.msrb.mxu0 %v3783_v24  ;;  %v343_v18 = vand.u32 2147483648, %v330_v7  ;;  %v341_v5 = vand.u32 2147483647, %v330_v7  ;;  %vm337_vm1 = vweird.f32 %v330_v7 }
  0xc2   :  { %2584 = vrcp.f32 %v3773_v26  ;;  %474 = vmatpush.msrb.mxu3 %v3785_v39  ;;  %v3804_v39 = vld [vmem:[#allocation8] ss:$0 sm:$0xff]  ;;  %vm352_vm4 = vweird.f32 %v3773_v26  ;;  %v356_v53 = vand.u32 2147483647, %v3773_v26 }
  0xc3   :  { %479 = vmatpush.msra.mxu0 %v3802_v45  ;;  %v365_v40 = vadd.f32 %v3804_v39, %v319_v49  ;;  %v3821_v45 = vld [vmem:[#allocation11 + $0x130] sm:$0xff]  ;;  %vm342_vm3 = vcmp.eq.f32.partialorder %v341_v5, 8.507059e+37  ;;  %v3851_v5 = vld [vmem:[#allocation11 + $0xb8] sm:$0xff] }
  0xc4   :  { %vm357_vm7 = vcmp.eq.f32.partialorder %v356_v53, 8.507059e+37  ;;  %v6233_v53 = vld [vmem:[#allocation61_spill] sm:$0xff] }
  0xc5   :  { %480 = vmatpush.msra.mxu0 %v3811_v34 }
  0xc7   :  { %v2583_v15 = vpop.eup %2582 }
  0xc8   :  { %v3798_v41 = vpop.eup %2584  ;;  %v333_v37 = vmul.f32 %v2583_v15, %v330_v7  ;;  %vm338_vm0 = vweird.f32 %v2583_v15  ;;  %v3825_v7 = vld [vmem:[#allocation11 + $0x118] sm:$0xff] }
  0xc9   :  { %v348_v51 = vmul.f32 %v3798_v41, %v3773_v26  ;;  %vm339_vm2 = vmor %vm337_vm1, %vm338_vm0  ;;  %vm353_vm5 = vweird.f32 %v3798_v41 }
  0xca   :  { %v334_v35 = vsub.f32 1.0, %v333_v37  ;;  %v3816_v37 = vld [vmem:[#allocation11 + $0x148] sm:$0xff]  ;;  %vm3845_vm6 = vmor %vm352_vm4, %vm353_vm5 }
  0xcb   :  { %481 = vmatpush.msra.mxu0 %v3816_v37  ;;  %v349_v44 = vsub.f32 1.0, %v348_v51 }
  0xcc   :  { %v335_v54 = vmul.f32 %v2583_v15, %v334_v35  ;;  %v344_v35 = vor.u32 1.1754944e-38, %v343_v18  ;;  %v3830_v18 = vld [vmem:[#allocation11 + $0x100] sm:$0xff] }
  0xcd   :  { %482 = vmatpush.msra.mxu0 %v3821_v45  ;;  %v350_v63 = vmul.f32 %v3798_v41, %v349_v44 }
  0xce   :  { %v336_v56 = vadd.f32 %v2583_v15, %v335_v54 }
  0xcf   :  { %483 = vmatpush.msra.mxu0 %v3825_v7  ;;  %v351_v44 = vadd.f32 %v3798_v41, %v350_v63  ;;  %v6226_v63 = vld [vmem:[#allocation38_spill] sm:$0xff] }
  0xd0   :  { %v340_v34 = vsel %vm339_vm2, %v2583_v15, %v336_v56 }
  0xd1   :  { %v345_v54 = vsel %vm342_vm3, %v344_v35, %v340_v34  ;;  %484 = vmatpush.msra.mxu0 %v3830_v18  ;;  %v3836_v34 = vld [vmem:[#allocation11 + $0xe8] sm:$0xff]  ;;  %v355_v59 = vsel %vm3845_vm6, %v3798_v41, %v351_v44  ;;  %v6231_v44 = vld [vmem:[#allocation59_spill] sm:$0xff] }
  0xd2   :  { %v366_v49 = vmul.f32 %v365_v40, %v345_v54  ;;  %v358_v40 = vand.u32 2147483648, %v3773_v26  ;;  %v3858_v26 = vld [vmem:[#allocation11 + $0xa0] sm:$0xff]  ;;  %v3862_v35 = vld [vmem:[#allocation11 + $0x88] sm:$0xff]  ;;  %v3866_v54 = vld [vmem:[#allocation11 + $0x70] sm:$0xff] }
  0xd3   :  { %485 = vmatpush.msra.mxu0 %v3836_v34  ;;  %6208 = vst [vmem:[#allocation96_spill] sm:$0xff] %v3862_v35 }
  0xd4   :  { %v367_v51 = vadd.f32 %v366_v49, %v261_v60  ;;  %v359_v15 = vor.u32 1.1754944e-38, %v358_v40  ;;  %6209 = vst [vmem:[#allocation97_spill] sm:$0xff] %v3866_v54  ;;  %v3872_v49 = vld [vmem:[#allocation11 + $0x58] sm:$0xff]  ;;  %v6229_v40 = vld [vmem:[#allocation57_spill] sm:$0xff] }
  0xd5   :  { %486 = vmatpush.msra.mxu0 %v3843_v57  ;;  %6210 = vst [vmem:[#allocation98_spill] sm:$0xff] %v3872_v49 }
  0xd6   :  { %2586 = vtanh.f32 %v367_v51  ;;  %v360_v60 = vsel %vm357_vm7, %v359_v15, %v355_v59  ;;  %v6227_v51 = vld [vmem:[#allocation43_spill] sm:$0xff]  ;;  %v6237_v15 = vld [vmem:[#allocation65_spill] sm:$0xff] }
  0xd7   :  { %487 = vmatpush.msra.mxu0 %v3851_v5  ;;  %v6239_v59 = vld [vmem:[#allocation67_spill] sm:$0xff] }
  0xd9   :  { %488 = vmatpush.msra.mxu0 %v3858_v26 }
  0xdb   :  { %489 = vmatpush.msra.mxu0 %v3862_v35 }
  0xdc   :  { %v2587_v56 = vpop.eup %2586 }
  0xdd   :  { %v369_v46 = vsub.f32 0.0, %v2587_v56  ;;  %490 = vmatpush.msra.mxu0 %v3866_v54 }
  0xdf   :  { %v370_v47 = vmul.f32 %v369_v46, %v360_v60  ;;  %491 = vmatpush.msra.mxu0 %v3872_v49  ;;  %v6243_v46 = vld [vmem:[#allocation71_spill] sm:$0xff]  ;;  %v6245_v60 = vld [vmem:[#allocation36_spill] sm:$0xff] }
  0xe1   :  { %v3870_v41 = vadd.f32 %v2587_v56, %v370_v47  ;;  %492 = vmatpush.msra.mxu0 %v3878_v42  ;;  %v6241_v56 = vld [vmem:[#allocation69_spill] sm:$0xff]  ;;  %v6246_v47 = vld [vmem:[#allocation52_spill] sm:$0xff] }
  0xe3   :  { %395 = vmatmul.f32.vlgmr.msra.gmra.mxu3 %v3870_v41  ;;  %415 = vmatmul.f32.vlgmr.msrb.gmra.mxu0 %v3870_v41 }
  0xe4   :  { %435 = vmatmul.f32.vlgmr.msrb.gmra.mxu1 %v3870_v41  ;;  %590 = vmatmul.f32.vlgmr.msra.gmra.mxu2 %v3870_v41 }
  0xe5   :  { %594 = vmatpush.msra.mxu3 %v3409_v12  ;;  %681 = vmatpush.msrb.mxu1 %v3655_v58  ;;  %v6216_v12 = vld [vmem:[#allocation79_spill] sm:$0xff] }
  0xe6   :  { %493 = vmatpush.msra.mxu0 %v3882_v52  ;;  %834 = vmatpush.msra.mxu2 %v3377_v0  ;;  %v6214_v0 = vld [vmem:[#allocation26_spill] sm:$0xff] }
  0xe7   :  { %595 = vmatpush.msra.mxu3 %v3413_v13  ;;  %682 = vmatpush.msrb.mxu1 %v3665_v55  ;;  %v6217_v13 = vld [vmem:[#allocation18_spill] sm:$0xff] }
  0xe8   :  { %494 = vmatpush.msra.mxu0 %v3886_v61  ;;  %835 = vmatpush.msra.mxu2 %v3381_v2  ;;  %v6223_v2 = vld [vmem:[#allocation83_spill] sm:$0xff] }
  0xe9   :  { %596 = vmatpush.msra.mxu3 %v3422_v16  ;;  %683 = vmatpush.msrb.mxu1 %v3675_v62  ;;  %v6218_v16 = vld [vmem:[#allocation28_spill] sm:$0xff] }
  0xea   :  { %661 = vmatpush.msrb.mxu0 %v3447_v25  ;;  %836 = vmatpush.msra.mxu2 %v6217_v13  ;;  %v6222_v25 = vld [vmem:[#allocation35_spill] sm:$0xff] }
  0xeb   :  { %597 = vmatpush.msra.mxu3 %v3431_v19  ;;  %495 = vmatmul.f32.vlgmr.msra.gmra.mxu0 %v6200_v21  ;;  %v6219_v19 = vld [vmem:[#allocation32_spill] sm:$0xff]  ;;  %v6249_v13 = vld [vmem:[#allocation95_spill] sm:$0xff] }
  0xec   :  { %475 = vmatmul.f32.vlgmr.msrb.gmra.mxu3 %v6200_v21  ;;  %570 = vmatmul.f32.vlgmr.msra.gmra.mxu1 %v3870_v41  ;;  %v6220_v21 = vld [vmem:[#allocation81_spill] sm:$0xff] }
  0xed   :  { %598 = vmatpush.msra.mxu3 %v3440_v22  ;;  %662 = vmatpush.msrb.mxu0 %v3453_v27  ;;  %v6221_v22 = vld [vmem:[#allocation31_spill] sm:$0xff]  ;;  %v6224_v27 = vld [vmem:[#allocation34_spill] sm:$0xff] }
  0xee   :  { %684 = vmatpush.msrb.mxu1 %v3685_v43  ;;  %837 = vmatpush.msra.mxu2 %v3393_v6  ;;  %v6228_v6 = vld [vmem:[#allocation42_spill] sm:$0xff] }
  0xef   :  { %599 = vmatpush.msra.mxu3 %v6214_v0  ;;  %663 = vmatpush.msrb.mxu0 %v6215_v3  ;;  %v6247_v0 = vld [vmem:[#allocation73_spill] sm:$0xff]  ;;  %v6248_v3 = vld [vmem:[#allocation75_spill] sm:$0xff] }
  0xf0   :  { %685 = vmatpush.msrb.mxu1 %v6216_v12  ;;  %838 = vmatpush.msra.mxu2 %v3399_v8  ;;  %v6230_v8 = vld [vmem:[#allocation45_spill] sm:$0xff] }
  0xf1   :  { %600 = vmatpush.msra.mxu3 %v6218_v16  ;;  %664 = vmatpush.msrb.mxu0 %v6219_v19  ;;  %v6250_v16 = vld [vmem:[#allocation53_spill] sm:$0xff]  ;;  %v6251_v19 = vld [vmem:[#allocation40_spill] sm:$0xff] }
  0xf2   :  { %686 = vmatpush.msrb.mxu1 %v6220_v21  ;;  %839 = vmatpush.msra.mxu2 %v3405_v10  ;;  %v6232_v10 = vld [vmem:[#allocation46_spill] sm:$0xff] }
  0xf3   :  { %601 = vmatpush.msra.mxu3 %v6221_v22  ;;  %665 = vmatpush.msrb.mxu0 %v6222_v25  ;;  %v6253_v22 = vld [vmem:[#allocation54_spill] sm:$0xff]  ;;  %v6254_v25 = vld [vmem:[#allocation77_spill] sm:$0xff] }
  0xf4   :  { %687 = vmatpush.msrb.mxu1 %v6223_v2  ;;  %840 = vmatpush.msra.mxu2 %v3415_v14  ;;  %v6234_v14 = vld [vmem:[#allocation47_spill] sm:$0xff] }
  0xf5   :  { %602 = vmatpush.msra.mxu3 %v6224_v27  ;;  %666 = vmatpush.msrb.mxu0 %v6225_v1  ;;  %v6255_v27 = vld [vmem:[#allocation55_spill] sm:$0xff]  ;;  %v6256_v1 = vld [vmem:[#allocation78_spill] sm:$0xff] }
  0xf6   :  { %688 = vmatpush.msrb.mxu1 %v3719_v9  ;;  %841 = vmatpush.msra.mxu2 %v3424_v17  ;;  %v6236_v17 = vld [vmem:[#allocation48_spill] sm:$0xff] }
  0xf7   :  { %603 = vmatpush.msra.mxu3 %v6226_v63  ;;  %667 = vmatpush.msrb.mxu0 %v6227_v51  ;;  %v6257_v63 = vld [vmem:[#allocation56_spill] sm:$0xff] }
  0xf8   :  { %689 = vmatpush.msrb.mxu1 %v3727_v11  ;;  %842 = vmatpush.msra.mxu2 %v3433_v20  ;;  %v6238_v20 = vld [vmem:[#allocation49_spill] sm:$0xff]  ;;  %v6258_v51 = vld [vmem:[#allocation80_spill] sm:$0xff] }
  0xf9   :  { %604 = vmatpush.msra.mxu3 %v6228_v6  ;;  %668 = vmatpush.msrb.mxu0 %v6229_v40  ;;  %v6259_v6 = vld [vmem:[#allocation58_spill] sm:$0xff] }
  0xfa   :  { %690 = vmatpush.msrb.mxu1 %v3735_v30  ;;  %843 = vmatpush.msra.mxu2 %v3442_v23  ;;  %v6240_v23 = vld [vmem:[#allocation50_spill] sm:$0xff] }
  0xfb   :  { %605 = vmatpush.msra.mxu3 %v6230_v8  ;;  %669 = vmatpush.msrb.mxu0 %v6231_v44  ;;  %v6260_v40 = vld [vmem:[#allocation82_spill] sm:$0xff]  ;;  %v6262_v8 = vld [vmem:[#allocation84_spill] sm:$0xff] }
  0xfc   :  { %691 = vmatpush.msrb.mxu1 %v3743_v38  ;;  %844 = vmatpush.msra.mxu2 %v3455_v28  ;;  %v6242_v28 = vld [vmem:[#allocation51_spill] sm:$0xff]  ;;  %v6263_v44 = vld [vmem:[#allocation62_spill] sm:$0xff] }
  0xfd   :  { %606 = vmatpush.msra.mxu3 %v6232_v10  ;;  %670 = vmatpush.msrb.mxu0 %v6233_v53  ;;  %v6264_v10 = vld [vmem:[#allocation85_spill] sm:$0xff]  ;;  %v6265_v53 = vld [vmem:[#allocation64_spill] sm:$0xff] }
  0xfe   :  { %692 = vmatpush.msrb.mxu1 %v3751_v31  ;;  %845 = vmatpush.msra.mxu2 %v3467_v32  ;;  %v6244_v32 = vld [vmem:[#allocation94_spill] sm:$0xff] }
  0xff   :  { %607 = vmatpush.msra.mxu3 %v6234_v14  ;;  %671 = vmatpush.msrb.mxu0 %v6235_v50  ;;  %v6266_v14 = vld [vmem:[#allocation86_spill] sm:$0xff] }
 0x100   :  { %693 = vmatpush.msrb.mxu1 %v3759_v4  ;;  %846 = vmatpush.msra.mxu2 %v3479_v36  ;;  %v6252_v36 = vld [vmem:[#allocation76_spill] sm:$0xff]  ;;  %v6267_v50 = vld [vmem:[#allocation66_spill] sm:$0xff] }
 0x101   :  { %608 = vmatpush.msra.mxu3 %v6236_v17  ;;  %672 = vmatpush.msrb.mxu0 %v6237_v15  ;;  %v6268_v17 = vld [vmem:[#allocation87_spill] sm:$0xff]  ;;  %v6269_v15 = vld [vmem:[#allocation68_spill] sm:$0xff] }
 0x102   :  { %694 = vmatpush.msrb.mxu1 %v3767_v29  ;;  %847 = vmatpush.msra.mxu2 %v6245_v60  ;;  %v4001_v60 = vld [vmem:[#allocation6 + $0x170] sm:$0xff] }
 0x103   :  { %609 = vmatpush.msra.mxu3 %v6238_v20  ;;  %673 = vmatpush.msrb.mxu0 %v6239_v59  ;;  %v6270_v20 = vld [vmem:[#allocation88_spill] sm:$0xff]  ;;  %v6271_v59 = vld [vmem:[#allocation70_spill] sm:$0xff]  ;;  %6276 = vst [vmem:[#allocation26_spill] sm:$0xff] %v4001_v60 }
 0x104   :  { %610 = vmatmul.f32.vlgmr.msra.gmra.mxu3 %v3870_v41  ;;  %695 = vmatpush.msrb.mxu1 %v3777_v33 }
 0x105   :  { %721 = vmatpush.msrb.mxu3 %v6240_v23  ;;  %674 = vmatpush.msrb.mxu0 %v6241_v56  ;;  %v6272_v23 = vld [vmem:[#allocation89_spill] sm:$0xff]  ;;  %v6273_v56 = vld [vmem:[#allocation72_spill] sm:$0xff] }
 0x106   :  { %696 = vmatpush.msrb.mxu1 %v3783_v24  ;;  %848 = vmatpush.msra.mxu2 %v6251_v19  ;;  %v6281_v19 = vld [vmem:[#allocation93_spill] sm:$0xff] }
 0x107   :  { %722 = vmatpush.msrb.mxu3 %v6242_v28  ;;  %675 = vmatpush.msrb.mxu0 %v6243_v46  ;;  %v6274_v28 = vld [vmem:[#allocation90_spill] sm:$0xff] }
 0x108   :  { %761 = vmatpush.msra.mxu1 %v6244_v32  ;;  %849 = vmatpush.msra.mxu2 %v3515_v48  ;;  %v6261_v48 = vld [vmem:[#allocation60_spill] sm:$0xff]  ;;  %v6275_v46 = vld [vmem:[#allocation74_spill] sm:$0xff] }
 0x109   :  { %723 = vmatpush.msrb.mxu3 %v6246_v47  ;;  %676 = vmatpush.msrb.mxu0 %v6247_v0  ;;  %v6277_v47 = vld [vmem:[#allocation91_spill] sm:$0xff]  ;;  %v6278_v0 = vld [vmem:[#allocation17_spill] sm:$0xff] }
 0x10a   :  { %762 = vmatpush.msra.mxu1 %v6249_v13 }
 0x10b   :  { %741 = vmatpush.msra.mxu0 %v6248_v3  ;;  %724 = vmatpush.msrb.mxu3 %v6250_v16  ;;  %v6279_v3 = vld [vmem:[#allocation92_spill] sm:$0xff] }
 0x10c   :  { %763 = vmatpush.msra.mxu1 %v3816_v37  ;;  %v4009_v16 = vld [vmem:[#allocation6 + $0x140] sm:$0xff] }
 0x10d   :  { %742 = vmatpush.msra.mxu0 %v6252_v36  ;;  %725 = vmatpush.msrb.mxu3 %v6253_v22  ;;  %6280 = vst [vmem:[#allocation29_spill] sm:$0xff] %v4009_v16  ;;  %v6282_v36 = vld [vmem:[#allocation19_spill] sm:$0xff]  ;;  %v6283_v22 = vld [vmem:[#allocation20_spill] sm:$0xff] }
 0x10e   :  { %764 = vmatpush.msra.mxu1 %v3821_v45 }
 0x10f   :  { %743 = vmatpush.msra.mxu0 %v6254_v25  ;;  %726 = vmatpush.msrb.mxu3 %v6255_v27  ;;  %v6284_v25 = vld [vmem:[#allocation21_spill] sm:$0xff]  ;;  %v6285_v27 = vld [vmem:[#allocation22_spill] sm:$0xff] }
 0x110   :  { %765 = vmatpush.msra.mxu1 %v3825_v7 }
 0x111   :  { %744 = vmatpush.msra.mxu0 %v6256_v1  ;;  %727 = vmatpush.msrb.mxu3 %v6257_v63  ;;  %v6286_v1 = vld [vmem:[#allocation23_spill] sm:$0xff]  ;;  %v6287_v63 = vld [vmem:[#allocation24_spill] sm:$0xff] }
 0x112   :  { %766 = vmatpush.msra.mxu1 %v3830_v18 }
 0x113   :  { %745 = vmatpush.msra.mxu0 %v6258_v51  ;;  %728 = vmatpush.msrb.mxu3 %v6259_v6  ;;  %v6288_v51 = vld [vmem:[#allocation25_spill] sm:$0xff]  ;;  %v6289_v6 = vld [vmem:[#allocation27_spill] sm:$0xff] }
 0x114   :  { %767 = vmatpush.msra.mxu1 %v3836_v34 }
 0x115   :  { %746 = vmatpush.msra.mxu0 %v6260_v40  ;;  %729 = vmatpush.msrb.mxu3 %v6261_v48  ;;  %v6290_v40 = vld [vmem:[#allocation30_spill] sm:$0xff]  ;;  %v6291_v48 = vld [vmem:[#allocation33_spill] sm:$0xff] }
 0x116   :  { %768 = vmatpush.msra.mxu1 %v3843_v57 }
 0x117   :  { %747 = vmatpush.msra.mxu0 %v6262_v8  ;;  %730 = vmatpush.msrb.mxu3 %v6263_v44  ;;  %v6292_v8 = vld [vmem:[#allocation37_spill] sm:$0xff] }
 0x118   :  { %769 = vmatpush.msra.mxu1 %v3851_v5  ;;  %v6293_v44 = vld [vmem:[#allocation41_spill] sm:$0xff] }
 0x119   :  { %748 = vmatpush.msra.mxu0 %v6264_v10  ;;  %731 = vmatpush.msrb.mxu3 %v6265_v53  ;;  %v6294_v10 = vld [vmem:[#allocation44_spill] sm:$0xff]  ;;  %v456_v53 = vpop.f32.mrf.mxu2 }
 0x11a   :  { %770 = vmatpush.msra.mxu1 %v3858_v26 }
 0x11b   :  { %749 = vmatpush.msra.mxu0 %v6266_v14  ;;  %732 = vmatpush.msrb.mxu3 %v6267_v50 }
 0x11c   :  { %771 = vmatpush.msra.mxu1 %v3862_v35 }
 0x11d   :  { %750 = vmatpush.msra.mxu0 %v6268_v17  ;;  %733 = vmatpush.msrb.mxu3 %v6269_v15  ;;  %v206_v15 = vld [vmem:[%s5792_s4] sm:$0x7] }
 0x11e   :  { %772 = vmatpush.msra.mxu1 %v3866_v54 }
 0x11f   :  { %751 = vmatpush.msra.mxu0 %v6270_v20  ;;  %734 = vmatpush.msrb.mxu3 %v6271_v59  ;;  %v4031_v59 = vperm.slane %v206_v15, 0 }
 0x120   :  { %773 = vmatpush.msra.mxu1 %v3872_v49 }
 0x121   :  { %752 = vmatpush.msra.mxu0 %v6272_v23  ;;  %735 = vmatpush.msrb.mxu3 %v6273_v56  ;;  %6295 = vst [vmem:[#allocation79_spill] sm:$0xff] %v4031_v59  ;;  %v552_v56 = vld [vmem:[#allocation3 + $0x20] sm:$0xff] }
 0x122   :  { %774 = vmatpush.msra.mxu1 %v3878_v42 }
 0x123   :  { %753 = vmatpush.msra.mxu0 %v6274_v28  ;;  %736 = vmatpush.msrb.mxu3 %v6275_v46 }
 0x124   :  { %775 = vmatpush.msra.mxu1 %v3882_v52 }
 0x125   :  { %854 = vmatpush.msra.mxu3 %v4001_v60  ;;  %754 = vmatpush.msra.mxu0 %v6277_v47 }
 0x126   :  { %776 = vmatpush.msra.mxu1 %v3886_v61 }
 0x127   :  { %855 = vmatpush.msra.mxu3 %v6278_v0  ;;  %755 = vmatpush.msra.mxu0 %v6279_v3 }
 0x129   :  { %856 = vmatpush.msra.mxu3 %v4009_v16  ;;  %756 = vmatpush.msra.mxu0 %v6281_v19 }
 0x12b   :  { %857 = vmatpush.msra.mxu3 %v6282_v36 }
 0x12d   :  { %858 = vmatpush.msra.mxu3 %v6283_v22  ;;  %v551_v22 = vld [vmem:[#allocation3 + $0x18] sm:$0xff] }
 0x12f   :  { %859 = vmatpush.msra.mxu3 %v6284_v25 }
 0x131   :  { %860 = vmatpush.msra.mxu3 %v6285_v27 }
 0x133   :  { %861 = vmatpush.msra.mxu3 %v6286_v1 }
 0x135   :  { %862 = vmatpush.msra.mxu3 %v6287_v63  ;;  %v4034_v63 = vperm.slane %v206_v15, 1 }
 0x137   :  { %863 = vmatpush.msra.mxu3 %v6288_v51  ;;  %6296 = vst [vmem:[#allocation18_spill] sm:$0xff] %v4034_v63 }
 0x139   :  { %864 = vmatpush.msra.mxu3 %v6289_v6 }
 0x13b   :  { %865 = vmatpush.msra.mxu3 %v6290_v40 }
 0x13d   :  { %866 = vmatpush.msra.mxu3 %v6291_v48 }
 0x13f   :  { %867 = vmatpush.msra.mxu3 %v6292_v8 }
 0x141   :  { %868 = vmatpush.msra.mxu3 %v6293_v44 }
 0x143   :  { %869 = vmatpush.msra.mxu3 %v6294_v10 }
 0x160   :  { %v416_v40 = vpop.f32.mrf.mxu0 }
 0x161   :  { %v4026_v50 = vpop.f32.mrf.mxu1  ;;  %v417_v44 = vadd.f32 %v416_v40, %v4034_v63  ;;  %v4050_v40 = vperm.slane %v206_v15, 2 }
 0x163   :  { %6297 = vst [vmem:[#allocation28_spill] sm:$0xff] %v4050_v40 }
 0x166   :  { %v396_v46 = vpop.f32.mrf.mxu3 }
 0x167   :  { %v397_v0 = vadd.f32 %v396_v46, %v4031_v59  ;;  %v591_v36 = vpop.f32.mrf.mxu2 }
 0x168   :  { %v615_v25 = vadd.f32 %v591_v36, %v552_v56 }
 0x169   :  { %v499_v27 = vadd.f32 %v456_v53, %v397_v0  ;;  %v571_v1 = vpop.f32.mrf.mxu1 }
 0x16a   :  { %v2538_v51 = vmul.f32 -1.442695, %v615_v25  ;;  %v614_v6 = vadd.f32 %v571_v1, %v551_v22 }
 0x16b   :  { %v2535_v48 = vmul.f32 -1.442695, %v499_v27 }
 0x16c   :  { %2588 = vpow2.f32 %v2538_v51  ;;  %v2537_v8 = vmul.f32 -1.442695, %v614_v6 }
 0x16d   :  { %2590 = vpow2.f32 %v2535_v48  ;;  %v496_v48 = vpop.f32.mrf.mxu0 }
 0x16e   :  { %2592 = vpow2.f32 %v2537_v8 }
 0x16f   :  { %v476_v10 = vpop.f32.mrf.mxu3 }
 0x170   :  { %v500_v61 = vadd.f32 %v476_v10, %v417_v44 }
 0x172   :  { %v2589_v46 = vpop.eup %2588  ;;  %v2536_v59 = vmul.f32 -1.442695, %v500_v61 }
 0x173   :  { %v2591_v16 = vpop.eup %2590  ;;  %v4037_v0 = vadd.f32 1.0, %v2589_v46 }
 0x174   :  { %v2593_v56 = vpop.eup %2592  ;;  %v507_v53 = vadd.f32 1.0, %v2591_v16  ;;  %2594 = vpow2.f32 %v2536_v59  ;;  %v4048_v59 = vld [vmem:[%s5794_s6] ss:$0 sm:$0xff] }
 0x175   :  { %v622_v36 = vadd.f32 1.0, %v2593_v56  ;;  %v542_v15 = vadd.f32 %v4048_v59, %v496_v48  ;;  %vm644_vm4 = vweird.f32 %v4037_v0 }
 0x176   :  { %2596 = vrcp.f32 %v507_v53  ;;  %v520_v8 = vand.u32 2147483648, %v507_v53  ;;  %v518_v46 = vand.u32 2147483647, %v507_v53  ;;  %vm514_vm10 = vweird.f32 %v507_v53 }
 0x177   :  { %2598 = vrcp.f32 %v622_v36  ;;  %v635_v56 = vand.u32 2147483648, %v622_v36  ;;  %vm629_vm12 = vweird.f32 %v622_v36 }
 0x178   :  { %2600 = vrcp.f32 %v4037_v0  ;;  %v521_v60 = vor.u32 1.1754944e-38, %v520_v8  ;;  %vm519_vm13 = vcmp.eq.f32.partialorder %v518_v46, 8.507059e+37 }
 0x179   :  { %v636_v49 = vor.u32 1.1754944e-38, %v635_v56 }
 0x17a   :  { %v2595_v22 = vpop.eup %2594 }
 0x17b   :  { %v4040_v25 = vadd.f32 1.0, %v2595_v22 }
 0x17c   :  { %v2597_v27 = vpop.eup %2596 }
 0x17d   :  { %2602 = vrcp.f32 %v4040_v25  ;;  %v2599_v1 = vpop.eup %2598  ;;  %v510_v51 = vmul.f32 %v2597_v27, %v507_v53  ;;  %vm515_vm8 = vweird.f32 %v2597_v27  ;;  %vm529_vm2 = vweird.f32 %v4040_v25 }
 0x17e   :  { %v625_v61 = vmul.f32 %v2599_v1, %v622_v36  ;;  %v4043_v6 = vpop.eup %2600  ;;  %vm630_vm9 = vweird.f32 %v2599_v1  ;;  %vm516_vm11 = vmor %vm514_vm10, %vm515_vm8 }
 0x17f   :  { %v511_v16 = vsub.f32 1.0, %v510_v51  ;;  %v640_v63 = vmul.f32 %v4043_v6, %v4037_v0  ;;  %v633_v51 = vand.u32 2147483647, %v622_v36  ;;  %vm631_vm14 = vmor %vm629_vm12, %vm630_vm9  ;;  %vm645_vm1 = vweird.f32 %v4043_v6 }
 0x180   :  { %v626_v44 = vsub.f32 1.0, %v625_v61  ;;  %vm646_vm5 = vmor %vm644_vm4, %vm645_vm1 }
 0x181   :  { %v512_v10 = vmul.f32 %v2597_v27, %v511_v16  ;;  %v641_v47 = vsub.f32 1.0, %v640_v63  ;;  %vm634_vm15 = vcmp.eq.f32.partialorder %v633_v51, 8.507059e+37 }
 0x182   :  { %v627_v52 = vmul.f32 %v2599_v1, %v626_v44 }
 0x183   :  { %v2603_v22 = vpop.eup %2602  ;;  %v513_v42 = vadd.f32 %v2597_v27, %v512_v10  ;;  %v437_v10 = vadd.f32 %v4026_v50, %v4050_v40 }
 0x184   :  { %v525_v19 = vmul.f32 %v2603_v22, %v4040_v25  ;;  %v628_v61 = vadd.f32 %v2599_v1, %v627_v52  ;;  %v553_v52 = vld [vmem:[#allocation3 + $0x28] sm:$0xff]  ;;  %vm530_vm0 = vweird.f32 %v2603_v22 }
 0x185   :  { %v517_v3 = vsel %vm516_vm11, %v2597_v27, %v513_v42  ;;  %v642_v42 = vmul.f32 %v4043_v6, %v641_v47  ;;  %vm531_vm3 = vmor %vm529_vm2, %vm530_vm0 }
 0x186   :  { %v526_v16 = vsub.f32 1.0, %v525_v19  ;;  %v522_v54 = vsel %vm519_vm13, %v521_v60, %v517_v3  ;;  %v632_v28 = vsel %vm631_vm14, %v2599_v1, %v628_v61  ;;  %v535_v60 = vand.u32 2147483648, %v4040_v25 }
 0x187   :  { %v611_v44 = vpop.f32.mrf.mxu3  ;;  %v543_v53 = vmul.f32 %v542_v15, %v522_v54  ;;  %v637_v35 = vsel %vm634_vm15, %v636_v49, %v632_v28  ;;  %v643_v3 = vadd.f32 %v4043_v6, %v642_v42  ;;  %v650_v54 = vand.u32 2147483648, %v4037_v0  ;;  %v4123_v42 = vld [vmem:[#allocation6 + $0x100] sm:$0xff] }
 0x188   :  { %v654_v48 = vadd.f32 %v3804_v39, %v611_v44  ;;  %v527_v8 = vmul.f32 %v2603_v22, %v526_v16  ;;  %v533_v39 = vand.u32 2147483647, %v4040_v25  ;;  %v536_v47 = vor.u32 1.1754944e-38, %v535_v60  ;;  %v4136_v60 = vld [vmem:[#allocation9 + $0x118] sm:$0xff] }
 0x189   :  { %v544_v36 = vadd.f32 %v543_v53, %v437_v10  ;;  %v647_v1 = vsel %vm646_vm5, %v4043_v6, %v643_v3  ;;  %v651_v56 = vor.u32 1.1754944e-38, %v650_v54  ;;  %v4085_v6 = vld [vmem:[#allocation9 + $0x168] sm:$0xff]  ;;  %v4089_v10 = vld [vmem:[#allocation6 + $0x160] sm:$0xff]  ;;  %v4153_v54 = vld [vmem:[#allocation6 + $0xb8] sm:$0xff] }
 0x18a   :  { %v655_v19 = vmul.f32 %v654_v48, %v637_v35  ;;  %v528_v63 = vadd.f32 %v2603_v22, %v527_v8  ;;  %v648_v35 = vand.u32 2147483647, %v4037_v0  ;;  %vm534_vm6 = vcmp.eq.f32.partialorder %v533_v39, 8.507059e+37  ;;  %v4092_v53 = vld [vmem:[#allocation9 + $0x160] sm:$0xff]  ;;  %v4095_v48 = vld [vmem:[#allocation9 + $0x150] sm:$0xff] }
 0x18b   :  { %2604 = vtanh.f32 %v544_v36  ;;  %v4099_v8 = vld [vmem:[#allocation6 + $0x148] sm:$0xff]  ;;  %v4109_v36 = vld [vmem:[#allocation6 + $0x130] sm:$0xff] }
 0x18c   :  { %v656_v27 = vadd.f32 %v655_v19, %v553_v52  ;;  %v532_v49 = vsel %vm531_vm3, %v2603_v22, %v528_v63  ;;  %vm649_vm7 = vcmp.eq.f32.partialorder %v648_v35, 8.507059e+37  ;;  %v4076_v22 = vld [vmem:[#allocation9 + $0x178] sm:$0xff]  ;;  %v4102_v52 = vld [vmem:[#allocation9 + $0x148] sm:$0xff]  ;;  %v4119_v19 = vld [vmem:[#allocation9 + $0x120] sm:$0xff] }
 0x18d   :  { %v537_v51 = vsel %vm534_vm6, %v536_v47, %v532_v49  ;;  %v652_v61 = vsel %vm649_vm7, %v651_v56, %v647_v1  ;;  %v4133_v63 = vld [vmem:[#allocation6 + $0xe8] sm:$0xff]  ;;  %v4143_v3 = vld [vmem:[#allocation6 + $0xd0] sm:$0xff]  ;;  %v4163_v49 = vld [vmem:[#allocation6 + $0xa0] sm:$0xff] }
 0x18e   :  { %2606 = vtanh.f32 %v656_v27  ;;  %v4129_v27 = vld [vmem:[#allocation9 + $0x108] sm:$0xff]  ;;  %v4146_v39 = vld [vmem:[#allocation9 + $0x100] sm:$0xff]  ;;  %v4193_v56 = vld [vmem:[#allocation6 + $0x58] sm:$0xff] }
 0x18f   :  { %v4156_v35 = vld [vmem:[#allocation9 + $0xe8] sm:$0xff]  ;;  %6301 = vst [vmem:[#allocation35_spill] sm:$0xff] %v4193_v56 }
 0x190   :  { %v4173_v47 = vld [vmem:[#allocation6 + $0x88] sm:$0xff]  ;;  %v4183_v1 = vld [vmem:[#allocation6 + $0x70] sm:$0xff] }
 0x191   :  { %v2605_v28 = vpop.eup %2604  ;;  %6299 = vst [vmem:[#allocation81_spill] sm:$0xff] %v4183_v1 }
 0x192   :  { %v546_v50 = vsub.f32 0.0, %v2605_v28 }
 0x194   :  { %v2607_v46 = vpop.eup %2606  ;;  %v547_v15 = vmul.f32 %v546_v50, %v537_v51  ;;  %v4176_v50 = vld [vmem:[#allocation9 + $0xb8] sm:$0xff]  ;;  %v4196_v51 = vld [vmem:[#allocation9 + $0x88] sm:$0xff] }
 0x195   :  { %v658_v25 = vsub.f32 %v3870_v41, %v2607_v46  ;;  %v4082_v41 = vld [vmem:[#allocation6 + $0x178] sm:$0xff] }
 0x196   :  { %v4070_v44 = vadd.f32 %v2605_v28, %v547_v15  ;;  %v4166_v28 = vld [vmem:[#allocation9 + $0xd0] sm:$0xff] }
 0x197   :  { %v659_v16 = vmul.f32 %v658_v25, %v652_v61  ;;  %v4203_v25 = vld [vmem:[#allocation6 + $0x40] sm:$0xff]  ;;  %v4206_v15 = vld [vmem:[#allocation9 + $0x70] sm:$0xff]  ;;  %v4213_v61 = vld [vmem:[#allocation6 + $0x28] sm:$0xff] }
 0x198   :  { %549 = vst [vmem:[#allocation12] sm:$0xff] %v4070_v44  ;;  %737 = vmatmul.f32.vlgmr.msrb.gmra.mxu3 %v4070_v44 }
 0x199   :  { %v4072_v0 = vadd.f32 %v2607_v46, %v659_v16  ;;  %981 = vmatpush.msrb.mxu3 %v4076_v22  ;;  %v4186_v46 = vld [vmem:[#allocation9 + $0xa0] sm:$0xff]  ;;  %6303 = vst [vmem:[#allocation34_spill] sm:$0xff] %v4203_v25  ;;  %v4216_v16 = vld [vmem:[#allocation9 + $0x58] sm:$0xff] }
 0x19a   :  { %6305 = vst [vmem:[#allocation38_spill] sm:$0xff] %v4213_v61 }
 0x19b   :  { %677 = vmatmul.f32.vlgmr.msrb.gmra.mxu0 %v4072_v0  ;;  %697 = vmatmul.f32.vlgmr.msrb.gmra.mxu1 %v4072_v0 }
 0x19c   :  { %717 = vmatmul.f32.vlgmr.msrb.gmra.mxu2 %v4072_v0  ;;  %874 = vmatpush.msrb.mxu0 %v4082_v41 }
 0x19d   :  { %941 = vmatpush.msrb.mxu1 %v4085_v6  ;;  %961 = vmatpush.msrb.mxu2 %v3655_v58  ;;  %v4106_v58 = vld [vmem:[#allocation9 + $0x138] sm:$0xff] }
 0x19e   :  { %875 = vmatpush.msrb.mxu0 %v4089_v10  ;;  %982 = vmatpush.msrb.mxu3 %v4092_v53 }
 0x19f   :  { %942 = vmatpush.msrb.mxu1 %v4095_v48  ;;  %962 = vmatpush.msrb.mxu2 %v3665_v55  ;;  %v4116_v55 = vld [vmem:[#allocation6 + $0x118] sm:$0xff] }
 0x1a0   :  { %876 = vmatpush.msrb.mxu0 %v4099_v8  ;;  %983 = vmatpush.msrb.mxu3 %v4102_v52 }
 0x1a1   :  { %870 = vmatmul.f32.vlgmr.msra.gmra.mxu3 %v4072_v0  ;;  %943 = vmatpush.msrb.mxu1 %v4106_v58 }
 0x1a2   :  { %877 = vmatpush.msrb.mxu0 %v4109_v36  ;;  %963 = vmatpush.msrb.mxu2 %v3675_v62  ;;  %v4126_v62 = vld [vmem:[#allocation9 + $0x130] sm:$0xff] }
 0x1a3   :  { %757 = vmatmul.f32.vlgmr.msra.gmra.mxu0 %v4070_v44  ;;  %777 = vmatmul.f32.vlgmr.msra.gmra.mxu1 %v4070_v44 }
 0x1a4   :  { %850 = vmatmul.f32.vlgmr.msra.gmra.mxu2 %v4072_v0  ;;  %878 = vmatpush.msrb.mxu0 %v4116_v55 }
 0x1a5   :  { %944 = vmatpush.msrb.mxu1 %v4119_v19  ;;  %964 = vmatpush.msrb.mxu2 %v3685_v43  ;;  %v4139_v43 = vld [vmem:[#allocation9 + $0xf0] sm:$0xff] }
 0x1a6   :  { %879 = vmatpush.msrb.mxu0 %v4123_v42  ;;  %984 = vmatpush.msrb.mxu3 %v4126_v62 }
 0x1a7   :  { %945 = vmatpush.msrb.mxu1 %v4129_v27  ;;  %965 = vmatpush.msrb.mxu2 %v6216_v12  ;;  %v4149_v12 = vld [vmem:[#allocation9 + $0xd8] sm:$0xff] }
 0x1a8   :  { %880 = vmatpush.msrb.mxu0 %v4133_v63  ;;  %985 = vmatpush.msrb.mxu3 %v4136_v60 }
 0x1a9   :  { %946 = vmatpush.msrb.mxu1 %v4139_v43  ;;  %966 = vmatpush.msrb.mxu2 %v6220_v21  ;;  %v4159_v21 = vld [vmem:[#allocation9 + $0xc0] sm:$0xff] }
 0x1aa   :  { %881 = vmatpush.msrb.mxu0 %v4143_v3  ;;  %986 = vmatpush.msrb.mxu3 %v4146_v39 }
 0x1ab   :  { %947 = vmatpush.msrb.mxu1 %v4149_v12  ;;  %967 = vmatpush.msrb.mxu2 %v6223_v2  ;;  %v4169_v2 = vld [vmem:[#allocation9 + $0xa8] sm:$0xff] }
 0x1ac   :  { %882 = vmatpush.msrb.mxu0 %v4153_v54  ;;  %987 = vmatpush.msrb.mxu3 %v4156_v35 }
 0x1ad   :  { %948 = vmatpush.msrb.mxu1 %v4159_v21  ;;  %968 = vmatpush.msrb.mxu2 %v3719_v9  ;;  %v4179_v9 = vld [vmem:[#allocation9 + $0x90] sm:$0xff] }
 0x1ae   :  { %883 = vmatpush.msrb.mxu0 %v4163_v49  ;;  %988 = vmatpush.msrb.mxu3 %v4166_v28  ;;  %6298 = vst [vmem:[#allocation32_spill] sm:$0xff] %v4179_v9 }
 0x1af   :  { %949 = vmatpush.msrb.mxu1 %v4169_v2  ;;  %969 = vmatpush.msrb.mxu2 %v3727_v11  ;;  %v4189_v11 = vld [vmem:[#allocation9 + $0x78] sm:$0xff] }
 0x1b0   :  { %884 = vmatpush.msrb.mxu0 %v4173_v47  ;;  %989 = vmatpush.msrb.mxu3 %v4176_v50  ;;  %6300 = vst [vmem:[#allocation31_spill] sm:$0xff] %v4189_v11 }
 0x1b1   :  { %950 = vmatpush.msrb.mxu1 %v4179_v9  ;;  %970 = vmatpush.msrb.mxu2 %v3735_v30  ;;  %v4199_v30 = vld [vmem:[#allocation9 + $0x60] sm:$0xff] }
 0x1b2   :  { %885 = vmatpush.msrb.mxu0 %v4183_v1  ;;  %990 = vmatpush.msrb.mxu3 %v4186_v46  ;;  %6302 = vst [vmem:[#allocation83_spill] sm:$0xff] %v4199_v30 }
 0x1b3   :  { %951 = vmatpush.msrb.mxu1 %v4189_v11  ;;  %971 = vmatpush.msrb.mxu2 %v3743_v38  ;;  %v4209_v38 = vld [vmem:[#allocation9 + $0x48] sm:$0xff] }
 0x1b4   :  { %886 = vmatpush.msrb.mxu0 %v4193_v56  ;;  %991 = vmatpush.msrb.mxu3 %v4196_v51  ;;  %6304 = vst [vmem:[#allocation39_spill] sm:$0xff] %v4209_v38 }
 0x1b5   :  { %952 = vmatpush.msrb.mxu1 %v4199_v30  ;;  %972 = vmatpush.msrb.mxu2 %v3751_v31  ;;  %v4219_v31 = vld [vmem:[#allocation9 + $0x30] sm:$0xff] }
 0x1b6   :  { %887 = vmatpush.msrb.mxu0 %v4203_v25  ;;  %992 = vmatpush.msrb.mxu3 %v4206_v15  ;;  %6306 = vst [vmem:[#allocation43_spill] sm:$0xff] %v4219_v31  ;;  %v4223_v25 = vld [vmem:[#allocation6 + $0x10] sm:$0xff] }
 0x1b7   :  { %953 = vmatpush.msrb.mxu1 %v4209_v38  ;;  %973 = vmatpush.msrb.mxu2 %v3759_v4  ;;  %6307 = vst [vmem:[#allocation42_spill] sm:$0xff] %v4223_v25  ;;  %v4226_v38 = vld [vmem:[#allocation9 + $0x40] sm:$0xff]  ;;  %v4230_v4 = vld [vmem:[#allocation9 + $0x18] sm:$0xff]  ;;  %v4246_v30 = vld [vmem:[#allocation11 + $0x170] sm:$0xff] }
 0x1b8   :  { %888 = vmatpush.msrb.mxu0 %v4213_v61  ;;  %993 = vmatpush.msrb.mxu3 %v4216_v16  ;;  %6308 = vst [vmem:[#allocation57_spill] sm:$0xff] %v4230_v4  ;;  %v4233_v61 = vld [vmem:[#allocation11 + $0x168] sm:$0xff] }
 0x1b9   :  { %954 = vmatpush.msrb.mxu1 %v4219_v31  ;;  %974 = vmatpush.msrb.mxu2 %v3767_v29  ;;  %6309 = vst [vmem:[#allocation45_spill] sm:$0xff] %v4233_v61  ;;  %v4237_v29 = vld [vmem:[#allocation9] sm:$0xff]  ;;  %v4243_v31 = vld [vmem:[#allocation11 + $0x150] sm:$0xff] }
 0x1ba   :  { %889 = vmatpush.msrb.mxu0 %v4223_v25  ;;  %994 = vmatpush.msrb.mxu3 %v4226_v38  ;;  %6310 = vst [vmem:[#allocation59_spill] sm:$0xff] %v4237_v29  ;;  %v4240_v25 = vld [vmem:[#allocation9 + $0x28] sm:$0xff] }
 0x1bb   :  { %890 = vmatmul.f32.vlgmr.msrb.gmra.mxu0 %v4072_v0  ;;  %955 = vmatpush.msrb.mxu1 %v4230_v4  ;;  %6311 = vst [vmem:[#allocation46_spill] sm:$0xff] %v4243_v31 }
 0x1bc   :  { %1001 = vmatpush.msra.mxu0 %v4233_v61  ;;  %975 = vmatpush.msrb.mxu2 %v3777_v33  ;;  %6312 = vst [vmem:[#allocation61_spill] sm:$0xff] %v4246_v30  ;;  %v4250_v61 = vld [vmem:[#allocation9 + $0x10] sm:$0xff]  ;;  %v4253_v33 = vld [vmem:[#allocation11 + $0x138] sm:$0xff] }
 0x1bd   :  { %956 = vmatpush.msrb.mxu1 %v4237_v29  ;;  %995 = vmatpush.msrb.mxu3 %v4240_v25  ;;  %6313 = vst [vmem:[#allocation47_spill] sm:$0xff] %v4250_v61  ;;  %v4256_v29 = vld [vmem:[#allocation11 + $0x158] sm:$0xff] }
 0x1be   :  { %1002 = vmatpush.msra.mxu0 %v4243_v31  ;;  %976 = vmatpush.msrb.mxu2 %v3783_v24  ;;  %6314 = vst [vmem:[#allocation63_spill] sm:$0xff] %v4253_v33  ;;  %v4260_v31 = vld [vmem:[#allocation6 + $0x168] sm:$0xff] }
 0x1bf   :  { %1021 = vmatpush.msra.mxu1 %v4246_v30  ;;  %996 = vmatpush.msrb.mxu3 %v4250_v61  ;;  %6315 = vst [vmem:[#allocation48_spill] sm:$0xff] %v4256_v29  ;;  %v4263_v30 = vld [vmem:[#allocation11 + $0x120] sm:$0xff] }
 0x1c0   :  { %1003 = vmatpush.msra.mxu0 %v4253_v33  ;;  %1041 = vmatpush.msra.mxu2 %v6244_v32  ;;  %6316 = vst [vmem:[#allocation65_spill] sm:$0xff] %v4260_v31  ;;  %v4266_v24 = vld [vmem:[#allocation11 + $0x140] sm:$0xff]  ;;  %v4270_v33 = vld [vmem:[#allocation6 + $0x150] sm:$0xff] }
 0x1c1   :  { %1022 = vmatpush.msra.mxu1 %v4256_v29  ;;  %1114 = vmatpush.msra.mxu3 %v4260_v31  ;;  %6317 = vst [vmem:[#allocation49_spill] sm:$0xff] %v4263_v30  ;;  %v4273_v29 = vld [vmem:[#allocation11 + $0x108] sm:$0xff] }
 0x1c2   :  { %1004 = vmatpush.msra.mxu0 %v4263_v30  ;;  %6318 = vst [vmem:[#allocation67_spill] sm:$0xff] %v4266_v24  ;;  %1042 = vmatpush.msra.mxu2 %v6249_v13  ;;  %v4276_v32 = vld [vmem:[#allocation11 + $0x128] sm:$0xff]  ;;  %v4280_v30 = vld [vmem:[#allocation6 + $0x138] sm:$0xff] }
 0x1c3   :  { %1023 = vmatpush.msra.mxu1 %v4266_v24  ;;  %6319 = vst [vmem:[#allocation50_spill] sm:$0xff] %v4270_v33  ;;  %1115 = vmatpush.msra.mxu3 %v4270_v33  ;;  %v4283_v24 = vld [vmem:[#allocation11 + $0xf0] sm:$0xff] }
 0x1c4   :  { %6320 = vst [vmem:[#allocation69_spill] sm:$0xff] %v4273_v29  ;;  %1005 = vmatpush.msra.mxu0 %v4273_v29  ;;  %1043 = vmatpush.msra.mxu2 %v3816_v37  ;;  %v4286_v13 = vld [vmem:[#allocation11 + $0x110] sm:$0xff]  ;;  %v4290_v29 = vld [vmem:[#allocation6 + $0x120] sm:$0xff] }
 0x1c5   :  { %6321 = vst [vmem:[#allocation51_spill] sm:$0xff] %v4276_v32  ;;  %1024 = vmatpush.msra.mxu1 %v4276_v32  ;;  %1116 = vmatpush.msra.mxu3 %v4280_v30  ;;  %v4293_v32 = vld [vmem:[#allocation11 + $0xd8] sm:$0xff] }
 0x1c6   :  { %6322 = vst [vmem:[#allocation71_spill] sm:$0xff] %v4280_v30  ;;  %1006 = vmatpush.msra.mxu0 %v4283_v24  ;;  %1044 = vmatpush.msra.mxu2 %v3821_v45  ;;  %v4296_v37 = vld [vmem:[#allocation11 + $0xf8] sm:$0xff]  ;;  %v4306_v45 = vld [vmem:[#allocation11 + $0xe0] sm:$0xff]  ;;  %v831_v30 = vld [vmem:[#allocation3 + $0x30] sm:$0xff] }
 0x1c7   :  { %6323 = vst [vmem:[#allocation94_spill] sm:$0xff] %v4283_v24  ;;  %1025 = vmatpush.msra.mxu1 %v4286_v13  ;;  %1117 = vmatpush.msra.mxu3 %v4290_v29  ;;  %v4300_v24 = vld [vmem:[#allocation6 + $0x108] sm:$0xff] }
 0x1c8   :  { %6324 = vst [vmem:[#allocation36_spill] sm:$0xff] %v4286_v13  ;;  %1007 = vmatpush.msra.mxu0 %v4293_v32  ;;  %1045 = vmatpush.msra.mxu2 %v3825_v7  ;;  %v4303_v13 = vld [vmem:[#allocation11 + $0xc0] sm:$0xff]  ;;  %v4316_v7 = vld [vmem:[#allocation11 + $0xc8] sm:$0xff] }
 0x1c9   :  { %6325 = vst [vmem:[#allocation52_spill] sm:$0xff] %v4290_v29  ;;  %1026 = vmatpush.msra.mxu1 %v4296_v37  ;;  %1118 = vmatpush.msra.mxu3 %v4300_v24 }
 0x1ca   :  { %6326 = vst [vmem:[#allocation73_spill] sm:$0xff] %v4293_v32  ;;  %1008 = vmatpush.msra.mxu0 %v4303_v13  ;;  %1046 = vmatpush.msra.mxu2 %v3830_v18  ;;  %v4310_v32 = vld [vmem:[#allocation6 + $0xf0] sm:$0xff]  ;;  %v4328_v18 = vld [vmem:[#allocation6 + $0xc0] sm:$0xff] }
 0x1cb   :  { %6327 = vst [vmem:[#allocation75_spill] sm:$0xff] %v4296_v37  ;;  %1027 = vmatpush.msra.mxu1 %v4306_v45  ;;  %1119 = vmatpush.msra.mxu3 %v4310_v32  ;;  %v4313_v37 = vld [vmem:[#allocation11 + $0xa8] sm:$0xff] }
 0x1cc   :  { %6328 = vst [vmem:[#allocation95_spill] sm:$0xff] %v4300_v24  ;;  %1009 = vmatpush.msra.mxu0 %v4313_v37  ;;  %1047 = vmatpush.msra.mxu2 %v3836_v34  ;;  %v4336_v34 = vld [vmem:[#allocation6 + $0xa8] sm:$0xff]  ;;  %v832_v24 = vld [vmem:[#allocation3 + $0x38] sm:$0xff] }
 0x1cd   :  { %6329 = vst [vmem:[#allocation53_spill] sm:$0xff] %v4303_v13  ;;  %1028 = vmatpush.msra.mxu1 %v4316_v7  ;;  %v4320_v13 = vld [vmem:[#allocation6 + $0xd8] sm:$0xff] }
 0x1ce   :  { %6330 = vst [vmem:[#allocation40_spill] sm:$0xff] %v4306_v45  ;;  %1120 = vmatpush.msra.mxu3 %v4320_v13  ;;  %v4323_v45 = vld [vmem:[#allocation11 + $0x90] sm:$0xff]  ;;  %1048 = vmatpush.msra.mxu2 %v3843_v57 }
 0x1cf   :  { %6331 = vst [vmem:[#allocation76_spill] sm:$0xff] %v4310_v32  ;;  %1010 = vmatpush.msra.mxu0 %v4323_v45  ;;  %1029 = vmatpush.msra.mxu1 %v6266_v14  ;;  %v4344_v57 = vld [vmem:[#allocation6 + $0x90] sm:$0xff] }
 0x1d0   :  { %6332 = vst [vmem:[#allocation54_spill] sm:$0xff] %v4313_v37  ;;  %1121 = vmatpush.msra.mxu3 %v4328_v18  ;;  %v4331_v37 = vld [vmem:[#allocation11 + $0x78] sm:$0xff]  ;;  %1049 = vmatpush.msra.mxu2 %v3851_v5  ;;  %v4347_v14 = vld [vmem:[#allocation11 + $0x48] sm:$0xff] }
 0x1d1   :  { %6333 = vst [vmem:[#allocation77_spill] sm:$0xff] %v4316_v7  ;;  %1011 = vmatpush.msra.mxu0 %v4331_v37  ;;  %1030 = vmatpush.msra.mxu1 %v6268_v17  ;;  %v6342_v5 = vld [vmem:[#allocation96_spill] sm:$0xff]  ;;  %v6356_v7 = vld [vmem:[#allocation93_spill] sm:$0xff] }
 0x1d2   :  { %6334 = vst [vmem:[#allocation55_spill] sm:$0xff] %v4320_v13  ;;  %1122 = vmatpush.msra.mxu3 %v4336_v34  ;;  %1050 = vmatpush.msra.mxu2 %v3858_v26  ;;  %v4352_v17 = vld [vmem:[#allocation6 + $0x78] sm:$0xff]  ;;  %v6345_v26 = vld [vmem:[#allocation90_spill] sm:$0xff] }
 0x1d3   :  { %6335 = vst [vmem:[#allocation78_spill] sm:$0xff] %v4323_v45  ;;  %v4339_v45 = vld [vmem:[#allocation11 + $0x60] sm:$0xff]  ;;  %1031 = vmatpush.msra.mxu1 %v6270_v20 }
 0x1d4   :  { %6336 = vst [vmem:[#allocation56_spill] sm:$0xff] %v4328_v18  ;;  %1012 = vmatpush.msra.mxu0 %v4339_v45  ;;  %1123 = vmatpush.msra.mxu3 %v4344_v57  ;;  %v6346_v20 = vld [vmem:[#allocation97_spill] sm:$0xff] }
 0x1d5   :  { %6337 = vst [vmem:[#allocation80_spill] sm:$0xff] %v4331_v37  ;;  %1032 = vmatpush.msra.mxu1 %v6272_v23  ;;  %1051 = vmatpush.msra.mxu2 %v6342_v5  ;;  %v4360_v37 = vld [vmem:[#allocation6 + $0x60] sm:$0xff]  ;;  %v6349_v23 = vld [vmem:[#allocation91_spill] sm:$0xff]  ;;  %v6350_v5 = vld [vmem:[#allocation98_spill] sm:$0xff] }
 0x1d6   :  { %6338 = vst [vmem:[#allocation58_spill] sm:$0xff] %v4336_v34  ;;  %1013 = vmatpush.msra.mxu0 %v4347_v14  ;;  %1124 = vmatpush.msra.mxu3 %v4352_v17  ;;  %v6378_v34 = vld [vmem:[#allocation18_spill] sm:$0xff] }
 0x1d7   :  { %6339 = vst [vmem:[#allocation82_spill] sm:$0xff] %v4339_v45  ;;  %v4355_v45 = vld [vmem:[#allocation11 + $0x30] sm:$0xff]  ;;  %1033 = vmatpush.msra.mxu1 %v6345_v26  ;;  %1052 = vmatpush.msra.mxu2 %v6346_v20  ;;  %v6353_v26 = vld [vmem:[#allocation92_spill] sm:$0xff]  ;;  %v6354_v20 = vld [vmem:[#allocation26_spill] sm:$0xff] }
 0x1d8   :  { %6340 = vst [vmem:[#allocation60_spill] sm:$0xff] %v4344_v57  ;;  %1014 = vmatpush.msra.mxu0 %v4355_v45  ;;  %1125 = vmatpush.msra.mxu3 %v4360_v37 }
 0x1d9   :  { %6341 = vst [vmem:[#allocation84_spill] sm:$0xff] %v4347_v14  ;;  %v4363_v14 = vld [vmem:[#allocation11 + $0x18] sm:$0xff]  ;;  %1034 = vmatpush.msra.mxu1 %v6349_v23  ;;  %1053 = vmatpush.msra.mxu2 %v6350_v5 }
 0x1da   :  { %6343 = vst [vmem:[#allocation62_spill] sm:$0xff] %v4352_v17  ;;  %1015 = vmatpush.msra.mxu0 %v4363_v14  ;;  %v4368_v17 = vld [vmem:[#allocation6 + $0x48] sm:$0xff]  ;;  %v4381_v23 = vld [vmem:[#allocation6 + $0x158] sm:$0xff] }
 0x1db   :  { %6344 = vst [vmem:[#allocation85_spill] sm:$0xff] %v4355_v45  ;;  %1126 = vmatpush.msra.mxu3 %v4368_v17  ;;  %v4371_v45 = vld [vmem:[#allocation11] sm:$0xff]  ;;  %1035 = vmatpush.msra.mxu1 %v6353_v26  ;;  %v6359_v5 = vld [vmem:[#allocation100_spill] sm:$0xff] }
 0x1dc   :  { %6347 = vst [vmem:[#allocation64_spill] sm:$0xff] %v4360_v37  ;;  %1016 = vmatpush.msra.mxu0 %v4371_v45  ;;  %v6355_v37 = vld [vmem:[#allocation99_spill] sm:$0xff]  ;;  %v6361_v26 = vld [vmem:[#allocation29_spill] sm:$0xff] }
 0x1dd   :  { %6348 = vst [vmem:[#allocation86_spill] sm:$0xff] %v4363_v14  ;;  %1054 = vmatpush.msra.mxu2 %v6355_v37  ;;  %1036 = vmatpush.msra.mxu1 %v6356_v7  ;;  %v4378_v14 = vld [vmem:[#allocation6 + $0x30] sm:$0xff]  ;;  %v4390_v37 = vld [vmem:[#allocation6] sm:$0xff]  ;;  %v4393_v7 = vld [vmem:[#allocation6 + $0x128] sm:$0xff] }
 0x1de   :  { %6351 = vst [vmem:[#allocation66_spill] sm:$0xff] %v4368_v17  ;;  %1134 = vmatpush.msrb.mxu0 %v6354_v20  ;;  %1127 = vmatpush.msra.mxu3 %v4378_v14  ;;  %v4385_v17 = vld [vmem:[#allocation6 + $0x18] sm:$0xff]  ;;  %v6362_v20 = vld [vmem:[#allocation101_spill] sm:$0xff] }
 0x1df   :  { %6352 = vst [vmem:[#allocation87_spill] sm:$0xff] %v4371_v45  ;;  %1055 = vmatpush.msra.mxu2 %v6359_v5  ;;  %v4396_v45 = vld [vmem:[#allocation6 + $0x110] sm:$0xff]  ;;  %v4399_v5 = vld [vmem:[#allocation6 + $0xf8] sm:$0xff] }
 0x1e0   :  { %6357 = vst [vmem:[#allocation68_spill] sm:$0xff] %v4378_v14  ;;  %1135 = vmatpush.msrb.mxu0 %v4381_v23  ;;  %1128 = vmatpush.msra.mxu3 %v4385_v17 }
 0x1e1   :  { %6358 = vst [vmem:[#allocation88_spill] sm:$0xff] %v4381_v23  ;;  %1056 = vmatpush.msra.mxu2 %v6362_v20  ;;  %v4402_v23 = vld [vmem:[#allocation6 + $0xe0] sm:$0xff]  ;;  %v4408_v20 = vld [vmem:[#allocation6 + $0xb0] sm:$0xff] }
 0x1e2   :  { %6360 = vst [vmem:[#allocation70_spill] sm:$0xff] %v4385_v17  ;;  %1136 = vmatpush.msrb.mxu0 %v6361_v26  ;;  %1129 = vmatpush.msra.mxu3 %v4390_v37  ;;  %v4405_v26 = vld [vmem:[#allocation6 + $0xc8] sm:$0xff] }
 0x1e3   :  { %6363 = vst [vmem:[#allocation89_spill] sm:$0xff] %v4390_v37  ;;  %v6377_v37 = vld [vmem:[#allocation79_spill] sm:$0xff] }
 0x1e4   :  { %6364 = vst [vmem:[#allocation72_spill] sm:$0xff] %v4393_v7  ;;  %1137 = vmatpush.msrb.mxu0 %v4393_v7  ;;  %v4411_v7 = vld [vmem:[#allocation6 + $0x98] sm:$0xff] }
 0x1e5   :  { %6365 = vst [vmem:[#allocation74_spill] sm:$0xff] %v4396_v45 }
 0x1e6   :  { %1138 = vmatpush.msrb.mxu0 %v4396_v45  ;;  %6366 = vst [vmem:[#allocation17_spill] sm:$0xff] %v4399_v5  ;;  %v4414_v45 = vld [vmem:[#allocation6 + $0x80] sm:$0xff] }
 0x1e7   :  { %6367 = vst [vmem:[#allocation19_spill] sm:$0xff] %v4402_v23 }
 0x1e8   :  { %1139 = vmatpush.msrb.mxu0 %v4399_v5  ;;  %6368 = vst [vmem:[#allocation20_spill] sm:$0xff] %v4405_v26  ;;  %v4417_v5 = vld [vmem:[#allocation6 + $0x68] sm:$0xff] }
 0x1e9   :  { %6369 = vst [vmem:[#allocation21_spill] sm:$0xff] %v4408_v20 }
 0x1ea   :  { %1140 = vmatpush.msrb.mxu0 %v4402_v23  ;;  %6370 = vst [vmem:[#allocation22_spill] sm:$0xff] %v4411_v7  ;;  %v4420_v23 = vld [vmem:[#allocation6 + $0x50] sm:$0xff] }
 0x1eb   :  { %6371 = vst [vmem:[#allocation23_spill] sm:$0xff] %v4414_v45 }
 0x1ec   :  { %1141 = vmatpush.msrb.mxu0 %v4405_v26  ;;  %6372 = vst [vmem:[#allocation24_spill] sm:$0xff] %v4417_v5  ;;  %v4423_v26 = vld [vmem:[#allocation6 + $0x38] sm:$0xff] }
 0x1ed   :  { %6373 = vst [vmem:[#allocation25_spill] sm:$0xff] %v4420_v23 }
 0x1ee   :  { %1142 = vmatpush.msrb.mxu0 %v4408_v20  ;;  %6374 = vst [vmem:[#allocation27_spill] sm:$0xff] %v4423_v26  ;;  %v4426_v20 = vld [vmem:[#allocation6 + $0x20] sm:$0xff] }
 0x1ef   :  { %6375 = vst [vmem:[#allocation30_spill] sm:$0xff] %v4426_v20 }
 0x1f0   :  { %1143 = vmatpush.msrb.mxu0 %v4411_v7  ;;  %v4429_v7 = vld [vmem:[#allocation6 + $0x8] sm:$0xff] }
 0x1f1   :  { %6376 = vst [vmem:[#allocation33_spill] sm:$0xff] %v4429_v7 }
 0x1f2   :  { %1144 = vmatpush.msrb.mxu0 %v4414_v45 }
 0x1f4   :  { %1145 = vmatpush.msrb.mxu0 %v4417_v5 }
 0x1f6   :  { %1146 = vmatpush.msrb.mxu0 %v4420_v23 }
 0x1f8   :  { %1147 = vmatpush.msrb.mxu0 %v4423_v26 }
 0x1fa   :  { %1148 = vmatpush.msrb.mxu0 %v4426_v20 }
 0x1fc   :  { %1149 = vmatpush.msrb.mxu0 %v4429_v7 }
 0x218   :  { %v678_v45 = vpop.f32.mrf.mxu0  ;;  %v698_v5 = vpop.f32.mrf.mxu1 }
 0x219   :  { %v679_v17 = vadd.f32 %v678_v45, %v6377_v37  ;;  %v699_v23 = vadd.f32 %v698_v5, %v6378_v34 }
 0x21b   :  { %v738_v14 = vpop.f32.mrf.mxu3 }
 0x21c   :  { %v781_v57 = vadd.f32 %v738_v14, %v679_v17 }
 0x21e   :  { %v2539_v18 = vmul.f32 -1.442695, %v781_v57 }
 0x21f   :  { %v718_v13 = vpop.f32.mrf.mxu2 }
 0x220   :  { %v758_v32 = vpop.f32.mrf.mxu0  ;;  %2608 = vpow2.f32 %v2539_v18 }
 0x221   :  { %v782_v26 = vadd.f32 %v758_v32, %v699_v23 }
 0x223   :  { %v2540_v4 = vmul.f32 -1.442695, %v782_v26 }
 0x224   :  { %v871_v20 = vpop.f32.mrf.mxu3 }
 0x225   :  { %2610 = vpow2.f32 %v2540_v4  ;;  %v895_v29 = vadd.f32 %v871_v20, %v832_v24 }
 0x226   :  { %v2609_v7 = vpop.eup %2608 }
 0x227   :  { %v2542_v33 = vmul.f32 -1.442695, %v895_v29  ;;  %v851_v56 = vpop.f32.mrf.mxu2  ;;  %v789_v45 = vadd.f32 1.0, %v2609_v7 }
 0x228   :  { %v894_v37 = vadd.f32 %v851_v56, %v831_v30  ;;  %v778_v30 = vpop.f32.mrf.mxu1 }
 0x229   :  { %2612 = vpow2.f32 %v2542_v33  ;;  %v802_v20 = vand.u32 2147483648, %v789_v45  ;;  %v800_v56 = vand.u32 2147483647, %v789_v45  ;;  %vm796_vm9 = vweird.f32 %v789_v45 }
 0x22a   :  { %2614 = vrcp.f32 %v789_v45  ;;  %v2541_v17 = vmul.f32 -1.442695, %v894_v37 }
 0x22b   :  { %v2611_v14 = vpop.eup %2610  ;;  %vm801_vm11 = vcmp.eq.f32.partialorder %v800_v56, 8.507059e+37 }
 0x22c   :  { %v790_v57 = vadd.f32 1.0, %v2611_v14  ;;  %2616 = vpow2.f32 %v2541_v17  ;;  %v803_v14 = vor.u32 1.1754944e-38, %v802_v20 }
 0x22e   :  { %2618 = vrcp.f32 %v790_v57  ;;  %vm811_vm14 = vweird.f32 %v790_v57 }
 0x22f   :  { %v2613_v18 = vpop.eup %2612 }
 0x230   :  { %v2615_v32 = vpop.eup %2614  ;;  %v4434_v4 = vadd.f32 1.0, %v2613_v18  ;;  %v821_v18 = vadd.f32 %v4048_v59, %v778_v30  ;;  %v815_v30 = vand.u32 2147483647, %v790_v57 }
 0x231   :  { %v792_v23 = vmul.f32 %v2615_v32, %v789_v45  ;;  %vm797_vm8 = vweird.f32 %v2615_v32 }
 0x232   :  { %v2617_v5 = vpop.eup %2616  ;;  %vm798_vm10 = vmor %vm796_vm9, %vm797_vm8  ;;  %vm816_vm3 = vcmp.eq.f32.partialorder %v815_v30, 8.507059e+37  ;;  %vm924_vm5 = vweird.f32 %v4434_v4 }
 0x233   :  { %v793_v26 = vsub.f32 1.0, %v792_v23  ;;  %v902_v29 = vadd.f32 1.0, %v2617_v5  ;;  %v719_v5 = vadd.f32 %v718_v13, %v4050_v40 }
 0x234   :  { %v2619_v24 = vpop.eup %2618 }
 0x235   :  { %v807_v34 = vmul.f32 %v2619_v24, %v790_v57  ;;  %v794_v7 = vmul.f32 %v2615_v32, %v793_v26  ;;  %2620 = vrcp.f32 %v902_v29  ;;  %vm812_vm12 = vweird.f32 %v2619_v24 }
 0x236   :  { %2622 = vrcp.f32 %v4434_v4  ;;  %v915_v20 = vand.u32 2147483648, %v902_v29  ;;  %v913_v59 = vand.u32 2147483647, %v902_v29  ;;  %vm4440_vm15 = vmor %vm811_vm14, %vm812_vm12  ;;  %vm909_vm0 = vweird.f32 %v902_v29 }
 0x237   :  { %v795_v33 = vadd.f32 %v2615_v32, %v794_v7  ;;  %v808_v37 = vsub.f32 1.0, %v807_v34 }
 0x238   :  { %v891_v13 = vpop.f32.mrf.mxu0  ;;  %vm914_vm2 = vcmp.eq.f32.partialorder %v913_v59, 8.507059e+37 }
 0x239   :  { %v799_v17 = vsel %vm798_vm10, %v2615_v32, %v795_v33  ;;  %v809_v11 = vmul.f32 %v2619_v24, %v808_v37  ;;  %v817_v32 = vand.u32 2147483648, %v790_v57 }
 0x23a   :  { %v804_v23 = vsel %vm801_vm11, %v803_v14, %v799_v17 }
 0x23b   :  { %v822_v31 = vmul.f32 %v821_v18, %v804_v23  ;;  %v2621_v26 = vpop.eup %2620  ;;  %v810_v7 = vadd.f32 %v2619_v24, %v809_v11  ;;  %v818_v14 = vor.u32 1.1754944e-38, %v817_v32  ;;  %v4446_v18 = vld [vmem:[#allocation8] ss:$0 sm:$0xff] }
 0x23c   :  { %v2623_v1 = vpop.eup %2622  ;;  %v905_v9 = vmul.f32 %v2621_v26, %v902_v29  ;;  %vm910_vm13 = vweird.f32 %v2621_v26  ;;  %v934_v57 = vadd.f32 %v4446_v18, %v891_v13 }
 0x23d   :  { %v823_v61 = vadd.f32 %v822_v31, %v719_v5  ;;  %v920_v34 = vmul.f32 %v2623_v1, %v4434_v4  ;;  %vm911_vm1 = vmor %vm909_vm0, %vm910_vm13  ;;  %v814_v11 = vsel %vm4440_vm15, %v2619_v24, %v810_v7  ;;  %v833_v5 = vld [vmem:[#allocation3 + $0x40] sm:$0xff]  ;;  %vm925_vm4 = vweird.f32 %v2623_v1 }
 0x23e   :  { %v906_v45 = vsub.f32 1.0, %v905_v9  ;;  %v916_v9 = vor.u32 1.1754944e-38, %v915_v20  ;;  %vm926_vm6 = vmor %vm924_vm5, %vm925_vm4 }
 0x23f   :  { %2624 = vtanh.f32 %v823_v61  ;;  %v921_v61 = vsub.f32 1.0, %v920_v34  ;;  %v819_v34 = vsel %vm816_vm3, %v818_v14, %v814_v11  ;;  %v6395_v11 = vld [vmem:[#allocation42_spill] sm:$0xff]  ;;  %v4561_v14 = vld [vmem:[#allocation9 + $0x20] sm:$0xff] }
 0x240   :  { %v907_v56 = vmul.f32 %v2621_v26, %v906_v45 }
 0x242   :  { %v908_v31 = vadd.f32 %v2621_v26, %v907_v56  ;;  %v922_v56 = vmul.f32 %v2623_v1, %v921_v61  ;;  %v4554_v61 = vld [vmem:[#allocation9 + $0x38] sm:$0xff] }
 0x244   :  { %v912_v17 = vsel %vm911_vm1, %v2621_v26, %v908_v31  ;;  %v923_v24 = vadd.f32 %v2623_v1, %v922_v56  ;;  %v930_v26 = vand.u32 2147483648, %v4434_v4  ;;  %v6393_v31 = vld [vmem:[#allocation43_spill] sm:$0xff] }
 0x245   :  { %v2625_v37 = vpop.eup %2624  ;;  %v917_v45 = vsel %vm914_vm2, %v916_v9, %v912_v17  ;;  %v6394_v9 = vld [vmem:[#allocation52_spill] sm:$0xff]  ;;  %v6397_v17 = vld [vmem:[#allocation45_spill] sm:$0xff]  ;;  %v6402_v56 = vld [vmem:[#allocation95_spill] sm:$0xff] }
 0x246   :  { %v825_v23 = vsub.f32 %v4070_v44, %v2625_v37  ;;  %v935_v29 = vmul.f32 %v934_v57, %v917_v45  ;;  %v928_v44 = vand.u32 2147483647, %v4434_v4  ;;  %v927_v7 = vsel %vm926_vm6, %v2623_v1, %v923_v24  ;;  %v6391_v1 = vld [vmem:[#allocation71_spill] sm:$0xff]  ;;  %v6392_v4 = vld [vmem:[#allocation38_spill] sm:$0xff]  ;;  %v4577_v24 = vld [vmem:[#allocation11 + $0x160] sm:$0xff] }
 0x247   :  { %v6398_v57 = vld [vmem:[#allocation59_spill] sm:$0xff]  ;;  %v6400_v45 = vld [vmem:[#allocation46_spill] sm:$0xff]  ;;  %6404 = vst [vmem:[#allocation37_spill] sm:$0xff] %v4577_v24 }
 0x248   :  { %v826_v20 = vmul.f32 %v825_v23, %v819_v34  ;;  %v936_v40 = vadd.f32 %v935_v29, %v833_v5  ;;  %vm929_vm7 = vcmp.eq.f32.partialorder %v928_v44, 8.507059e+37  ;;  %v6399_v23 = vld [vmem:[#allocation61_spill] sm:$0xff]  ;;  %v4567_v5 = vld [vmem:[#allocation9 + $0x8] sm:$0xff]  ;;  %v4571_v29 = vld [vmem:[#allocation11 + $0x178] sm:$0xff] }
 0x249   :  { %v6401_v34 = vld [vmem:[#allocation48_spill] sm:$0xff] }
 0x24a   :  { %v4450_v33 = vadd.f32 %v2625_v37, %v826_v20  ;;  %2626 = vtanh.f32 %v936_v40  ;;  %v931_v40 = vor.u32 1.1754944e-38, %v930_v26  ;;  %v6396_v37 = vld [vmem:[#allocation57_spill] sm:$0xff]  ;;  %v6403_v20 = vld [vmem:[#allocation63_spill] sm:$0xff]  ;;  %v6406_v44 = vld [vmem:[#allocation76_spill] sm:$0xff] }
 0x24b   :  { %v6405_v26 = vld [vmem:[#allocation67_spill] sm:$0xff] }
 0x24c   :  { %829 = vst [vmem:[#allocation12 + $0x8] sm:$0xff] %v4450_v33  ;;  %1017 = vmatmul.f32.vlgmr.msra.gmra.mxu0 %v4450_v33  ;;  %v932_v30 = vsel %vm929_vm7, %v931_v40, %v927_v7  ;;  %v6407_v7 = vld [vmem:[#allocation49_spill] sm:$0xff]  ;;  %v6409_v40 = vld [vmem:[#allocation51_spill] sm:$0xff] }
 0x24d   :  { %1261 = vmatpush.msra.mxu0 %v4076_v22 }
 0x24f   :  { %1262 = vmatpush.msra.mxu0 %v4092_v53  ;;  %v4478_v53 = vld [vmem:[#allocation9 + $0x158] sm:$0xff] }
 0x250   :  { %v2627_v32 = vpop.eup %2626 }
 0x251   :  { %1263 = vmatpush.msra.mxu0 %v4102_v52  ;;  %v938_v59 = vsub.f32 %v4072_v0, %v2627_v32  ;;  %v4472_v0 = vld [vmem:[#allocation9 + $0x170] sm:$0xff]  ;;  %v4518_v52 = vld [vmem:[#allocation9 + $0xc8] sm:$0xff] }
 0x253   :  { %1264 = vmatpush.msra.mxu0 %v4126_v62  ;;  %v939_v13 = vmul.f32 %v938_v59, %v932_v30  ;;  %v6410_v59 = vld [vmem:[#allocation55_spill] sm:$0xff]  ;;  %v6411_v30 = vld [vmem:[#allocation69_spill] sm:$0xff] }
 0x255   :  { %1265 = vmatpush.msra.mxu0 %v4136_v60  ;;  %v4463_v22 = vadd.f32 %v2627_v32, %v939_v13  ;;  %v4583_v32 = vld [vmem:[#allocation11 + $0x148] sm:$0xff]  ;;  %v4589_v13 = vld [vmem:[#allocation11 + $0x130] sm:$0xff] }
 0x256   :  { %6408 = vst [vmem:[#allocation41_spill] sm:$0xff] %v4583_v32 }
 0x257   :  { %1266 = vmatpush.msra.mxu0 %v4146_v39  ;;  %957 = vmatmul.f32.vlgmr.msrb.gmra.mxu1 %v4463_v22  ;;  %6412 = vst [vmem:[#allocation44_spill] sm:$0xff] %v4589_v13 }
 0x258   :  { %977 = vmatmul.f32.vlgmr.msrb.gmra.mxu2 %v4463_v22  ;;  %997 = vmatmul.f32.vlgmr.msrb.gmra.mxu3 %v4463_v22 }
 0x259   :  { %1150 = vmatmul.f32.vlgmr.msrb.gmra.mxu0 %v4463_v22  ;;  %1154 = vmatpush.msrb.mxu1 %v4082_v41  ;;  %v4484_v41 = vld [vmem:[#allocation9 + $0x140] sm:$0xff] }
 0x25a   :  { %1221 = vmatpush.msrb.mxu2 %v4085_v6  ;;  %1241 = vmatpush.msrb.mxu3 %v4472_v0  ;;  %v4494_v6 = vld [vmem:[#allocation9 + $0x128] sm:$0xff] }
 0x25b   :  { %1267 = vmatpush.msra.mxu0 %v4156_v35  ;;  %1155 = vmatpush.msrb.mxu1 %v4089_v10  ;;  %v4500_v10 = vld [vmem:[#allocation9 + $0x110] sm:$0xff] }
 0x25c   :  { %1222 = vmatpush.msrb.mxu2 %v4095_v48  ;;  %1242 = vmatpush.msrb.mxu3 %v4478_v53  ;;  %v4506_v48 = vld [vmem:[#allocation9 + $0xf8] sm:$0xff] }
 0x25d   :  { %1268 = vmatpush.msra.mxu0 %v4166_v28  ;;  %1156 = vmatpush.msrb.mxu1 %v4099_v8  ;;  %v4512_v8 = vld [vmem:[#allocation9 + $0xe0] sm:$0xff] }
 0x25e   :  { %1223 = vmatpush.msrb.mxu2 %v4106_v58  ;;  %1243 = vmatpush.msrb.mxu3 %v4484_v41  ;;  %v4524_v58 = vld [vmem:[#allocation9 + $0xb0] sm:$0xff] }
 0x25f   :  { %1269 = vmatpush.msra.mxu0 %v4176_v50  ;;  %1157 = vmatpush.msrb.mxu1 %v4109_v36  ;;  %v6381_v36 = vld [vmem:[#allocation32_spill] sm:$0xff] }
 0x260   :  { %1057 = vmatmul.f32.vlgmr.msra.gmra.mxu2 %v4450_v33  ;;  %1037 = vmatmul.f32.vlgmr.msra.gmra.mxu1 %v4450_v33 }
 0x261   :  { %1130 = vmatmul.f32.vlgmr.msra.gmra.mxu3 %v4463_v22  ;;  %1158 = vmatpush.msrb.mxu1 %v4116_v55  ;;  %v4530_v55 = vld [vmem:[#allocation9 + $0x98] sm:$0xff] }
 0x262   :  { %1224 = vmatpush.msrb.mxu2 %v4119_v19  ;;  %1244 = vmatpush.msrb.mxu3 %v4494_v6  ;;  %v6382_v19 = vld [vmem:[#allocation47_spill] sm:$0xff] }
 0x263   :  { %1270 = vmatpush.msra.mxu0 %v4186_v46  ;;  %1159 = vmatpush.msrb.mxu1 %v4123_v42  ;;  %v6383_v42 = vld [vmem:[#allocation81_spill] sm:$0xff] }
 0x264   :  { %1225 = vmatpush.msrb.mxu2 %v4129_v27  ;;  %1245 = vmatpush.msrb.mxu3 %v4500_v10  ;;  %v6384_v27 = vld [vmem:[#allocation31_spill] sm:$0xff] }
 0x265   :  { %1271 = vmatpush.msra.mxu0 %v4196_v51  ;;  %1160 = vmatpush.msrb.mxu1 %v4133_v63  ;;  %v4536_v63 = vld [vmem:[#allocation9 + $0x80] sm:$0xff] }
 0x266   :  { %1226 = vmatpush.msrb.mxu2 %v4139_v43  ;;  %1246 = vmatpush.msrb.mxu3 %v4506_v48  ;;  %v6385_v43 = vld [vmem:[#allocation65_spill] sm:$0xff] }
 0x267   :  { %1272 = vmatpush.msra.mxu0 %v4206_v15  ;;  %1161 = vmatpush.msrb.mxu1 %v4143_v3  ;;  %v6386_v3 = vld [vmem:[#allocation35_spill] sm:$0xff] }
 0x268   :  { %1227 = vmatpush.msrb.mxu2 %v4149_v12  ;;  %1247 = vmatpush.msrb.mxu3 %v4512_v8  ;;  %v6387_v12 = vld [vmem:[#allocation83_spill] sm:$0xff] }
 0x269   :  { %1273 = vmatpush.msra.mxu0 %v4216_v16  ;;  %1162 = vmatpush.msrb.mxu1 %v4153_v54  ;;  %v4542_v54 = vld [vmem:[#allocation9 + $0x68] sm:$0xff] }
 0x26a   :  { %1228 = vmatpush.msrb.mxu2 %v4159_v21  ;;  %1248 = vmatpush.msrb.mxu3 %v4518_v52  ;;  %v6388_v21 = vld [vmem:[#allocation50_spill] sm:$0xff] }
 0x26b   :  { %1274 = vmatpush.msra.mxu0 %v4226_v38  ;;  %1163 = vmatpush.msrb.mxu1 %v4163_v49  ;;  %v6389_v49 = vld [vmem:[#allocation34_spill] sm:$0xff] }
 0x26c   :  { %1229 = vmatpush.msrb.mxu2 %v4169_v2  ;;  %1249 = vmatpush.msrb.mxu3 %v4524_v58  ;;  %v6390_v2 = vld [vmem:[#allocation39_spill] sm:$0xff] }
 0x26d   :  { %1275 = vmatpush.msra.mxu0 %v4240_v25  ;;  %1164 = vmatpush.msrb.mxu1 %v4173_v47  ;;  %v4548_v47 = vld [vmem:[#allocation9 + $0x50] sm:$0xff] }
 0x26e   :  { %1230 = vmatpush.msrb.mxu2 %v6381_v36  ;;  %1250 = vmatpush.msrb.mxu3 %v4530_v55  ;;  %v6413_v36 = vld [vmem:[#allocation36_spill] sm:$0xff] }
 0x26f   :  { %1276 = vmatpush.msra.mxu0 %v6382_v19  ;;  %1165 = vmatpush.msrb.mxu1 %v6383_v42  ;;  %v6414_v42 = vld [vmem:[#allocation56_spill] sm:$0xff] }
 0x270   :  { %1231 = vmatpush.msrb.mxu2 %v6384_v27  ;;  %1251 = vmatpush.msrb.mxu3 %v4536_v63  ;;  %v6415_v27 = vld [vmem:[#allocation94_spill] sm:$0xff] }
 0x271   :  { %1394 = vmatpush.msrb.mxu0 %v6385_v43  ;;  %1166 = vmatpush.msrb.mxu1 %v6386_v3  ;;  %v4595_v3 = vld [vmem:[#allocation11 + $0x118] sm:$0xff] }
 0x272   :  { %1232 = vmatpush.msrb.mxu2 %v6387_v12  ;;  %1252 = vmatpush.msrb.mxu3 %v4542_v54  ;;  %6416 = vst [vmem:[#allocation96_spill] sm:$0xff] %v4595_v3  ;;  %v6417_v12 = vld [vmem:[#allocation75_spill] sm:$0xff] }
 0x273   :  { %1395 = vmatpush.msrb.mxu0 %v6388_v21  ;;  %1167 = vmatpush.msrb.mxu1 %v6389_v49  ;;  %v6418_v49 = vld [vmem:[#allocation58_spill] sm:$0xff] }
 0x274   :  { %1233 = vmatpush.msrb.mxu2 %v6390_v2  ;;  %1253 = vmatpush.msrb.mxu3 %v4548_v47  ;;  %v6419_v2 = vld [vmem:[#allocation73_spill] sm:$0xff] }
 0x275   :  { %1396 = vmatpush.msrb.mxu0 %v6391_v1  ;;  %1168 = vmatpush.msrb.mxu1 %v6392_v4  ;;  %v4601_v4 = vld [vmem:[#allocation11 + $0x100] sm:$0xff] }
 0x276   :  { %1234 = vmatpush.msrb.mxu2 %v6393_v31  ;;  %1254 = vmatpush.msrb.mxu3 %v4554_v61  ;;  %6420 = vst [vmem:[#allocation90_spill] sm:$0xff] %v4601_v4  ;;  %v6421_v31 = vld [vmem:[#allocation40_spill] sm:$0xff] }
 0x277   :  { %1397 = vmatpush.msrb.mxu0 %v6394_v9  ;;  %1169 = vmatpush.msrb.mxu1 %v6395_v11  ;;  %v6422_v11 = vld [vmem:[#allocation60_spill] sm:$0xff] }
 0x278   :  { %1235 = vmatpush.msrb.mxu2 %v6396_v37  ;;  %1170 = vmatmul.f32.vlgmr.msrb.gmra.mxu1 %v4463_v22  ;;  %v6423_v37 = vld [vmem:[#allocation53_spill] sm:$0xff] }
 0x279   :  { %1255 = vmatpush.msrb.mxu3 %v4561_v14  ;;  %1281 = vmatpush.msra.mxu1 %v6397_v17  ;;  %v4607_v17 = vld [vmem:[#allocation11 + $0xe8] sm:$0xff] }
 0x27a   :  { %1236 = vmatpush.msrb.mxu2 %v6398_v57  ;;  %1398 = vmatpush.msrb.mxu0 %v6402_v56  ;;  %6424 = vst [vmem:[#allocation97_spill] sm:$0xff] %v4607_v17  ;;  %v6425_v57 = vld [vmem:[#allocation77_spill] sm:$0xff]  ;;  %v4616_v56 = vld [vmem:[#allocation11 + $0xb0] sm:$0xff] }
 0x27b   :  { %1256 = vmatpush.msrb.mxu3 %v4567_v5  ;;  %1282 = vmatpush.msra.mxu1 %v6400_v45  ;;  %v6427_v45 = vld [vmem:[#allocation54_spill] sm:$0xff]  ;;  %6429 = vst [vmem:[#allocation98_spill] sm:$0xff] %v4616_v56 }
 0x27c   :  { %1301 = vmatpush.msra.mxu2 %v6399_v23  ;;  %1399 = vmatpush.msrb.mxu0 %v6406_v44  ;;  %v6426_v23 = vld [vmem:[#allocation62_spill] sm:$0xff]  ;;  %v4621_v44 = vld [vmem:[#allocation11 + $0xb8] sm:$0xff] }
 0x27d   :  { %1321 = vmatpush.msra.mxu3 %v4571_v29  ;;  %1283 = vmatpush.msra.mxu1 %v6403_v20  ;;  %v6430_v20 = vld [vmem:[#allocation64_spill] sm:$0xff]  ;;  %6432 = vst [vmem:[#allocation92_spill] sm:$0xff] %v4621_v44 }
 0x27e   :  { %1302 = vmatpush.msra.mxu2 %v6401_v34  ;;  %1400 = vmatpush.msrb.mxu0 %v6410_v59  ;;  %v4613_v34 = vld [vmem:[#allocation11 + $0xd0] sm:$0xff]  ;;  %v6435_v59 = vld [vmem:[#allocation80_spill] sm:$0xff] }
 0x27f   :  { %1322 = vmatpush.msra.mxu3 %v4577_v24  ;;  %1284 = vmatpush.msra.mxu1 %v6407_v7  ;;  %6428 = vst [vmem:[#allocation91_spill] sm:$0xff] %v4613_v34  ;;  %v4624_v7 = vld [vmem:[#allocation11 + $0x98] sm:$0xff] }
 0x280   :  { %1303 = vmatpush.msra.mxu2 %v6405_v26  ;;  %1401 = vmatpush.msrb.mxu0 %v6414_v42  ;;  %v6431_v26 = vld [vmem:[#allocation78_spill] sm:$0xff]  ;;  %6433 = vst [vmem:[#allocation26_spill] sm:$0xff] %v4624_v7  ;;  %v6438_v42 = vld [vmem:[#allocation68_spill] sm:$0xff] }
 0x281   :  { %1323 = vmatpush.msra.mxu3 %v4583_v32  ;;  %1285 = vmatpush.msra.mxu1 %v6411_v30  ;;  %v4629_v30 = vld [vmem:[#allocation11 + $0xa0] sm:$0xff] }
 0x282   :  { %1304 = vmatpush.msra.mxu2 %v6409_v40  ;;  %1402 = vmatpush.msrb.mxu0 %v6418_v49  ;;  %v6434_v40 = vld [vmem:[#allocation66_spill] sm:$0xff]  ;;  %6436 = vst [vmem:[#allocation99_spill] sm:$0xff] %v4629_v30 }
 0x283   :  { %1324 = vmatpush.msra.mxu3 %v4589_v13  ;;  %1286 = vmatpush.msra.mxu1 %v6415_v27  ;;  %v6439_v27 = vld [vmem:[#allocation82_spill] sm:$0xff] }
 0x284   :  { %1305 = vmatpush.msra.mxu2 %v6413_v36  ;;  %1403 = vmatpush.msrb.mxu0 %v6422_v11  ;;  %v4632_v36 = vld [vmem:[#allocation11 + $0x80] sm:$0xff]  ;;  %v4640_v49 = vld [vmem:[#allocation11 + $0x68] sm:$0xff]  ;;  %v4645_v11 = vld [vmem:[#allocation11 + $0x70] sm:$0xff] }
 0x285   :  { %1325 = vmatpush.msra.mxu3 %v4595_v3  ;;  %1287 = vmatpush.msra.mxu1 %v6419_v2  ;;  %6437 = vst [vmem:[#allocation93_spill] sm:$0xff] %v4632_v36  ;;  %v6442_v2 = vld [vmem:[#allocation70_spill] sm:$0xff] }
 0x286   :  { %1306 = vmatpush.msra.mxu2 %v6417_v12  ;;  %1404 = vmatpush.msrb.mxu0 %v6426_v23  ;;  %v4637_v12 = vld [vmem:[#allocation11 + $0x88] sm:$0xff]  ;;  %6441 = vst [vmem:[#allocation29_spill] sm:$0xff] %v4640_v49  ;;  %v6447_v23 = vld [vmem:[#allocation85_spill] sm:$0xff] }
 0x287   :  { %1326 = vmatpush.msra.mxu3 %v4601_v4  ;;  %1288 = vmatpush.msra.mxu1 %v6423_v37  ;;  %6440 = vst [vmem:[#allocation100_spill] sm:$0xff] %v4637_v12  ;;  %v4648_v37 = vld [vmem:[#allocation11 + $0x50] sm:$0xff] }
 0x288   :  { %1307 = vmatpush.msra.mxu2 %v6421_v31  ;;  %1405 = vmatpush.msrb.mxu0 %v6430_v20  ;;  %v6443_v31 = vld [vmem:[#allocation84_spill] sm:$0xff]  ;;  %6444 = vst [vmem:[#allocation101_spill] sm:$0xff] %v4645_v11 }
 0x289   :  { %1327 = vmatpush.msra.mxu3 %v4607_v17  ;;  %1289 = vmatpush.msra.mxu1 %v6427_v45  ;;  %6445 = vst [vmem:[#allocation32_spill] sm:$0xff] %v4648_v37  ;;  %v4653_v45 = vld [vmem:[#allocation11 + $0x58] sm:$0xff] }
 0x28a   :  { %1308 = vmatpush.msra.mxu2 %v6425_v57  ;;  %1406 = vmatpush.msrb.mxu0 %v6434_v40  ;;  %v6446_v57 = vld [vmem:[#allocation89_spill] sm:$0xff]  ;;  %6448 = vst [vmem:[#allocation47_spill] sm:$0xff] %v4653_v45  ;;  %v4656_v20 = vld [vmem:[#allocation11 + $0x38] sm:$0xff] }
 0x28b   :  { %1328 = vmatpush.msra.mxu3 %v4613_v34  ;;  %1290 = vmatpush.msra.mxu1 %v6431_v26  ;;  %6449 = vst [vmem:[#allocation81_spill] sm:$0xff] %v4656_v20  ;;  %v6450_v26 = vld [vmem:[#allocation86_spill] sm:$0xff]  ;;  %v4660_v40 = vld [vmem:[#allocation11 + $0x40] sm:$0xff] }
 0x28c   :  { %1309 = vmatpush.msra.mxu2 %v4616_v56  ;;  %1407 = vmatpush.msrb.mxu0 %v6438_v42  ;;  %6451 = vst [vmem:[#allocation31_spill] sm:$0xff] %v4660_v40  ;;  %v6453_v42 = vld [vmem:[#allocation87_spill] sm:$0xff]  ;;  %v1111_v56 = vld [vmem:[#allocation3 + $0x48] sm:$0xff] }
 0x28d   :  { %1329 = vmatpush.msra.mxu3 %v4621_v44  ;;  %1291 = vmatpush.msra.mxu1 %v6435_v59  ;;  %v4663_v59 = vld [vmem:[#allocation11 + $0x20] sm:$0xff] }
 0x28e   :  { %1310 = vmatpush.msra.mxu2 %v4624_v7  ;;  %1408 = vmatpush.msrb.mxu0 %v6442_v2  ;;  %6452 = vst [vmem:[#allocation65_spill] sm:$0xff] %v4663_v59  ;;  %v4670_v2 = vld [vmem:[#allocation6 + $0x170] sm:$0xff] }
 0x28f   :  { %1330 = vmatpush.msra.mxu3 %v4629_v30  ;;  %1292 = vmatpush.msra.mxu1 %v6439_v27  ;;  %v4667_v27 = vld [vmem:[#allocation11 + $0x28] sm:$0xff]  ;;  %6455 = vst [vmem:[#allocation83_spill] sm:$0xff] %v4670_v2 }
 0x290   :  { %1311 = vmatpush.msra.mxu2 %v4632_v36  ;;  %1409 = vmatpush.msrb.mxu0 %v6446_v57  ;;  %6454 = vst [vmem:[#allocation35_spill] sm:$0xff] %v4667_v27  ;;  %v4676_v57 = vld [vmem:[#allocation11 + $0x10] sm:$0xff] }
 0x291   :  { %1331 = vmatpush.msra.mxu3 %v4637_v12  ;;  %1293 = vmatpush.msra.mxu1 %v6443_v31  ;;  %v4673_v31 = vld [vmem:[#allocation11 + $0x8] sm:$0xff]  ;;  %6457 = vst [vmem:[#allocation34_spill] sm:$0xff] %v4676_v57 }
 0x292   :  { %1312 = vmatpush.msra.mxu2 %v4640_v49  ;;  %6456 = vst [vmem:[#allocation50_spill] sm:$0xff] %v4673_v31  ;;  %v6474_v12 = vld [vmem:[#allocation18_spill] sm:$0xff] }
 0x293   :  { %1332 = vmatpush.msra.mxu3 %v4645_v11  ;;  %1294 = vmatpush.msra.mxu1 %v6447_v23  ;;  %v6458_v23 = vld [vmem:[#allocation88_spill] sm:$0xff] }
 0x294   :  { %1313 = vmatpush.msra.mxu2 %v4648_v37  ;;  %v6473_v37 = vld [vmem:[#allocation79_spill] sm:$0xff] }
 0x295   :  { %1333 = vmatpush.msra.mxu3 %v4653_v45  ;;  %1295 = vmatpush.msra.mxu1 %v6450_v26  ;;  %v4680_v26 = vld [vmem:[#allocation6 + $0x140] sm:$0xff] }
 0x296   :  { %1314 = vmatpush.msra.mxu2 %v4656_v20  ;;  %6459 = vst [vmem:[#allocation39_spill] sm:$0xff] %v4680_v26  ;;  %v6466_v20 = vld [vmem:[#allocation22_spill] sm:$0xff]  ;;  %v6469_v45 = vld [vmem:[#allocation25_spill] sm:$0xff] }
 0x297   :  { %1334 = vmatpush.msra.mxu3 %v4660_v40  ;;  %1296 = vmatpush.msra.mxu1 %v6453_v42  ;;  %v6460_v42 = vld [vmem:[#allocation72_spill] sm:$0xff] }
 0x298   :  { %1315 = vmatpush.msra.mxu2 %v4663_v59  ;;  %v6462_v59 = vld [vmem:[#allocation17_spill] sm:$0xff]  ;;  %v6464_v40 = vld [vmem:[#allocation20_spill] sm:$0xff] }
 0x299   :  { %1335 = vmatpush.msra.mxu3 %v4667_v27  ;;  %1414 = vmatpush.msrb.mxu1 %v4670_v2  ;;  %v6461_v27 = vld [vmem:[#allocation74_spill] sm:$0xff]  ;;  %v6463_v2 = vld [vmem:[#allocation19_spill] sm:$0xff] }
 0x29a   :  { %1316 = vmatpush.msra.mxu2 %v4673_v31  ;;  %v6465_v31 = vld [vmem:[#allocation21_spill] sm:$0xff] }
 0x29b   :  { %1336 = vmatpush.msra.mxu3 %v4676_v57  ;;  %1415 = vmatpush.msrb.mxu1 %v6458_v23  ;;  %v6467_v57 = vld [vmem:[#allocation23_spill] sm:$0xff]  ;;  %v6468_v23 = vld [vmem:[#allocation24_spill] sm:$0xff] }
 0x29d   :  { %1416 = vmatpush.msrb.mxu1 %v4680_v26  ;;  %v6470_v26 = vld [vmem:[#allocation27_spill] sm:$0xff] }
 0x29f   :  { %1417 = vmatpush.msrb.mxu1 %v6460_v42  ;;  %v6471_v42 = vld [vmem:[#allocation30_spill] sm:$0xff] }
 0x2a1   :  { %1418 = vmatpush.msrb.mxu1 %v6461_v27  ;;  %v6472_v27 = vld [vmem:[#allocation33_spill] sm:$0xff] }
 0x2a3   :  { %1419 = vmatpush.msrb.mxu1 %v6462_v59 }
 0x2a5   :  { %1420 = vmatpush.msrb.mxu1 %v6463_v2 }
 0x2a7   :  { %1421 = vmatpush.msrb.mxu1 %v6464_v40 }
 0x2a9   :  { %1422 = vmatpush.msrb.mxu1 %v6465_v31 }
 0x2ab   :  { %1423 = vmatpush.msrb.mxu1 %v6466_v20  ;;  %v1112_v20 = vld [vmem:[#allocation3 + $0x50] sm:$0xff] }
 0x2ad   :  { %1424 = vmatpush.msrb.mxu1 %v6467_v57 }
 0x2af   :  { %1425 = vmatpush.msrb.mxu1 %v6468_v23 }
 0x2b1   :  { %1426 = vmatpush.msrb.mxu1 %v6469_v45 }
 0x2b3   :  { %1427 = vmatpush.msrb.mxu1 %v6470_v26 }
 0x2b5   :  { %1428 = vmatpush.msrb.mxu1 %v6471_v42 }
 0x2b7   :  { %1429 = vmatpush.msrb.mxu1 %v6472_v27 }
 0x2c9   :  { %v1018_v59 = vpop.f32.mrf.mxu0 }
 0x2d4   :  { %v958_v2 = vpop.f32.mrf.mxu1 }
 0x2d5   :  { %v959_v40 = vadd.f32 %v958_v2, %v6473_v37 }
 0x2d6   :  { %v1151_v57 = vpop.f32.mrf.mxu0 }
 0x2d7   :  { %v1061_v11 = vadd.f32 %v1018_v59, %v959_v40  ;;  %v1175_v30 = vadd.f32 %v1151_v57, %v1112_v20 }
 0x2d9   :  { %v2543_v31 = vmul.f32 -1.442695, %v1061_v11  ;;  %v2546_v27 = vmul.f32 -1.442695, %v1175_v30 }
 0x2db   :  { %v978_v49 = vpop.f32.mrf.mxu2  ;;  %2628 = vpow2.f32 %v2543_v31  ;;  %v998_v36 = vpop.f32.mrf.mxu3 }
 0x2dc   :  { %v979_v23 = vadd.f32 %v978_v49, %v6474_v12 }
 0x2dd   :  { %v1038_v45 = vpop.f32.mrf.mxu1 }
 0x2de   :  { %v1062_v26 = vadd.f32 %v1038_v45, %v979_v23 }
 0x2e0   :  { %v2544_v7 = vmul.f32 -1.442695, %v1062_v26 }
 0x2e1   :  { %v2629_v42 = vpop.eup %2628 }
 0x2e2   :  { %v1069_v44 = vadd.f32 1.0, %v2629_v42  ;;  %2630 = vpow2.f32 %v2544_v7 }
 0x2e4   :  { %v1131_v34 = vpop.f32.mrf.mxu3  ;;  %2632 = vrcp.f32 %v1069_v44  ;;  %v1082_v45 = vand.u32 2147483648, %v1069_v44  ;;  %v1080_v7 = vand.u32 2147483647, %v1069_v44  ;;  %vm1076_vm9 = vweird.f32 %v1069_v44 }
 0x2e5   :  { %v1174_v59 = vadd.f32 %v1131_v34, %v1111_v56  ;;  %2634 = vpow2.f32 %v2546_v27  ;;  %v1058_v34 = vpop.f32.mrf.mxu2 }
 0x2e6   :  { %vm1081_vm11 = vcmp.eq.f32.partialorder %v1080_v7, 8.507059e+37 }
 0x2e7   :  { %v2545_v11 = vmul.f32 -1.442695, %v1174_v59  ;;  %v1083_v59 = vor.u32 1.1754944e-38, %v1082_v45 }
 0x2e8   :  { %v2631_v2 = vpop.eup %2630 }
 0x2e9   :  { %v1070_v40 = vadd.f32 1.0, %v2631_v2  ;;  %2636 = vpow2.f32 %v2545_v11  ;;  %v4704_v2 = vld [vmem:[%s5794_s6] ss:$0 sm:$0xff] }
 0x2ea   :  { %v2633_v31 = vpop.eup %2632  ;;  %6475 = vst [vmem:[#allocation71_spill] sm:$0xff] %v4704_v2 }
 0x2eb   :  { %2638 = vrcp.f32 %v1070_v40  ;;  %v2635_v49 = vpop.eup %2634  ;;  %v1072_v12 = vmul.f32 %v2633_v31, %v1069_v44  ;;  %vm1077_vm8 = vweird.f32 %v2633_v31  ;;  %vm1091_vm13 = vweird.f32 %v1070_v40 }
 0x2ec   :  { %v4698_v23 = vadd.f32 1.0, %v2635_v49  ;;  %vm1078_vm10 = vmor %vm1076_vm9, %vm1077_vm8  ;;  %v1101_v49 = vadd.f32 %v4704_v2, %v1058_v34 }
 0x2ed   :  { %v1073_v20 = vsub.f32 1.0, %v1072_v12 }
 0x2ee   :  { %vm1204_vm5 = vweird.f32 %v4698_v23 }
 0x2ef   :  { %v2637_v57 = vpop.eup %2636  ;;  %v1074_v30 = vmul.f32 %v2633_v31, %v1073_v20 }
 0x2f0   :  { %v1182_v26 = vadd.f32 1.0, %v2637_v57  ;;  %v6476_v57 = vld [vmem:[#allocation28_spill] sm:$0xff] }
 0x2f1   :  { %v2639_v42 = vpop.eup %2638  ;;  %v1075_v27 = vadd.f32 %v2633_v31, %v1074_v30  ;;  %v999_v37 = vadd.f32 %v998_v36, %v6476_v57 }
 0x2f2   :  { %v1087_v56 = vmul.f32 %v2639_v42, %v1070_v40  ;;  %2640 = vrcp.f32 %v1182_v26  ;;  %vm1092_vm12 = vweird.f32 %v2639_v42  ;;  %v1195_v32 = vand.u32 2147483648, %v1182_v26 }
 0x2f3   :  { %2642 = vrcp.f32 %v4698_v23  ;;  %v1079_v12 = vsel %vm1078_vm10, %v2633_v31, %v1075_v27  ;;  %v1097_v27 = vand.u32 2147483648, %v1070_v40  ;;  %vm4709_vm15 = vmor %vm1091_vm13, %vm1092_vm12  ;;  %vm1189_vm0 = vweird.f32 %v1182_v26 }
 0x2f4   :  { %v1088_v11 = vsub.f32 1.0, %v1087_v56  ;;  %v1084_v20 = vsel %vm1081_vm11, %v1083_v59, %v1079_v12  ;;  %v1095_v56 = vand.u32 2147483647, %v1070_v40  ;;  %v1193_v59 = vand.u32 2147483647, %v1182_v26 }
 0x2f5   :  { %v1102_v30 = vmul.f32 %v1101_v49, %v1084_v20  ;;  %v1098_v49 = vor.u32 1.1754944e-38, %v1097_v27  ;;  %v1196_v20 = vor.u32 1.1754944e-38, %v1195_v32 }
 0x2f6   :  { %v1089_v44 = vmul.f32 %v2639_v42, %v1088_v11  ;;  %vm1096_vm1 = vcmp.eq.f32.partialorder %v1095_v56, 8.507059e+37  ;;  %vm1194_vm3 = vcmp.eq.f32.partialorder %v1193_v59, 8.507059e+37 }
 0x2f7   :  { %v1103_v4 = vadd.f32 %v1102_v30, %v999_v37  ;;  %v1171_v37 = vpop.f32.mrf.mxu1 }
 0x2f8   :  { %v2641_v17 = vpop.eup %2640  ;;  %v1090_v45 = vadd.f32 %v2639_v42, %v1089_v44  ;;  %v1214_v44 = vadd.f32 %v4446_v18, %v1171_v37  ;;  %v1210_v18 = vand.u32 2147483648, %v4698_v23  ;;  %v4762_v37 = vld [vmem:[#allocation9 + $0x138] sm:$0xff] }
 0x2f9   :  { %v2643_v3 = vpop.eup %2642  ;;  %v1185_v13 = vmul.f32 %v2641_v17, %v1182_v26  ;;  %2644 = vtanh.f32 %v1103_v4  ;;  %vm1190_vm14 = vweird.f32 %v2641_v17 }
 0x2fa   :  { %v1200_v7 = vmul.f32 %v2643_v3, %v4698_v23  ;;  %v1094_v4 = vsel %vm4709_vm15, %v2639_v42, %v1090_v45  ;;  %vm1191_vm2 = vmor %vm1189_vm0, %vm1190_vm14  ;;  %vm1205_vm4 = vweird.f32 %v2643_v3  ;;  %v4730_v45 = vld [vmem:[#allocation9 + $0x148] sm:$0xff] }
 0x2fb   :  { %v1186_v31 = vsub.f32 1.0, %v1185_v13  ;;  %v1099_v2 = vsel %vm1096_vm1, %v1098_v49, %v1094_v4  ;;  %vm1206_vm6 = vmor %vm1204_vm5, %vm1205_vm4  ;;  %v4886_v4 = vld [vmem:[#allocation6 + $0x108] sm:$0xff]  ;;  %v4896_v49 = vld [vmem:[#allocation6 + $0xf0] sm:$0xff] }
 0x2fc   :  { %v1201_v12 = vsub.f32 1.0, %v1200_v7  ;;  %v1211_v7 = vor.u32 1.1754944e-38, %v1210_v18  ;;  %6488 = vst [vmem:[#allocation48_spill] sm:$0xff] %v4886_v4  ;;  %v4923_v18 = vld [vmem:[#allocation11 + $0xf8] sm:$0xff] }
 0x2fd   :  { %v1187_v34 = vmul.f32 %v2641_v17, %v1186_v31  ;;  %v1113_v31 = vld [vmem:[#allocation3 + $0x58] sm:$0xff]  ;;  %6492 = vst [vmem:[#allocation67_spill] sm:$0xff] %v4896_v49 }
 0x2fe   :  { %v1202_v24 = vmul.f32 %v2643_v3, %v1201_v12  ;;  %v6490_v12 = vld [vmem:[#allocation37_spill] sm:$0xff]  ;;  %6503 = vst [vmem:[#allocation94_spill] sm:$0xff] %v4923_v18 }
 0x2ff   :  { %v1188_v11 = vadd.f32 %v2641_v17, %v1187_v34  ;;  %v2645_v13 = vpop.eup %2644 }
 0x300   :  { %v1105_v40 = vsub.f32 %v4450_v33, %v2645_v13  ;;  %v1203_v32 = vadd.f32 %v2643_v3, %v1202_v24  ;;  %v4721_v33 = vld [vmem:[#allocation9 + $0x178] sm:$0xff] }
 0x301   :  { %v1192_v30 = vsel %vm1191_vm2, %v2641_v17, %v1188_v11  ;;  %v1208_v17 = vand.u32 2147483647, %v4698_v23  ;;  %v4792_v11 = vld [vmem:[#allocation9 + $0xf0] sm:$0xff] }
 0x302   :  { %v1197_v57 = vsel %vm1194_vm3, %v1196_v20, %v1192_v30  ;;  %v1106_v26 = vmul.f32 %v1105_v40, %v1099_v2  ;;  %v4727_v2 = vld [vmem:[#allocation9 + $0x160] sm:$0xff]  ;;  %v4903_v40 = vld [vmem:[#allocation11 + $0x128] sm:$0xff]  ;;  %v4906_v30 = vld [vmem:[#allocation6 + $0xd8] sm:$0xff] }
 0x303   :  { %v1215_v34 = vmul.f32 %v1214_v44, %v1197_v57  ;;  %v1207_v57 = vsel %vm1206_vm6, %v2643_v3, %v1203_v32  ;;  %vm1209_vm7 = vcmp.eq.f32.partialorder %v1208_v17, 8.507059e+37  ;;  %v4743_v3 = vld [vmem:[#allocation6 + $0x178] sm:$0xff]  ;;  %v6494_v20 = vld [vmem:[#allocation41_spill] sm:$0xff]  ;;  %6495 = vst [vmem:[#allocation49_spill] sm:$0xff] %v4903_v40  ;;  %v4909_v44 = vld [vmem:[#allocation11 + $0x108] sm:$0xff] }
 0x304   :  { %v4717_v42 = vadd.f32 %v2645_v13, %v1106_v26  ;;  %v1212_v27 = vsel %vm1209_vm7, %v1211_v7, %v1207_v57  ;;  %v4889_v13 = vld [vmem:[#allocation11 + $0x138] sm:$0xff]  ;;  %6496 = vst [vmem:[#allocation51_spill] sm:$0xff] %v4906_v30  ;;  %v4926_v17 = vld [vmem:[#allocation6 + $0xa8] sm:$0xff] }
 0x305   :  { %v1216_v36 = vadd.f32 %v1215_v34, %v1113_v31  ;;  %6489 = vst [vmem:[#allocation95_spill] sm:$0xff] %v4889_v13  ;;  %v6498_v31 = vld [vmem:[#allocation44_spill] sm:$0xff]  ;;  %v4913_v34 = vld [vmem:[#allocation11 + $0x110] sm:$0xff]  ;;  %v4933_v7 = vld [vmem:[#allocation11 + $0xe0] sm:$0xff] }
 0x306   :  { %1109 = vst [vmem:[#allocation12 + $0x10] sm:$0xff] %v4717_v42  ;;  %1297 = vmatmul.f32.vlgmr.msra.gmra.mxu1 %v4717_v42  ;;  %v4916_v26 = vld [vmem:[#allocation6 + $0xc0] sm:$0xff] }
 0x307   :  { %2646 = vtanh.f32 %v1216_v36  ;;  %1541 = vmatpush.msra.mxu1 %v4721_v33  ;;  %6497 = vst [vmem:[#allocation55_spill] sm:$0xff] %v4909_v44  ;;  %v4919_v36 = vld [vmem:[#allocation11 + $0xf0] sm:$0xff]  ;;  %v6502_v32 = vld [vmem:[#allocation96_spill] sm:$0xff] }
 0x308   :  { %6499 = vst [vmem:[#allocation69_spill] sm:$0xff] %v4913_v34  ;;  %v4929_v57 = vld [vmem:[#allocation11 + $0xd8] sm:$0xff] }
 0x309   :  { %1542 = vmatpush.msra.mxu1 %v4727_v2  ;;  %6500 = vst [vmem:[#allocation36_spill] sm:$0xff] %v4916_v26 }
 0x30a   :  { %6501 = vst [vmem:[#allocation56_spill] sm:$0xff] %v4919_v36 }
 0x30b   :  { %1543 = vmatpush.msra.mxu1 %v4730_v45  ;;  %6504 = vst [vmem:[#allocation75_spill] sm:$0xff] %v4926_v17 }
 0x30c   :  { %6505 = vst [vmem:[#allocation58_spill] sm:$0xff] %v4929_v57 }
 0x30d   :  { %v2647_v24 = vpop.eup %2646  ;;  %1544 = vmatpush.msra.mxu1 %v4126_v62  ;;  %v4746_v62 = vld [vmem:[#allocation9 + $0x168] sm:$0xff]  ;;  %6507 = vst [vmem:[#allocation73_spill] sm:$0xff] %v4933_v7 }
 0x30e   :  { %v1218_v56 = vsub.f32 %v4463_v22, %v2647_v24  ;;  %v4759_v22 = vld [vmem:[#allocation6 + $0x148] sm:$0xff] }
 0x30f   :  { %1545 = vmatpush.msra.mxu1 %v4136_v60  ;;  %v4751_v60 = vld [vmem:[#allocation6 + $0x160] sm:$0xff] }
 0x310   :  { %v1219_v59 = vmul.f32 %v1218_v56, %v1212_v27  ;;  %v4936_v56 = vld [vmem:[#allocation6 + $0x90] sm:$0xff]  ;;  %v4939_v27 = vld [vmem:[#allocation11 + $0xc0] sm:$0xff] }
 0x311   :  { %1546 = vmatpush.msra.mxu1 %v4146_v39  ;;  %v4754_v39 = vld [vmem:[#allocation9 + $0x150] sm:$0xff]  ;;  %6508 = vst [vmem:[#allocation40_spill] sm:$0xff] %v4936_v56 }
 0x312   :  { %v4736_v23 = vadd.f32 %v2647_v24, %v1219_v59  ;;  %v6506_v24 = vld [vmem:[#allocation90_spill] sm:$0xff]  ;;  %6509 = vst [vmem:[#allocation60_spill] sm:$0xff] %v4939_v27  ;;  %v6510_v59 = vld [vmem:[#allocation97_spill] sm:$0xff] }
 0x313   :  { %1547 = vmatpush.msra.mxu1 %v4156_v35  ;;  %v4767_v35 = vld [vmem:[#allocation6 + $0x130] sm:$0xff] }
 0x314   :  { %1237 = vmatmul.f32.vlgmr.msrb.gmra.mxu2 %v4736_v23  ;;  %1257 = vmatmul.f32.vlgmr.msrb.gmra.mxu3 %v4736_v23 }
 0x315   :  { %1277 = vmatmul.f32.vlgmr.msra.gmra.mxu0 %v4736_v23  ;;  %1430 = vmatmul.f32.vlgmr.msrb.gmra.mxu1 %v4736_v23 }
 0x316   :  { %1434 = vmatpush.msrb.mxu2 %v4743_v3  ;;  %1501 = vmatpush.msrb.mxu3 %v4746_v62 }
 0x317   :  { %1521 = vmatpush.msra.mxu0 %v4472_v0  ;;  %1548 = vmatpush.msra.mxu1 %v4166_v28  ;;  %v4773_v28 = vld [vmem:[#allocation6 + $0x118] sm:$0xff]  ;;  %v4776_v0 = vld [vmem:[#allocation9 + $0x120] sm:$0xff] }
 0x318   :  { %1435 = vmatpush.msrb.mxu2 %v4751_v60  ;;  %1502 = vmatpush.msrb.mxu3 %v4754_v39 }
 0x319   :  { %1522 = vmatpush.msra.mxu0 %v4478_v53  ;;  %1549 = vmatpush.msra.mxu1 %v4176_v50  ;;  %v4781_v50 = vld [vmem:[#allocation6 + $0x100] sm:$0xff]  ;;  %v4784_v53 = vld [vmem:[#allocation9 + $0x108] sm:$0xff] }
 0x31a   :  { %1436 = vmatpush.msrb.mxu2 %v4759_v22  ;;  %1503 = vmatpush.msrb.mxu3 %v4762_v37 }
 0x31b   :  { %1523 = vmatpush.msra.mxu0 %v4484_v41  ;;  %1550 = vmatpush.msra.mxu1 %v4186_v46  ;;  %v4789_v41 = vld [vmem:[#allocation6 + $0xe8] sm:$0xff]  ;;  %v4797_v46 = vld [vmem:[#allocation6 + $0xd0] sm:$0xff] }
 0x31c   :  { %1437 = vmatpush.msrb.mxu2 %v4767_v35  ;;  %1337 = vmatmul.f32.vlgmr.msra.gmra.mxu3 %v4717_v42 }
 0x31d   :  { %1317 = vmatmul.f32.vlgmr.msra.gmra.mxu2 %v4717_v42  ;;  %1410 = vmatmul.f32.vlgmr.msrb.gmra.mxu0 %v4736_v23 }
 0x31e   :  { %1438 = vmatpush.msrb.mxu2 %v4773_v28  ;;  %1504 = vmatpush.msrb.mxu3 %v4776_v0 }
 0x31f   :  { %1524 = vmatpush.msra.mxu0 %v4494_v6  ;;  %1551 = vmatpush.msra.mxu1 %v4196_v51  ;;  %v4800_v6 = vld [vmem:[#allocation9 + $0xd8] sm:$0xff] }
 0x320   :  { %1439 = vmatpush.msrb.mxu2 %v4781_v50  ;;  %1505 = vmatpush.msrb.mxu3 %v4784_v53  ;;  %v4805_v51 = vld [vmem:[#allocation6 + $0xb8] sm:$0xff] }
 0x321   :  { %1525 = vmatpush.msra.mxu0 %v4500_v10  ;;  %1552 = vmatpush.msra.mxu1 %v4206_v15  ;;  %v4808_v10 = vld [vmem:[#allocation9 + $0xc0] sm:$0xff] }
 0x322   :  { %1440 = vmatpush.msrb.mxu2 %v4789_v41  ;;  %1506 = vmatpush.msrb.mxu3 %v4792_v11  ;;  %v4813_v15 = vld [vmem:[#allocation6 + $0xa0] sm:$0xff] }
 0x323   :  { %1526 = vmatpush.msra.mxu0 %v4506_v48  ;;  %1553 = vmatpush.msra.mxu1 %v4216_v16  ;;  %v4816_v48 = vld [vmem:[#allocation9 + $0xa8] sm:$0xff] }
 0x324   :  { %1441 = vmatpush.msrb.mxu2 %v4797_v46  ;;  %1507 = vmatpush.msrb.mxu3 %v4800_v6  ;;  %v4821_v16 = vld [vmem:[#allocation6 + $0x88] sm:$0xff] }
 0x325   :  { %1527 = vmatpush.msra.mxu0 %v4512_v8  ;;  %1554 = vmatpush.msra.mxu1 %v4226_v38  ;;  %v4824_v8 = vld [vmem:[#allocation9 + $0x90] sm:$0xff] }
 0x326   :  { %1442 = vmatpush.msrb.mxu2 %v4805_v51  ;;  %1508 = vmatpush.msrb.mxu3 %v4808_v10  ;;  %v4829_v38 = vld [vmem:[#allocation6 + $0x70] sm:$0xff] }
 0x327   :  { %1528 = vmatpush.msra.mxu0 %v4518_v52  ;;  %1555 = vmatpush.msra.mxu1 %v4240_v25  ;;  %v4832_v52 = vld [vmem:[#allocation9 + $0x78] sm:$0xff] }
 0x328   :  { %1443 = vmatpush.msrb.mxu2 %v4813_v15  ;;  %1509 = vmatpush.msrb.mxu3 %v4816_v48  ;;  %v4837_v25 = vld [vmem:[#allocation6 + $0x58] sm:$0xff] }
 0x329   :  { %1529 = vmatpush.msra.mxu0 %v4524_v58  ;;  %1556 = vmatpush.msra.mxu1 %v6382_v19  ;;  %v4840_v58 = vld [vmem:[#allocation9 + $0x60] sm:$0xff]  ;;  %v4848_v19 = vld [vmem:[#allocation9 + $0x48] sm:$0xff] }
 0x32a   :  { %1444 = vmatpush.msrb.mxu2 %v4821_v16  ;;  %1510 = vmatpush.msrb.mxu3 %v4824_v8 }
 0x32b   :  { %1530 = vmatpush.msra.mxu0 %v4530_v55  ;;  %1674 = vmatpush.msrb.mxu1 %v6385_v43  ;;  %v4845_v55 = vld [vmem:[#allocation6 + $0x40] sm:$0xff]  ;;  %v4856_v43 = vld [vmem:[#allocation9 + $0x30] sm:$0xff] }
 0x32c   :  { %1445 = vmatpush.msrb.mxu2 %v4829_v38  ;;  %1511 = vmatpush.msrb.mxu3 %v4832_v52  ;;  %6480 = vst [vmem:[#allocation43_spill] sm:$0xff] %v4856_v43 }
 0x32d   :  { %1531 = vmatpush.msra.mxu0 %v4536_v63  ;;  %1675 = vmatpush.msrb.mxu1 %v6388_v21  ;;  %v4853_v63 = vld [vmem:[#allocation6 + $0x28] sm:$0xff]  ;;  %v4864_v21 = vld [vmem:[#allocation9 + $0x18] sm:$0xff] }
 0x32e   :  { %1446 = vmatpush.msrb.mxu2 %v4837_v25  ;;  %1512 = vmatpush.msrb.mxu3 %v4840_v58  ;;  %6479 = vst [vmem:[#allocation38_spill] sm:$0xff] %v4853_v63 }
 0x32f   :  { %1532 = vmatpush.msra.mxu0 %v4542_v54  ;;  %1676 = vmatpush.msrb.mxu1 %v6391_v1  ;;  %v4861_v54 = vld [vmem:[#allocation6 + $0x10] sm:$0xff]  ;;  %6482 = vst [vmem:[#allocation42_spill] sm:$0xff] %v4864_v21  ;;  %v4872_v1 = vld [vmem:[#allocation9] sm:$0xff] }
 0x330   :  { %1447 = vmatpush.msrb.mxu2 %v4845_v55  ;;  %1513 = vmatpush.msrb.mxu3 %v4848_v19  ;;  %6481 = vst [vmem:[#allocation52_spill] sm:$0xff] %v4861_v54 }
 0x331   :  { %1533 = vmatpush.msra.mxu0 %v4548_v47  ;;  %1677 = vmatpush.msrb.mxu1 %v6394_v9  ;;  %v4869_v47 = vld [vmem:[#allocation11 + $0x168] sm:$0xff]  ;;  %6484 = vst [vmem:[#allocation45_spill] sm:$0xff] %v4872_v1  ;;  %v4879_v9 = vld [vmem:[#allocation11 + $0x150] sm:$0xff] }
 0x332   :  { %1448 = vmatpush.msrb.mxu2 %v4853_v63  ;;  %1514 = vmatpush.msrb.mxu3 %v4856_v43  ;;  %6483 = vst [vmem:[#allocation57_spill] sm:$0xff] %v4869_v47  ;;  %v6562_v43 = vld [vmem:[#allocation28_spill] sm:$0xff] }
 0x333   :  { %1534 = vmatpush.msra.mxu0 %v4554_v61  ;;  %v4875_v61 = vld [vmem:[#allocation11 + $0x170] sm:$0xff]  ;;  %6486 = vst [vmem:[#allocation61_spill] sm:$0xff] %v4879_v9  ;;  %1678 = vmatpush.msrb.mxu1 %v4886_v4 }
 0x334   :  { %1449 = vmatpush.msrb.mxu2 %v4861_v54  ;;  %1515 = vmatpush.msrb.mxu3 %v4864_v21  ;;  %6485 = vst [vmem:[#allocation59_spill] sm:$0xff] %v4875_v61 }
 0x335   :  { %1450 = vmatmul.f32.vlgmr.msrb.gmra.mxu2 %v4736_v23  ;;  %1535 = vmatpush.msra.mxu0 %v4561_v14  ;;  %v4883_v14 = vld [vmem:[#allocation11 + $0x158] sm:$0xff] }
 0x336   :  { %1561 = vmatpush.msra.mxu2 %v4869_v47  ;;  %1516 = vmatpush.msrb.mxu3 %v4872_v1  ;;  %6487 = vst [vmem:[#allocation46_spill] sm:$0xff] %v4883_v14 }
 0x337   :  { %1536 = vmatpush.msra.mxu0 %v4567_v5  ;;  %v4893_v5 = vld [vmem:[#allocation11 + $0x140] sm:$0xff]  ;;  %1679 = vmatpush.msrb.mxu1 %v4896_v49 }
 0x338   :  { %1581 = vmatpush.msra.mxu3 %v4875_v61  ;;  %1562 = vmatpush.msra.mxu2 %v4879_v9  ;;  %6491 = vst [vmem:[#allocation63_spill] sm:$0xff] %v4893_v5 }
 0x339   :  { %1601 = vmatpush.msrb.mxu0 %v4571_v29  ;;  %v4899_v29 = vld [vmem:[#allocation11 + $0x120] sm:$0xff]  ;;  %1680 = vmatpush.msrb.mxu1 %v4906_v30  ;;  %v4965_v30 = vld [vmem:[#allocation11 + $0x78] sm:$0xff] }
 0x33a   :  { %1582 = vmatpush.msra.mxu3 %v4883_v14  ;;  %1563 = vmatpush.msra.mxu2 %v4889_v13  ;;  %6493 = vst [vmem:[#allocation76_spill] sm:$0xff] %v4899_v29  ;;  %v6561_v13 = vld [vmem:[#allocation71_spill] sm:$0xff] }
 0x33b   :  { %1602 = vmatpush.msrb.mxu0 %v6490_v12  ;;  %1681 = vmatpush.msrb.mxu1 %v4916_v26  ;;  %v4943_v12 = vld [vmem:[#allocation11 + $0xc8] sm:$0xff]  ;;  %6521 = vst [vmem:[#allocation66_spill] sm:$0xff] %v4965_v30 }
 0x33c   :  { %1583 = vmatpush.msra.mxu3 %v4893_v5  ;;  %1564 = vmatpush.msra.mxu2 %v4899_v29  ;;  %6511 = vst [vmem:[#allocation53_spill] sm:$0xff] %v4943_v12  ;;  %v6519_v26 = vld [vmem:[#allocation26_spill] sm:$0xff] }
 0x33d   :  { %1603 = vmatpush.msrb.mxu0 %v6494_v20  ;;  %1682 = vmatpush.msrb.mxu1 %v4926_v17  ;;  %v4946_v20 = vld [vmem:[#allocation6 + $0x78] sm:$0xff] }
 0x33e   :  { %1584 = vmatpush.msra.mxu3 %v4903_v40  ;;  %1565 = vmatpush.msra.mxu2 %v4909_v44  ;;  %6512 = vst [vmem:[#allocation77_spill] sm:$0xff] %v4946_v20  ;;  %v6518_v17 = vld [vmem:[#allocation92_spill] sm:$0xff] }
 0x33f   :  { %1604 = vmatpush.msrb.mxu0 %v6498_v31  ;;  %1683 = vmatpush.msrb.mxu1 %v4936_v56  ;;  %v4949_v31 = vld [vmem:[#allocation11 + $0xa8] sm:$0xff]  ;;  %v4954_v56 = vld [vmem:[#allocation6 + $0x60] sm:$0xff] }
 0x340   :  { %1585 = vmatpush.msra.mxu3 %v4913_v34  ;;  %1566 = vmatpush.msra.mxu2 %v4919_v36  ;;  %6513 = vst [vmem:[#allocation62_spill] sm:$0xff] %v4949_v31 }
 0x341   :  { %1605 = vmatpush.msrb.mxu0 %v6502_v32  ;;  %1684 = vmatpush.msrb.mxu1 %v4946_v20  ;;  %v6514_v32 = vld [vmem:[#allocation91_spill] sm:$0xff]  ;;  %6516 = vst [vmem:[#allocation54_spill] sm:$0xff] %v4954_v56  ;;  %v4962_v20 = vld [vmem:[#allocation6 + $0x48] sm:$0xff] }
 0x342   :  { %1586 = vmatpush.msra.mxu3 %v4923_v18  ;;  %1567 = vmatpush.msra.mxu2 %v4929_v57  ;;  %6520 = vst [vmem:[#allocation78_spill] sm:$0xff] %v4962_v20 }
 0x343   :  { %1606 = vmatpush.msrb.mxu0 %v6506_v24  ;;  %v6515_v24 = vld [vmem:[#allocation98_spill] sm:$0xff]  ;;  %1685 = vmatpush.msrb.mxu1 %v4954_v56 }
 0x344   :  { %1587 = vmatpush.msra.mxu3 %v4933_v7  ;;  %1568 = vmatpush.msra.mxu2 %v4939_v27  ;;  %v4970_v56 = vld [vmem:[#allocation6 + $0x30] sm:$0xff]  ;;  %v1391_v7 = vld [vmem:[#allocation3 + $0x60] sm:$0xff] }
 0x345   :  { %1607 = vmatpush.msrb.mxu0 %v6510_v59  ;;  %v4957_v59 = vld [vmem:[#allocation11 + $0x90] sm:$0xff]  ;;  %1686 = vmatpush.msrb.mxu1 %v4962_v20  ;;  %6524 = vst [vmem:[#allocation80_spill] sm:$0xff] %v4970_v56 }
 0x346   :  { %1588 = vmatpush.msra.mxu3 %v4943_v12  ;;  %1569 = vmatpush.msra.mxu2 %v4949_v31  ;;  %6517 = vst [vmem:[#allocation64_spill] sm:$0xff] %v4957_v59  ;;  %v4978_v20 = vld [vmem:[#allocation6 + $0x18] sm:$0xff] }
 0x347   :  { %1608 = vmatpush.msrb.mxu0 %v6514_v32  ;;  %v6522_v32 = vld [vmem:[#allocation99_spill] sm:$0xff]  ;;  %1687 = vmatpush.msrb.mxu1 %v4970_v56  ;;  %6528 = vst [vmem:[#allocation82_spill] sm:$0xff] %v4978_v20  ;;  %v4986_v56 = vld [vmem:[#allocation6] sm:$0xff] }
 0x348   :  { %1589 = vmatpush.msra.mxu3 %v6515_v24  ;;  %1570 = vmatpush.msra.mxu2 %v4957_v59  ;;  %v6523_v24 = vld [vmem:[#allocation93_spill] sm:$0xff]  ;;  %6532 = vst [vmem:[#allocation84_spill] sm:$0xff] %v4986_v56  ;;  %v6541_v12 = vld [vmem:[#allocation83_spill] sm:$0xff] }
 0x349   :  { %1609 = vmatpush.msrb.mxu0 %v6518_v17  ;;  %v4973_v59 = vld [vmem:[#allocation11 + $0x60] sm:$0xff]  ;;  %1688 = vmatpush.msrb.mxu1 %v4978_v20  ;;  %v4994_v20 = vld [vmem:[#allocation11 + $0x18] sm:$0xff] }
 0x34a   :  { %1590 = vmatpush.msra.mxu3 %v6519_v26  ;;  %1571 = vmatpush.msra.mxu2 %v4965_v30  ;;  %6525 = vst [vmem:[#allocation68_spill] sm:$0xff] %v4973_v59  ;;  %v6526_v26 = vld [vmem:[#allocation100_spill] sm:$0xff]  ;;  %v6527_v17 = vld [vmem:[#allocation29_spill] sm:$0xff]  ;;  %v4981_v30 = vld [vmem:[#allocation11 + $0x48] sm:$0xff] }
 0x34b   :  { %1610 = vmatpush.msrb.mxu0 %v6522_v32  ;;  %6529 = vst [vmem:[#allocation70_spill] sm:$0xff] %v4981_v30  ;;  %v6530_v32 = vld [vmem:[#allocation101_spill] sm:$0xff]  ;;  %1689 = vmatpush.msrb.mxu1 %v4986_v56  ;;  %v6540_v56 = vld [vmem:[#allocation35_spill] sm:$0xff] }
 0x34c   :  { %1591 = vmatpush.msra.mxu3 %v6523_v24  ;;  %1572 = vmatpush.msra.mxu2 %v4973_v59  ;;  %v6531_v24 = vld [vmem:[#allocation32_spill] sm:$0xff]  ;;  %v4989_v59 = vld [vmem:[#allocation11 + $0x30] sm:$0xff]  ;;  %6536 = vst [vmem:[#allocation85_spill] sm:$0xff] %v4994_v20 }
 0x34d   :  { %1611 = vmatpush.msrb.mxu0 %v6526_v26  ;;  %6533 = vst [vmem:[#allocation89_spill] sm:$0xff] %v4989_v59  ;;  %v6534_v26 = vld [vmem:[#allocation47_spill] sm:$0xff] }
 0x34e   :  { %1592 = vmatpush.msra.mxu3 %v6527_v17  ;;  %1573 = vmatpush.msra.mxu2 %v4981_v30  ;;  %v6535_v17 = vld [vmem:[#allocation81_spill] sm:$0xff]  ;;  %v6537_v30 = vld [vmem:[#allocation31_spill] sm:$0xff] }
 0x34f   :  { %1612 = vmatpush.msrb.mxu0 %v6530_v32  ;;  %v6538_v32 = vld [vmem:[#allocation65_spill] sm:$0xff] }
 0x350   :  { %1593 = vmatpush.msra.mxu3 %v6531_v24  ;;  %1574 = vmatpush.msra.mxu2 %v4989_v59  ;;  %v4999_v24 = vld [vmem:[#allocation11] sm:$0xff]  ;;  %v6542_v59 = vld [vmem:[#allocation50_spill] sm:$0xff] }
 0x351   :  { %1613 = vmatpush.msrb.mxu0 %v6534_v26  ;;  %6539 = vst [vmem:[#allocation86_spill] sm:$0xff] %v4999_v24  ;;  %v6543_v26 = vld [vmem:[#allocation34_spill] sm:$0xff] }
 0x352   :  { %1594 = vmatpush.msra.mxu3 %v6535_v17  ;;  %1575 = vmatpush.msra.mxu2 %v4994_v20  ;;  %v5006_v17 = vld [vmem:[#allocation6 + $0x158] sm:$0xff] }
 0x353   :  { %1614 = vmatpush.msrb.mxu0 %v6537_v30  ;;  %6544 = vst [vmem:[#allocation87_spill] sm:$0xff] %v5006_v17  ;;  %v6545_v20 = vld [vmem:[#allocation39_spill] sm:$0xff]  ;;  %v5010_v30 = vld [vmem:[#allocation6 + $0x128] sm:$0xff] }
 0x354   :  { %1595 = vmatpush.msra.mxu3 %v6538_v32  ;;  %1576 = vmatpush.msra.mxu2 %v4999_v24  ;;  %6546 = vst [vmem:[#allocation88_spill] sm:$0xff] %v5010_v30  ;;  %v5013_v32 = vld [vmem:[#allocation6 + $0x110] sm:$0xff] }
 0x355   :  { %1615 = vmatpush.msrb.mxu0 %v6540_v56  ;;  %6547 = vst [vmem:[#allocation72_spill] sm:$0xff] %v5013_v32  ;;  %v5016_v56 = vld [vmem:[#allocation6 + $0xf8] sm:$0xff] }
 0x356   :  { %1694 = vmatpush.msrb.mxu2 %v6541_v12  ;;  %1596 = vmatpush.msra.mxu3 %v6542_v59  ;;  %6548 = vst [vmem:[#allocation74_spill] sm:$0xff] %v5016_v56  ;;  %v5019_v12 = vld [vmem:[#allocation6 + $0xe0] sm:$0xff]  ;;  %v5022_v59 = vld [vmem:[#allocation6 + $0xc8] sm:$0xff] }
 0x357   :  { %1616 = vmatpush.msrb.mxu0 %v6543_v26  ;;  %6549 = vst [vmem:[#allocation17_spill] sm:$0xff] %v5019_v12  ;;  %v5028_v26 = vld [vmem:[#allocation6 + $0x98] sm:$0xff] }
 0x358   :  { %1695 = vmatpush.msrb.mxu2 %v5006_v17  ;;  %6550 = vst [vmem:[#allocation19_spill] sm:$0xff] %v5022_v59 }
 0x359   :  { %6552 = vst [vmem:[#allocation21_spill] sm:$0xff] %v5028_v26 }
 0x35a   :  { %1696 = vmatpush.msrb.mxu2 %v6545_v20  ;;  %v5025_v20 = vld [vmem:[#allocation6 + $0xb0] sm:$0xff] }
 0x35b   :  { %6551 = vst [vmem:[#allocation20_spill] sm:$0xff] %v5025_v20 }
 0x35c   :  { %1697 = vmatpush.msrb.mxu2 %v5010_v30 }
 0x35e   :  { %1698 = vmatpush.msrb.mxu2 %v5013_v32  ;;  %v5031_v32 = vld [vmem:[#allocation6 + $0x80] sm:$0xff] }
 0x35f   :  { %6553 = vst [vmem:[#allocation22_spill] sm:$0xff] %v5031_v32 }
 0x360   :  { %1699 = vmatpush.msrb.mxu2 %v5016_v56  ;;  %v5034_v56 = vld [vmem:[#allocation6 + $0x68] sm:$0xff] }
 0x361   :  { %6554 = vst [vmem:[#allocation23_spill] sm:$0xff] %v5034_v56 }
 0x362   :  { %1700 = vmatpush.msrb.mxu2 %v5019_v12  ;;  %v5037_v12 = vld [vmem:[#allocation6 + $0x50] sm:$0xff] }
 0x363   :  { %6555 = vst [vmem:[#allocation24_spill] sm:$0xff] %v5037_v12 }
 0x364   :  { %1701 = vmatpush.msrb.mxu2 %v5022_v59  ;;  %v5040_v59 = vld [vmem:[#allocation6 + $0x38] sm:$0xff] }
 0x365   :  { %6556 = vst [vmem:[#allocation25_spill] sm:$0xff] %v5040_v59 }
 0x366   :  { %1702 = vmatpush.msrb.mxu2 %v5025_v20  ;;  %v5043_v20 = vld [vmem:[#allocation6 + $0x20] sm:$0xff] }
 0x367   :  { %6557 = vst [vmem:[#allocation27_spill] sm:$0xff] %v5043_v20 }
 0x368   :  { %1703 = vmatpush.msrb.mxu2 %v5028_v26  ;;  %v5046_v26 = vld [vmem:[#allocation6 + $0x8] sm:$0xff] }
 0x369   :  { %6558 = vst [vmem:[#allocation30_spill] sm:$0xff] %v5046_v26 }
 0x36a   :  { %1704 = vmatpush.msrb.mxu2 %v5031_v32 }
 0x36c   :  { %1705 = vmatpush.msrb.mxu2 %v5034_v56  ;;  %v1392_v56 = vld [vmem:[#allocation3 + $0x68] sm:$0xff] }
 0x36e   :  { %1706 = vmatpush.msrb.mxu2 %v5037_v12  ;;  %v6559_v12 = vld [vmem:[#allocation79_spill] sm:$0xff] }
 0x370   :  { %1707 = vmatpush.msrb.mxu2 %v5040_v59 }
 0x372   :  { %1708 = vmatpush.msrb.mxu2 %v5043_v20 }
 0x374   :  { %1709 = vmatpush.msrb.mxu2 %v5046_v26  ;;  %v6560_v26 = vld [vmem:[#allocation18_spill] sm:$0xff] }
 0x383   :  { %v1298_v32 = vpop.f32.mrf.mxu1 }
 0x392   :  { %v5049_v30 = vpop.f32.mrf.mxu0  ;;  %v1431_v17 = vpop.f32.mrf.mxu1 }
 0x393   :  { %v1455_v24 = vadd.f32 %v1431_v17, %v1392_v56 }
 0x395   :  { %v2550_v27 = vmul.f32 -1.442695, %v1455_v24 }
 0x397   :  { %v1238_v31 = vpop.f32.mrf.mxu2  ;;  %v1258_v20 = vpop.f32.mrf.mxu3  ;;  %2648 = vpow2.f32 %v2550_v27 }
 0x398   :  { %v1239_v49 = vadd.f32 %v1238_v31, %v6559_v12  ;;  %v1259_v36 = vadd.f32 %v1258_v20, %v6560_v26 }
 0x39a   :  { %v1341_v59 = vadd.f32 %v1298_v32, %v1239_v49  ;;  %v1411_v4 = vpop.f32.mrf.mxu0 }
 0x39b   :  { %v1454_v18 = vadd.f32 %v1411_v4, %v1391_v7 }
 0x39c   :  { %v2547_v57 = vmul.f32 -1.442695, %v1341_v59 }
 0x39d   :  { %v2549_v34 = vmul.f32 -1.442695, %v1454_v18  ;;  %v2649_v5 = vpop.eup %2648 }
 0x39e   :  { %2650 = vpow2.f32 %v2547_v57  ;;  %v5053_v49 = vadd.f32 1.0, %v2649_v5 }
 0x39f   :  { %2652 = vpow2.f32 %v2549_v34  ;;  %v1338_v59 = vpop.f32.mrf.mxu3 }
 0x3a0   :  { %v1318_v40 = vpop.f32.mrf.mxu2  ;;  %v1381_v61 = vadd.f32 %v6561_v13, %v1338_v59  ;;  %v1393_v13 = vld [vmem:[#allocation3 + $0x70] sm:$0xff]  ;;  %vm1484_vm4 = vweird.f32 %v5053_v49 }
 0x3a1   :  { %v1342_v44 = vadd.f32 %v1318_v40, %v1259_v36 }
 0x3a3   :  { %v2548_v17 = vmul.f32 -1.442695, %v1342_v44 }
 0x3a4   :  { %v2651_v56 = vpop.eup %2650 }
 0x3a5   :  { %v2653_v29 = vpop.eup %2652  ;;  %v1349_v31 = vadd.f32 1.0, %v2651_v56  ;;  %2654 = vpow2.f32 %v2548_v17 }
 0x3a6   :  { %v1462_v24 = vadd.f32 1.0, %v2653_v29 }
 0x3a7   :  { %2656 = vrcp.f32 %v1349_v31  ;;  %v1360_v5 = vand.u32 2147483647, %v1349_v31  ;;  %v1362_v29 = vand.u32 2147483648, %v1349_v31  ;;  %vm1356_vm10 = vweird.f32 %v1349_v31 }
 0x3a8   :  { %2658 = vrcp.f32 %v1462_v24  ;;  %v1475_v32 = vand.u32 2147483648, %v1462_v24  ;;  %v1473_v56 = vand.u32 2147483647, %v1462_v24  ;;  %vm1469_vm12 = vweird.f32 %v1462_v24 }
 0x3a9   :  { %2660 = vrcp.f32 %v5053_v49  ;;  %vm1361_vm13 = vcmp.eq.f32.partialorder %v1360_v5, 8.507059e+37 }
 0x3aa   :  { %vm1474_vm15 = vcmp.eq.f32.partialorder %v1473_v56, 8.507059e+37 }
 0x3ab   :  { %v2655_v4 = vpop.eup %2654 }
 0x3ac   :  { %v5056_v18 = vadd.f32 1.0, %v2655_v4 }
 0x3ad   :  { %v2657_v57 = vpop.eup %2656 }
 0x3ae   :  { %v2659_v34 = vpop.eup %2658  ;;  %2662 = vrcp.f32 %v5056_v18  ;;  %v1352_v40 = vmul.f32 %v2657_v57, %v1349_v31  ;;  %vm1357_vm8 = vweird.f32 %v2657_v57  ;;  %vm1371_vm2 = vweird.f32 %v5056_v18 }
 0x3af   :  { %v1465_v44 = vmul.f32 %v2659_v34, %v1462_v24  ;;  %v5059_v36 = vpop.eup %2660  ;;  %vm1470_vm9 = vweird.f32 %v2659_v34  ;;  %vm1358_vm11 = vmor %vm1356_vm10, %vm1357_vm8 }
 0x3b0   :  { %v1353_v7 = vsub.f32 1.0, %v1352_v40  ;;  %v1480_v26 = vmul.f32 %v5059_v36, %v5053_v49  ;;  %vm1471_vm14 = vmor %vm1469_vm12, %vm1470_vm9  ;;  %vm1485_vm1 = vweird.f32 %v5059_v36 }
 0x3b1   :  { %v1466_v27 = vsub.f32 1.0, %v1465_v44  ;;  %v1363_v44 = vor.u32 1.1754944e-38, %v1362_v29  ;;  %vm1486_vm5 = vmor %vm1484_vm4, %vm1485_vm1 }
 0x3b2   :  { %v1354_v20 = vmul.f32 %v2657_v57, %v1353_v7  ;;  %v1476_v7 = vor.u32 1.1754944e-38, %v1475_v32  ;;  %v1481_v47 = vsub.f32 1.0, %v1480_v26 }
 0x3b3   :  { %v1467_v17 = vmul.f32 %v2659_v34, %v1466_v27 }
 0x3b4   :  { %v2663_v4 = vpop.eup %2662  ;;  %v1355_v14 = vadd.f32 %v2657_v57, %v1354_v20  ;;  %v1279_v20 = vadd.f32 %v5049_v30, %v6562_v43 }
 0x3b5   :  { %v1367_v12 = vmul.f32 %v2663_v4, %v5056_v18  ;;  %v1468_v40 = vadd.f32 %v2659_v34, %v1467_v17  ;;  %v5067_v17 = vld [vmem:[#allocation8] ss:$0 sm:$0xff]  ;;  %vm1372_vm0 = vweird.f32 %v2663_v4 }
 0x3b6   :  { %v1359_v9 = vsel %vm1358_vm11, %v2657_v57, %v1355_v14  ;;  %v1482_v14 = vmul.f32 %v5059_v36, %v1481_v47  ;;  %vm1373_vm3 = vmor %vm1371_vm2, %vm1372_vm0 }
 0x3b7   :  { %v1368_v27 = vsub.f32 1.0, %v1367_v12  ;;  %v1472_v1 = vsel %vm1471_vm14, %v2659_v34, %v1468_v40  ;;  %v1364_v21 = vsel %vm1361_vm13, %v1363_v44, %v1359_v9 }
 0x3b8   :  { %v1451_v54 = vpop.f32.mrf.mxu2  ;;  %v1477_v31 = vsel %vm1474_vm15, %v1476_v7, %v1472_v1  ;;  %v1382_v63 = vmul.f32 %v1381_v61, %v1364_v21  ;;  %v1377_v1 = vand.u32 2147483648, %v5056_v18  ;;  %v1483_v9 = vadd.f32 %v5059_v36, %v1482_v14  ;;  %v5226_v14 = vld [vmem:[#allocation6 + $0x168] sm:$0xff] }
 0x3b9   :  { %v1494_v24 = vadd.f32 %v5067_v17, %v1451_v54  ;;  %v1369_v5 = vmul.f32 %v2663_v4, %v1368_v27  ;;  %v1375_v54 = vand.u32 2147483647, %v5056_v18  ;;  %v1488_v21 = vand.u32 2147483647, %v5053_v49  ;;  %6574 = vst [vmem:[#allocation37_spill] sm:$0xff] %v5226_v14 }
 0x3ba   :  { %v1383_v29 = vadd.f32 %v1382_v63, %v1279_v20  ;;  %v1490_v63 = vand.u32 2147483648, %v5053_v49  ;;  %v1378_v30 = vor.u32 1.1754944e-38, %v1377_v1  ;;  %v1487_v34 = vsel %vm1486_vm5, %v5059_v36, %v1483_v9  ;;  %v5210_v36 = vld [vmem:[#allocation9 + $0x28] sm:$0xff]  ;;  %v6570_v20 = vld [vmem:[#allocation59_spill] sm:$0xff]  ;;  %v5231_v1 = vld [vmem:[#allocation11 + $0x160] sm:$0xff] }
 0x3bb   :  { %v1495_v32 = vmul.f32 %v1494_v24, %v1477_v31  ;;  %v1370_v26 = vadd.f32 %v2663_v4, %v1369_v5  ;;  %vm1376_vm6 = vcmp.eq.f32.partialorder %v1375_v54, 8.507059e+37  ;;  %vm1489_vm7 = vcmp.eq.f32.partialorder %v1488_v21, 8.507059e+37  ;;  %v5215_v24 = vld [vmem:[#allocation9 + $0x8] sm:$0xff]  ;;  %v5218_v5 = vld [vmem:[#allocation9 + $0x10] sm:$0xff]  ;;  %6577 = vst [vmem:[#allocation41_spill] sm:$0xff] %v5231_v1 }
 0x3bc   :  { %2664 = vtanh.f32 %v1383_v29  ;;  %v1491_v56 = vor.u32 1.1754944e-38, %v1490_v63  ;;  %6571 = vst [vmem:[#allocation33_spill] sm:$0xff] %v5218_v5  ;;  %v6573_v29 = vld [vmem:[#allocation46_spill] sm:$0xff]  ;;  %v6579_v54 = vld [vmem:[#allocation55_spill] sm:$0xff]  ;;  %v6580_v63 = vld [vmem:[#allocation49_spill] sm:$0xff] }
 0x3bd   :  { %v1496_v12 = vadd.f32 %v1495_v32, %v1393_v13  ;;  %v1374_v47 = vsel %vm1373_vm3, %v2663_v4, %v1370_v26  ;;  %v6569_v4 = vld [vmem:[#allocation61_spill] sm:$0xff]  ;;  %v6572_v13 = vld [vmem:[#allocation95_spill] sm:$0xff]  ;;  %v5223_v32 = vld [vmem:[#allocation11 + $0x178] sm:$0xff] }
 0x3be   :  { %v1379_v40 = vsel %vm1376_vm6, %v1378_v30, %v1374_v47  ;;  %v1492_v7 = vsel %vm1489_vm7, %v1491_v56, %v1487_v34  ;;  %v6576_v26 = vld [vmem:[#allocation63_spill] sm:$0xff]  ;;  %v5239_v21 = vld [vmem:[#allocation11 + $0x148] sm:$0xff]  ;;  %v6584_v30 = vld [vmem:[#allocation69_spill] sm:$0xff] }
 0x3bf   :  { %2666 = vtanh.f32 %v1496_v12  ;;  %v6575_v12 = vld [vmem:[#allocation76_spill] sm:$0xff]  ;;  %v5234_v9 = vld [vmem:[#allocation6 + $0x150] sm:$0xff]  ;;  %6581 = vst [vmem:[#allocation96_spill] sm:$0xff] %v5239_v21 }
 0x3c0   :  { %6578 = vst [vmem:[#allocation44_spill] sm:$0xff] %v5234_v9  ;;  %v5242_v47 = vld [vmem:[#allocation6 + $0x138] sm:$0xff]  ;;  %v5250_v34 = vld [vmem:[#allocation6 + $0x120] sm:$0xff]  ;;  %v6588_v56 = vld [vmem:[#allocation94_spill] sm:$0xff] }
 0x3c1   :  { %6582 = vst [vmem:[#allocation90_spill] sm:$0xff] %v5242_v47 }
 0x3c2   :  { %v2665_v61 = vpop.eup %2664  ;;  %6586 = vst [vmem:[#allocation91_spill] sm:$0xff] %v5250_v34 }
 0x3c3   :  { %v1385_v57 = vsub.f32 %v4717_v42, %v2665_v61  ;;  %v5094_v42 = vld [vmem:[#allocation9 + $0x170] sm:$0xff] }
 0x3c5   :  { %v2667_v59 = vpop.eup %2666  ;;  %v1386_v44 = vmul.f32 %v1385_v57, %v1379_v40  ;;  %v5247_v57 = vld [vmem:[#allocation11 + $0x130] sm:$0xff]  ;;  %v5255_v40 = vld [vmem:[#allocation11 + $0x118] sm:$0xff] }
 0x3c6   :  { %v1498_v18 = vsub.f32 %v4736_v23, %v2667_v59  ;;  %v5108_v23 = vld [vmem:[#allocation9 + $0x140] sm:$0xff]  ;;  %6585 = vst [vmem:[#allocation97_spill] sm:$0xff] %v5247_v57 }
 0x3c7   :  { %v5082_v31 = vadd.f32 %v2665_v61, %v1386_v44  ;;  %v6583_v61 = vld [vmem:[#allocation56_spill] sm:$0xff]  ;;  %6589 = vst [vmem:[#allocation98_spill] sm:$0xff] %v5255_v40 }
 0x3c8   :  { %v1499_v27 = vmul.f32 %v1498_v18, %v1492_v7  ;;  %v6590_v18 = vld [vmem:[#allocation48_spill] sm:$0xff]  ;;  %v6592_v7 = vld [vmem:[#allocation73_spill] sm:$0xff] }
 0x3c9   :  { %1389 = vst [vmem:[#allocation12 + $0x18] sm:$0xff] %v5082_v31  ;;  %1577 = vmatmul.f32.vlgmr.msra.gmra.mxu2 %v5082_v31  ;;  %v6591_v44 = vld [vmem:[#allocation60_spill] sm:$0xff] }
 0x3ca   :  { %v5084_v49 = vadd.f32 %v2667_v59, %v1499_v27  ;;  %1821 = vmatpush.msra.mxu2 %v4721_v33  ;;  %v5100_v33 = vld [vmem:[#allocation9 + $0x158] sm:$0xff]  ;;  %v6587_v59 = vld [vmem:[#allocation58_spill] sm:$0xff]  ;;  %v5261_v27 = vld [vmem:[#allocation11 + $0x100] sm:$0xff] }
 0x3cb   :  { %6593 = vst [vmem:[#allocation92_spill] sm:$0xff] %v5261_v27 }
 0x3cc   :  { %1517 = vmatmul.f32.vlgmr.msrb.gmra.mxu3 %v5084_v49  ;;  %1537 = vmatmul.f32.vlgmr.msra.gmra.mxu0 %v5084_v49 }
 0x3cd   :  { %1557 = vmatmul.f32.vlgmr.msra.gmra.mxu1 %v5084_v49  ;;  %1714 = vmatpush.msrb.mxu3 %v4743_v3  ;;  %v5124_v3 = vld [vmem:[#allocation9 + $0x110] sm:$0xff] }
 0x3ce   :  { %1781 = vmatpush.msra.mxu0 %v4746_v62  ;;  %1801 = vmatpush.msra.mxu1 %v5094_v42  ;;  %v5128_v62 = vld [vmem:[#allocation9 + $0x118] sm:$0xff] }
 0x3cf   :  { %1715 = vmatpush.msrb.mxu3 %v4751_v60  ;;  %1822 = vmatpush.msra.mxu2 %v4727_v2  ;;  %v5116_v2 = vld [vmem:[#allocation9 + $0x128] sm:$0xff]  ;;  %v5132_v60 = vld [vmem:[#allocation9 + $0xf8] sm:$0xff] }
 0x3d0   :  { %1782 = vmatpush.msra.mxu0 %v4754_v39  ;;  %1802 = vmatpush.msra.mxu1 %v5100_v33  ;;  %v5136_v39 = vld [vmem:[#allocation9 + $0x100] sm:$0xff] }
 0x3d1   :  { %1716 = vmatpush.msrb.mxu3 %v4759_v22  ;;  %1823 = vmatpush.msra.mxu2 %v4730_v45  ;;  %v5120_v45 = vld [vmem:[#allocation9 + $0x130] sm:$0xff]  ;;  %v5140_v22 = vld [vmem:[#allocation9 + $0xe0] sm:$0xff] }
 0x3d2   :  { %1710 = vmatmul.f32.vlgmr.msrb.gmra.mxu2 %v5084_v49  ;;  %1783 = vmatpush.msra.mxu0 %v4762_v37  ;;  %v5144_v37 = vld [vmem:[#allocation9 + $0xe8] sm:$0xff] }
 0x3d3   :  { %1717 = vmatpush.msrb.mxu3 %v4767_v35  ;;  %1803 = vmatpush.msra.mxu1 %v5108_v23  ;;  %v5148_v35 = vld [vmem:[#allocation9 + $0xc8] sm:$0xff] }
 0x3d4   :  { %1597 = vmatmul.f32.vlgmr.msra.gmra.mxu3 %v5082_v31  ;;  %1617 = vmatmul.f32.vlgmr.msrb.gmra.mxu0 %v5082_v31 }
 0x3d5   :  { %1690 = vmatmul.f32.vlgmr.msrb.gmra.mxu1 %v5084_v49  ;;  %1718 = vmatpush.msrb.mxu3 %v4773_v28  ;;  %v5152_v28 = vld [vmem:[#allocation9 + $0xd0] sm:$0xff] }
 0x3d6   :  { %1784 = vmatpush.msra.mxu0 %v4776_v0  ;;  %1804 = vmatpush.msra.mxu1 %v5116_v2  ;;  %v5156_v0 = vld [vmem:[#allocation9 + $0xb0] sm:$0xff] }
 0x3d7   :  { %1719 = vmatpush.msrb.mxu3 %v4781_v50  ;;  %1824 = vmatpush.msra.mxu2 %v5120_v45  ;;  %v5160_v50 = vld [vmem:[#allocation9 + $0xb8] sm:$0xff] }
 0x3d8   :  { %1785 = vmatpush.msra.mxu0 %v4784_v53  ;;  %1805 = vmatpush.msra.mxu1 %v5124_v3  ;;  %v5164_v53 = vld [vmem:[#allocation9 + $0x98] sm:$0xff] }
 0x3d9   :  { %1720 = vmatpush.msrb.mxu3 %v4789_v41  ;;  %1825 = vmatpush.msra.mxu2 %v5128_v62  ;;  %v5168_v41 = vld [vmem:[#allocation9 + $0xa0] sm:$0xff] }
 0x3da   :  { %1786 = vmatpush.msra.mxu0 %v4792_v11  ;;  %1806 = vmatpush.msra.mxu1 %v5132_v60  ;;  %v5172_v11 = vld [vmem:[#allocation9 + $0x80] sm:$0xff] }
 0x3db   :  { %1721 = vmatpush.msrb.mxu3 %v4797_v46  ;;  %1826 = vmatpush.msra.mxu2 %v5136_v39  ;;  %v5176_v46 = vld [vmem:[#allocation9 + $0x88] sm:$0xff] }
 0x3dc   :  { %1787 = vmatpush.msra.mxu0 %v4800_v6  ;;  %1807 = vmatpush.msra.mxu1 %v5140_v22  ;;  %v5180_v6 = vld [vmem:[#allocation9 + $0x68] sm:$0xff] }
 0x3dd   :  { %1722 = vmatpush.msrb.mxu3 %v4805_v51  ;;  %1827 = vmatpush.msra.mxu2 %v5144_v37  ;;  %v5184_v51 = vld [vmem:[#allocation9 + $0x70] sm:$0xff] }
 0x3de   :  { %1788 = vmatpush.msra.mxu0 %v4808_v10  ;;  %1808 = vmatpush.msra.mxu1 %v5148_v35  ;;  %v5188_v10 = vld [vmem:[#allocation9 + $0x50] sm:$0xff] }
 0x3df   :  { %1723 = vmatpush.msrb.mxu3 %v4813_v15  ;;  %1828 = vmatpush.msra.mxu2 %v5152_v28  ;;  %v6563_v15 = vld [vmem:[#allocation38_spill] sm:$0xff] }
 0x3e0   :  { %1789 = vmatpush.msra.mxu0 %v4816_v48  ;;  %1809 = vmatpush.msra.mxu1 %v5156_v0  ;;  %v5192_v48 = vld [vmem:[#allocation9 + $0x58] sm:$0xff] }
 0x3e1   :  { %1724 = vmatpush.msrb.mxu3 %v4821_v16  ;;  %1829 = vmatpush.msra.mxu2 %v5160_v50  ;;  %v6564_v16 = vld [vmem:[#allocation43_spill] sm:$0xff] }
 0x3e2   :  { %1790 = vmatpush.msra.mxu0 %v4824_v8  ;;  %1810 = vmatpush.msra.mxu1 %v5164_v53  ;;  %v5196_v8 = vld [vmem:[#allocation9 + $0x38] sm:$0xff] }
 0x3e3   :  { %1725 = vmatpush.msrb.mxu3 %v4829_v38  ;;  %1830 = vmatpush.msra.mxu2 %v5168_v41  ;;  %v6565_v38 = vld [vmem:[#allocation52_spill] sm:$0xff] }
 0x3e4   :  { %1791 = vmatpush.msra.mxu0 %v4832_v52  ;;  %1811 = vmatpush.msra.mxu1 %v5172_v11  ;;  %v5200_v52 = vld [vmem:[#allocation9 + $0x40] sm:$0xff] }
 0x3e5   :  { %1726 = vmatpush.msrb.mxu3 %v4837_v25  ;;  %1831 = vmatpush.msra.mxu2 %v5176_v46  ;;  %v6566_v25 = vld [vmem:[#allocation42_spill] sm:$0xff] }
 0x3e6   :  { %1792 = vmatpush.msra.mxu0 %v4840_v58  ;;  %1812 = vmatpush.msra.mxu1 %v5180_v6  ;;  %v6567_v58 = vld [vmem:[#allocation57_spill] sm:$0xff] }
 0x3e7   :  { %1727 = vmatpush.msrb.mxu3 %v4845_v55  ;;  %1832 = vmatpush.msra.mxu2 %v5184_v51  ;;  %v5206_v55 = vld [vmem:[#allocation9 + $0x20] sm:$0xff] }
 0x3e8   :  { %1793 = vmatpush.msra.mxu0 %v4848_v19  ;;  %1813 = vmatpush.msra.mxu1 %v5188_v10  ;;  %v6568_v19 = vld [vmem:[#allocation45_spill] sm:$0xff] }
 0x3e9   :  { %1728 = vmatpush.msrb.mxu3 %v6563_v15  ;;  %1833 = vmatpush.msra.mxu2 %v5192_v48  ;;  %v6594_v15 = vld [vmem:[#allocation67_spill] sm:$0xff] }
 0x3ea   :  { %1794 = vmatpush.msra.mxu0 %v6564_v16  ;;  %1814 = vmatpush.msra.mxu1 %v5196_v8  ;;  %v6595_v16 = vld [vmem:[#allocation62_spill] sm:$0xff] }
 0x3eb   :  { %1729 = vmatpush.msrb.mxu3 %v6565_v38  ;;  %1834 = vmatpush.msra.mxu2 %v5200_v52  ;;  %v6596_v38 = vld [vmem:[#allocation53_spill] sm:$0xff] }
 0x3ec   :  { %1730 = vmatmul.f32.vlgmr.msrb.gmra.mxu3 %v5084_v49  ;;  %1795 = vmatpush.msra.mxu0 %v6566_v25  ;;  %v5267_v25 = vld [vmem:[#allocation11 + $0xe8] sm:$0xff] }
 0x3ed   :  { %1841 = vmatpush.msra.mxu3 %v6567_v58  ;;  %1815 = vmatpush.msra.mxu1 %v5206_v55  ;;  %6597 = vst [vmem:[#allocation26_spill] sm:$0xff] %v5267_v25  ;;  %v6598_v58 = vld [vmem:[#allocation51_spill] sm:$0xff] }
 0x3ee   :  { %1796 = vmatpush.msra.mxu0 %v6568_v19  ;;  %1835 = vmatpush.msra.mxu2 %v5210_v36  ;;  %v6599_v19 = vld [vmem:[#allocation64_spill] sm:$0xff] }
 0x3ef   :  { %1842 = vmatpush.msra.mxu3 %v6569_v4  ;;  %1816 = vmatpush.msra.mxu1 %v5215_v24  ;;  %v5272_v4 = vld [vmem:[#allocation11 + $0xb0] sm:$0xff] }
 0x3f0   :  { %1861 = vmatpush.msrb.mxu0 %v6570_v20  ;;  %1836 = vmatpush.msra.mxu2 %v5218_v5  ;;  %6600 = vst [vmem:[#allocation99_spill] sm:$0xff] %v5272_v4  ;;  %v5275_v20 = vld [vmem:[#allocation11 + $0xd0] sm:$0xff] }
 0x3f1   :  { %1843 = vmatpush.msra.mxu3 %v6572_v13  ;;  %1881 = vmatpush.msrb.mxu1 %v5223_v32  ;;  %6601 = vst [vmem:[#allocation93_spill] sm:$0xff] %v5275_v20  ;;  %v6602_v13 = vld [vmem:[#allocation36_spill] sm:$0xff] }
 0x3f2   :  { %1862 = vmatpush.msrb.mxu0 %v6573_v29  ;;  %1954 = vmatpush.msrb.mxu2 %v5226_v14  ;;  %v6603_v29 = vld [vmem:[#allocation66_spill] sm:$0xff] }
 0x3f3   :  { %1844 = vmatpush.msra.mxu3 %v6575_v12  ;;  %1882 = vmatpush.msrb.mxu1 %v5231_v1  ;;  %v5280_v12 = vld [vmem:[#allocation11 + $0x98] sm:$0xff] }
 0x3f4   :  { %1863 = vmatpush.msrb.mxu0 %v6576_v26  ;;  %1955 = vmatpush.msrb.mxu2 %v5234_v9  ;;  %6604 = vst [vmem:[#allocation100_spill] sm:$0xff] %v5280_v12  ;;  %v5283_v26 = vld [vmem:[#allocation11 + $0xb8] sm:$0xff] }
 0x3f5   :  { %1845 = vmatpush.msra.mxu3 %v6579_v54  ;;  %1883 = vmatpush.msrb.mxu1 %v5239_v21  ;;  %6605 = vst [vmem:[#allocation29_spill] sm:$0xff] %v5283_v26  ;;  %v6606_v54 = vld [vmem:[#allocation75_spill] sm:$0xff] }
 0x3f6   :  { %1864 = vmatpush.msrb.mxu0 %v6580_v63  ;;  %1956 = vmatpush.msrb.mxu2 %v5242_v47  ;;  %v6607_v63 = vld [vmem:[#allocation68_spill] sm:$0xff] }
 0x3f7   :  { %1846 = vmatpush.msra.mxu3 %v6583_v61  ;;  %1884 = vmatpush.msrb.mxu1 %v5247_v57  ;;  %v5288_v61 = vld [vmem:[#allocation11 + $0x80] sm:$0xff] }
 0x3f8   :  { %1865 = vmatpush.msrb.mxu0 %v6584_v30  ;;  %1957 = vmatpush.msrb.mxu2 %v5250_v34  ;;  %6608 = vst [vmem:[#allocation101_spill] sm:$0xff] %v5288_v61  ;;  %v5291_v30 = vld [vmem:[#allocation11 + $0xa0] sm:$0xff] }
 0x3f9   :  { %1847 = vmatpush.msra.mxu3 %v6587_v59  ;;  %1885 = vmatpush.msrb.mxu1 %v5255_v40  ;;  %6609 = vst [vmem:[#allocation32_spill] sm:$0xff] %v5291_v30  ;;  %v6610_v59 = vld [vmem:[#allocation40_spill] sm:$0xff] }
 0x3fa   :  { %1866 = vmatpush.msrb.mxu0 %v6588_v56  ;;  %1958 = vmatpush.msrb.mxu2 %v6590_v18  ;;  %v6611_v56 = vld [vmem:[#allocation70_spill] sm:$0xff] }
 0x3fb   :  { %1848 = vmatpush.msra.mxu3 %v6591_v44  ;;  %1886 = vmatpush.msrb.mxu1 %v5261_v27  ;;  %v5296_v18 = vld [vmem:[#allocation11 + $0x68] sm:$0xff] }
 0x3fc   :  { %1867 = vmatpush.msrb.mxu0 %v6592_v7  ;;  %1959 = vmatpush.msrb.mxu2 %v6594_v15  ;;  %6612 = vst [vmem:[#allocation47_spill] sm:$0xff] %v5296_v18  ;;  %v5299_v44 = vld [vmem:[#allocation11 + $0x88] sm:$0xff]  ;;  %v6614_v7 = vld [vmem:[#allocation77_spill] sm:$0xff] }
 0x3fd   :  { %1849 = vmatpush.msra.mxu3 %v6595_v16  ;;  %1887 = vmatpush.msrb.mxu1 %v5267_v25  ;;  %6613 = vst [vmem:[#allocation81_spill] sm:$0xff] %v5299_v44  ;;  %v6615_v15 = vld [vmem:[#allocation89_spill] sm:$0xff]  ;;  %v5304_v16 = vld [vmem:[#allocation11 + $0x50] sm:$0xff] }
 0x3fe   :  { %1868 = vmatpush.msrb.mxu0 %v6596_v38  ;;  %1960 = vmatpush.msrb.mxu2 %v6598_v58  ;;  %6616 = vst [vmem:[#allocation31_spill] sm:$0xff] %v5304_v16  ;;  %v5307_v38 = vld [vmem:[#allocation11 + $0x70] sm:$0xff]  ;;  %v6618_v58 = vld [vmem:[#allocation54_spill] sm:$0xff] }
 0x3ff   :  { %1850 = vmatpush.msra.mxu3 %v6599_v19  ;;  %1888 = vmatpush.msrb.mxu1 %v5275_v20  ;;  %6617 = vst [vmem:[#allocation65_spill] sm:$0xff] %v5307_v38  ;;  %v6619_v19 = vld [vmem:[#allocation85_spill] sm:$0xff] }
 0x400   :  { %1869 = vmatpush.msrb.mxu0 %v5272_v4  ;;  %1961 = vmatpush.msrb.mxu2 %v6602_v13  ;;  %v5312_v13 = vld [vmem:[#allocation11 + $0x38] sm:$0xff] }
 0x401   :  { %1851 = vmatpush.msra.mxu3 %v6603_v29  ;;  %1889 = vmatpush.msrb.mxu1 %v5283_v26  ;;  %6620 = vst [vmem:[#allocation35_spill] sm:$0xff] %v5312_v13  ;;  %v5315_v29 = vld [vmem:[#allocation11 + $0x58] sm:$0xff] }
 0x402   :  { %1870 = vmatpush.msrb.mxu0 %v5280_v12  ;;  %1962 = vmatpush.msrb.mxu2 %v6606_v54  ;;  %6621 = vst [vmem:[#allocation83_spill] sm:$0xff] %v5315_v29  ;;  %v6622_v54 = vld [vmem:[#allocation78_spill] sm:$0xff] }
 0x403   :  { %1852 = vmatpush.msra.mxu3 %v6607_v63  ;;  %1890 = vmatpush.msrb.mxu1 %v5291_v30  ;;  %v6623_v63 = vld [vmem:[#allocation86_spill] sm:$0xff] }
 0x404   :  { %1871 = vmatpush.msrb.mxu0 %v5288_v61  ;;  %1963 = vmatpush.msrb.mxu2 %v6610_v59  ;;  %v5320_v59 = vld [vmem:[#allocation11 + $0x20] sm:$0xff] }
 0x405   :  { %1853 = vmatpush.msra.mxu3 %v6611_v56  ;;  %1891 = vmatpush.msrb.mxu1 %v5299_v44  ;;  %6624 = vst [vmem:[#allocation50_spill] sm:$0xff] %v5320_v59  ;;  %v5323_v56 = vld [vmem:[#allocation6 + $0x170] sm:$0xff]  ;;  %v1671_v44 = vld [vmem:[#allocation3 + $0x78] sm:$0xff] }
 0x406   :  { %1872 = vmatpush.msrb.mxu0 %v5296_v18  ;;  %1964 = vmatpush.msrb.mxu2 %v6614_v7  ;;  %6625 = vst [vmem:[#allocation34_spill] sm:$0xff] %v5323_v56  ;;  %v5326_v7 = vld [vmem:[#allocation11 + $0x40] sm:$0xff] }
 0x407   :  { %1854 = vmatpush.msra.mxu3 %v6615_v15  ;;  %1892 = vmatpush.msrb.mxu1 %v5307_v38  ;;  %6626 = vst [vmem:[#allocation39_spill] sm:$0xff] %v5326_v7  ;;  %v5329_v15 = vld [vmem:[#allocation11 + $0x8] sm:$0xff]  ;;  %v6643_v38 = vld [vmem:[#allocation23_spill] sm:$0xff] }
 0x408   :  { %1873 = vmatpush.msrb.mxu0 %v5304_v16  ;;  %1965 = vmatpush.msrb.mxu2 %v6618_v58  ;;  %6627 = vst [vmem:[#allocation71_spill] sm:$0xff] %v5329_v15  ;;  %v6628_v58 = vld [vmem:[#allocation80_spill] sm:$0xff]  ;;  %v6648_v16 = vld [vmem:[#allocation79_spill] sm:$0xff] }
 0x409   :  { %1855 = vmatpush.msra.mxu3 %v6619_v19  ;;  %1893 = vmatpush.msrb.mxu1 %v5315_v29  ;;  %v6629_v19 = vld [vmem:[#allocation87_spill] sm:$0xff]  ;;  %v6638_v29 = vld [vmem:[#allocation17_spill] sm:$0xff] }
 0x40a   :  { %1874 = vmatpush.msrb.mxu0 %v5312_v13  ;;  %1966 = vmatpush.msrb.mxu2 %v6622_v54  ;;  %v5334_v54 = vld [vmem:[#allocation11 + $0x28] sm:$0xff]  ;;  %v6641_v13 = vld [vmem:[#allocation21_spill] sm:$0xff] }
 0x40b   :  { %1856 = vmatpush.msra.mxu3 %v6623_v63  ;;  %1894 = vmatpush.msrb.mxu1 %v5326_v7  ;;  %6630 = vst [vmem:[#allocation38_spill] sm:$0xff] %v5334_v54  ;;  %v6631_v63 = vld [vmem:[#allocation82_spill] sm:$0xff]  ;;  %v6634_v7 = vld [vmem:[#allocation84_spill] sm:$0xff] }
 0x40c   :  { %1875 = vmatpush.msrb.mxu0 %v5320_v59  ;;  %1967 = vmatpush.msrb.mxu2 %v6628_v58  ;;  %v5338_v59 = vld [vmem:[#allocation6 + $0x140] sm:$0xff] }
 0x40d   :  { %1974 = vmatpush.msrb.mxu3 %v5323_v56  ;;  %1895 = vmatpush.msrb.mxu1 %v5334_v54  ;;  %6632 = vst [vmem:[#allocation43_spill] sm:$0xff] %v5338_v59  ;;  %v5341_v56 = vld [vmem:[#allocation11 + $0x10] sm:$0xff]  ;;  %v6636_v58 = vld [vmem:[#allocation72_spill] sm:$0xff] }
 0x40e   :  { %1876 = vmatpush.msrb.mxu0 %v5329_v15  ;;  %1968 = vmatpush.msrb.mxu2 %v6631_v63  ;;  %6633 = vst [vmem:[#allocation52_spill] sm:$0xff] %v5341_v56  ;;  %v6635_v15 = vld [vmem:[#allocation88_spill] sm:$0xff]  ;;  %v6639_v54 = vld [vmem:[#allocation19_spill] sm:$0xff] }
 0x40f   :  { %1975 = vmatpush.msrb.mxu3 %v6629_v19  ;;  %1896 = vmatpush.msrb.mxu1 %v5341_v56  ;;  %v6637_v19 = vld [vmem:[#allocation74_spill] sm:$0xff]  ;;  %v6640_v63 = vld [vmem:[#allocation20_spill] sm:$0xff] }
 0x410   :  { %1969 = vmatpush.msrb.mxu2 %v6634_v7  ;;  %v6644_v56 = vld [vmem:[#allocation24_spill] sm:$0xff]  ;;  %v6645_v7 = vld [vmem:[#allocation25_spill] sm:$0xff] }
 0x411   :  { %1976 = vmatpush.msrb.mxu3 %v5338_v59  ;;  %v6642_v59 = vld [vmem:[#allocation22_spill] sm:$0xff] }
 0x413   :  { %1977 = vmatpush.msrb.mxu3 %v6635_v15  ;;  %v6646_v15 = vld [vmem:[#allocation27_spill] sm:$0xff] }
 0x415   :  { %1978 = vmatpush.msrb.mxu3 %v6636_v58  ;;  %v6647_v58 = vld [vmem:[#allocation30_spill] sm:$0xff] }
 0x417   :  { %1979 = vmatpush.msrb.mxu3 %v6637_v19 }
 0x419   :  { %1980 = vmatpush.msrb.mxu3 %v6638_v29 }
 0x41b   :  { %1981 = vmatpush.msrb.mxu3 %v6639_v54 }
 0x41d   :  { %1982 = vmatpush.msrb.mxu3 %v6640_v63 }
 0x41f   :  { %1983 = vmatpush.msrb.mxu3 %v6641_v13 }
 0x421   :  { %1984 = vmatpush.msrb.mxu3 %v6642_v59 }
 0x423   :  { %1985 = vmatpush.msrb.mxu3 %v6643_v38  ;;  %v1672_v38 = vld [vmem:[#allocation3 + $0x80] sm:$0xff] }
 0x425   :  { %1986 = vmatpush.msrb.mxu3 %v6644_v56 }
 0x427   :  { %1987 = vmatpush.msrb.mxu3 %v6645_v7  ;;  %v6649_v7 = vld [vmem:[#allocation18_spill] sm:$0xff] }
 0x429   :  { %1988 = vmatpush.msrb.mxu3 %v6646_v15 }
 0x42b   :  { %1989 = vmatpush.msrb.mxu3 %v6647_v58 }
 0x449   :  { %v1538_v59 = vpop.f32.mrf.mxu0 }
 0x44a   :  { %v5358_v19 = vpop.f32.mrf.mxu1  ;;  %v1539_v12 = vadd.f32 %v1538_v59, %v6649_v7 }
 0x44b   :  { %v1559_v1 = vadd.f32 %v5358_v19, %v6562_v43 }
 0x44c   :  { %v1578_v29 = vpop.f32.mrf.mxu2 }
 0x44f   :  { %v1518_v54 = vpop.f32.mrf.mxu3 }
 0x450   :  { %v1519_v63 = vadd.f32 %v1518_v54, %v6648_v16 }
 0x451   :  { %v1618_v59 = vpop.f32.mrf.mxu0 }
 0x452   :  { %v1621_v13 = vadd.f32 %v1578_v29, %v1519_v63  ;;  %v1691_v18 = vpop.f32.mrf.mxu1 }
 0x453   :  { %v1734_v30 = vadd.f32 %v1691_v18, %v1671_v44 }
 0x454   :  { %v2551_v61 = vmul.f32 -1.442695, %v1621_v13 }
 0x455   :  { %v2553_v56 = vmul.f32 -1.442695, %v1734_v30  ;;  %v1711_v26 = vpop.f32.mrf.mxu2 }
 0x456   :  { %2668 = vpow2.f32 %v2551_v61  ;;  %v1735_v15 = vadd.f32 %v1711_v26, %v1672_v38 }
 0x457   :  { %2670 = vpow2.f32 %v2553_v56  ;;  %v1598_v58 = vpop.f32.mrf.mxu3 }
 0x458   :  { %v2554_v20 = vmul.f32 -1.442695, %v1735_v15  ;;  %v1622_v4 = vadd.f32 %v1598_v58, %v1539_v12 }
 0x45a   :  { %2672 = vpow2.f32 %v2554_v20  ;;  %v2552_v25 = vmul.f32 -1.442695, %v1622_v4 }
 0x45c   :  { %v2669_v54 = vpop.eup %2668  ;;  %2674 = vpow2.f32 %v2552_v25 }
 0x45d   :  { %v2671_v29 = vpop.eup %2670  ;;  %v1629_v63 = vadd.f32 1.0, %v2669_v54 }
 0x45e   :  { %v1742_v16 = vadd.f32 1.0, %v2671_v29 }
 0x45f   :  { %2676 = vrcp.f32 %v1629_v63  ;;  %v1640_v38 = vand.u32 2147483647, %v1629_v63  ;;  %v1642_v56 = vand.u32 2147483648, %v1629_v63  ;;  %vm1636_vm10 = vweird.f32 %v1629_v63 }
 0x460   :  { %v2673_v18 = vpop.eup %2672  ;;  %2678 = vrcp.f32 %v1742_v16  ;;  %v1753_v54 = vand.u32 2147483647, %v1742_v16  ;;  %v1755_v29 = vand.u32 2147483648, %v1742_v16  ;;  %vm1749_vm12 = vweird.f32 %v1742_v16 }
 0x461   :  { %v5362_v30 = vadd.f32 1.0, %v2673_v18  ;;  %vm1641_vm13 = vcmp.eq.f32.partialorder %v1640_v38, 8.507059e+37 }
 0x462   :  { %v2675_v44 = vpop.eup %2674  ;;  %vm1754_vm15 = vcmp.eq.f32.partialorder %v1753_v54, 8.507059e+37 }
 0x463   :  { %2680 = vrcp.f32 %v5362_v30  ;;  %v5365_v26 = vadd.f32 1.0, %v2675_v44  ;;  %vm1764_vm4 = vweird.f32 %v5362_v30 }
 0x465   :  { %v2677_v61 = vpop.eup %2676  ;;  %2682 = vrcp.f32 %v5365_v26  ;;  %v1657_v54 = vand.u32 2147483648, %v5365_v26  ;;  %vm1651_vm2 = vweird.f32 %v5365_v26 }
 0x466   :  { %v2679_v13 = vpop.eup %2678  ;;  %v1632_v12 = vmul.f32 %v2677_v61, %v1629_v63  ;;  %vm1637_vm8 = vweird.f32 %v2677_v61 }
 0x467   :  { %v1745_v4 = vmul.f32 %v2679_v13, %v1742_v16  ;;  %vm1750_vm9 = vweird.f32 %v2679_v13  ;;  %vm1638_vm11 = vmor %vm1636_vm10, %vm1637_vm8 }
 0x468   :  { %v1633_v25 = vsub.f32 1.0, %v1632_v12  ;;  %v5375_v12 = vld [vmem:[%s5794_s6] ss:$0 sm:$0xff]  ;;  %vm1751_vm14 = vmor %vm1749_vm12, %vm1750_vm9 }
 0x469   :  { %v5368_v20 = vpop.eup %2680  ;;  %v1746_v15 = vsub.f32 1.0, %v1745_v4  ;;  %6650 = vst [vmem:[#allocation42_spill] sm:$0xff] %v5375_v12  ;;  %v1661_v40 = vadd.f32 %v5375_v12, %v1618_v59  ;;  %v1643_v4 = vor.u32 1.1754944e-38, %v1642_v56 }
 0x46a   :  { %v1634_v58 = vmul.f32 %v2677_v61, %v1633_v25  ;;  %v1760_v18 = vmul.f32 %v5368_v20, %v5362_v30  ;;  %vm1765_vm1 = vweird.f32 %v5368_v20 }
 0x46b   :  { %v1747_v44 = vmul.f32 %v2679_v13, %v1746_v15  ;;  %v2683_v7 = vpop.eup %2682  ;;  %v1756_v15 = vor.u32 1.1754944e-38, %v1755_v29  ;;  %vm1766_vm5 = vmor %vm1764_vm4, %vm1765_vm1 }
 0x46c   :  { %v1635_v27 = vadd.f32 %v2677_v61, %v1634_v58  ;;  %v1647_v25 = vmul.f32 %v2683_v7, %v5365_v26  ;;  %v1761_v63 = vsub.f32 1.0, %v1760_v18  ;;  %vm1652_vm0 = vweird.f32 %v2683_v7 }
 0x46d   :  { %v1748_v34 = vadd.f32 %v2679_v13, %v1747_v44  ;;  %v1673_v44 = vld [vmem:[#allocation3 + $0x88] sm:$0xff]  ;;  %vm1653_vm3 = vmor %vm1651_vm2, %vm1652_vm0 }
 0x46e   :  { %v1639_v57 = vsel %vm1638_vm11, %v2677_v61, %v1635_v27  ;;  %v1648_v47 = vsub.f32 1.0, %v1647_v25  ;;  %v1762_v61 = vmul.f32 %v5368_v20, %v1761_v63  ;;  %v5419_v63 = vld [vmem:[#allocation9 + $0x150] sm:$0xff] }
 0x46f   :  { %v1644_v58 = vsel %vm1641_vm13, %v1643_v4, %v1639_v57  ;;  %v1731_v21 = vpop.f32.mrf.mxu3  ;;  %v1752_v9 = vsel %vm1751_vm14, %v2679_v13, %v1748_v34 }
 0x470   :  { %v1662_v59 = vmul.f32 %v1661_v40, %v1644_v58  ;;  %v1757_v12 = vsel %vm1754_vm15, %v1756_v15, %v1752_v9  ;;  %v1774_v56 = vadd.f32 %v5067_v17, %v1731_v21  ;;  %v1649_v14 = vmul.f32 %v2683_v7, %v1648_v47  ;;  %v5416_v58 = vld [vmem:[#allocation9 + $0x160] sm:$0xff] }
 0x471   :  { %v1763_v34 = vadd.f32 %v5368_v20, %v1762_v61  ;;  %v1655_v17 = vand.u32 2147483647, %v5365_v26  ;;  %v1768_v9 = vand.u32 2147483647, %v5362_v30  ;;  %v1658_v47 = vor.u32 1.1754944e-38, %v1657_v54  ;;  %v5455_v61 = vld [vmem:[#allocation6 + $0xe8] sm:$0xff] }
 0x472   :  { %v1663_v16 = vadd.f32 %v1662_v59, %v1559_v1  ;;  %v1775_v27 = vmul.f32 %v1774_v56, %v1757_v12  ;;  %v1650_v57 = vadd.f32 %v2683_v7, %v1649_v14  ;;  %v1770_v1 = vand.u32 2147483648, %v5362_v30  ;;  %v5409_v30 = vld [vmem:[#allocation9 + $0x168] sm:$0xff]  ;;  %v5475_v54 = vld [vmem:[#allocation9 + $0xc0] sm:$0xff] }
 0x473   :  { %vm1656_vm6 = vcmp.eq.f32.partialorder %v1655_v17, 8.507059e+37  ;;  %v1767_v19 = vsel %vm1766_vm5, %v5368_v20, %v1763_v34  ;;  %vm1769_vm7 = vcmp.eq.f32.partialorder %v1768_v9, 8.507059e+37  ;;  %v5413_v20 = vld [vmem:[#allocation6 + $0x160] sm:$0xff]  ;;  %v5423_v59 = vld [vmem:[#allocation6 + $0x148] sm:$0xff]  ;;  %v5491_v17 = vld [vmem:[#allocation9 + $0x90] sm:$0xff] }
 0x474   :  { %2684 = vtanh.f32 %v1663_v16  ;;  %v1776_v38 = vadd.f32 %v1775_v27, %v1673_v44  ;;  %v1654_v14 = vsel %vm1653_vm3, %v2683_v7, %v1650_v57  ;;  %v1771_v29 = vor.u32 1.1754944e-38, %v1770_v1  ;;  %v5426_v56 = vld [vmem:[#allocation9 + $0x148] sm:$0xff]  ;;  %v5443_v16 = vld [vmem:[#allocation9 + $0x120] sm:$0xff]  ;;  %v5467_v57 = vld [vmem:[#allocation9 + $0xd8] sm:$0xff]  ;;  %6651 = vst [vmem:[#allocation57_spill] sm:$0xff] %v5491_v17 }
 0x475   :  { %v1659_v18 = vsel %vm1656_vm6, %v1658_v47, %v1654_v14  ;;  %v5433_v44 = vld [vmem:[#allocation6 + $0x130] sm:$0xff]  ;;  %v5447_v27 = vld [vmem:[#allocation6 + $0x100] sm:$0xff] }
 0x476   :  { %2686 = vtanh.f32 %v1776_v38  ;;  %v1772_v4 = vsel %vm1769_vm7, %v1771_v29, %v1767_v19  ;;  %v5459_v38 = vld [vmem:[#allocation9 + $0xf0] sm:$0xff]  ;;  %v5483_v34 = vld [vmem:[#allocation9 + $0xa8] sm:$0xff]  ;;  %v5499_v1 = vld [vmem:[#allocation9 + $0x78] sm:$0xff] }
 0x477   :  { %6653 = vst [vmem:[#allocation61_spill] sm:$0xff] %v5499_v1  ;;  %v5507_v9 = vld [vmem:[#allocation9 + $0x60] sm:$0xff]  ;;  %v5515_v14 = vld [vmem:[#allocation9 + $0x48] sm:$0xff]  ;;  %v5546_v19 = vld [vmem:[#allocation11 + $0x170] sm:$0xff] }
 0x478   :  { %6655 = vst [vmem:[#allocation95_spill] sm:$0xff] %v5507_v9  ;;  %v5535_v47 = vld [vmem:[#allocation11 + $0x168] sm:$0xff]  ;;  %v6668_v29 = vld [vmem:[#allocation37_spill] sm:$0xff] }
 0x479   :  { %6657 = vst [vmem:[#allocation76_spill] sm:$0xff] %v5515_v14 }
 0x47a   :  { %v2685_v21 = vpop.eup %2684  ;;  %6662 = vst [vmem:[#allocation69_spill] sm:$0xff] %v5535_v47 }
 0x47b   :  { %v1665_v40 = vsub.f32 %v5082_v31, %v2685_v21  ;;  %v5400_v31 = vld [vmem:[#allocation9 + $0x178] sm:$0xff]  ;;  %6665 = vst [vmem:[#allocation48_spill] sm:$0xff] %v5546_v19 }
 0x47c   :  { %v2687_v13 = vpop.eup %2686 }
 0x47d   :  { %v1778_v26 = vsub.f32 %v5084_v49, %v2687_v13  ;;  %v1666_v12 = vmul.f32 %v1665_v40, %v1659_v18  ;;  %v5406_v49 = vld [vmem:[#allocation6 + $0x178] sm:$0xff]  ;;  %v5539_v40 = vld [vmem:[#allocation9] sm:$0xff] }
 0x47e   :  { %6663 = vst [vmem:[#allocation58_spill] sm:$0xff] %v5539_v40  ;;  %v5559_v18 = vld [vmem:[#allocation11 + $0x120] sm:$0xff] }
 0x47f   :  { %v1779_v25 = vmul.f32 %v1778_v26, %v1772_v4  ;;  %v5394_v15 = vadd.f32 %v2685_v21, %v1666_v12  ;;  %v5523_v21 = vld [vmem:[#allocation9 + $0x30] sm:$0xff]  ;;  %6669 = vst [vmem:[#allocation67_spill] sm:$0xff] %v5559_v18  ;;  %v5562_v26 = vld [vmem:[#allocation11 + $0x140] sm:$0xff]  ;;  %v6672_v12 = vld [vmem:[#allocation44_spill] sm:$0xff] }
 0x480   :  { %6659 = vst [vmem:[#allocation55_spill] sm:$0xff] %v5523_v21  ;;  %v5567_v4 = vld [vmem:[#allocation11 + $0x108] sm:$0xff] }
 0x481   :  { %v5396_v7 = vadd.f32 %v2687_v13, %v1779_v25  ;;  %1669 = vst [vmem:[#allocation12 + $0x20] sm:$0xff] %v5394_v15  ;;  %1857 = vmatmul.f32.vlgmr.msra.gmra.mxu3 %v5394_v15  ;;  %v5551_v13 = vld [vmem:[#allocation11 + $0x138] sm:$0xff]  ;;  %v5570_v25 = vld [vmem:[#allocation11 + $0x128] sm:$0xff] }
 0x482   :  { %2101 = vmatpush.msra.mxu3 %v5400_v31  ;;  %6666 = vst [vmem:[#allocation60_spill] sm:$0xff] %v5551_v13 }
 0x483   :  { %1797 = vmatmul.f32.vlgmr.msra.gmra.mxu0 %v5396_v7  ;;  %1817 = vmatmul.f32.vlgmr.msra.gmra.mxu1 %v5396_v7  ;;  %6670 = vst [vmem:[#allocation62_spill] sm:$0xff] %v5562_v26 }
 0x484   :  { %1837 = vmatmul.f32.vlgmr.msra.gmra.mxu2 %v5396_v7  ;;  %1994 = vmatpush.msra.mxu0 %v5406_v49  ;;  %6673 = vst [vmem:[#allocation53_spill] sm:$0xff] %v5567_v4 }
 0x485   :  { %2061 = vmatpush.msra.mxu1 %v5409_v30  ;;  %2081 = vmatpush.msra.mxu2 %v5094_v42  ;;  %v5430_v42 = vld [vmem:[#allocation9 + $0x138] sm:$0xff]  ;;  %6674 = vst [vmem:[#allocation51_spill] sm:$0xff] %v5570_v25 }
 0x486   :  { %1995 = vmatpush.msra.mxu0 %v5413_v20  ;;  %2102 = vmatpush.msra.mxu3 %v5416_v58 }
 0x487   :  { %2062 = vmatpush.msra.mxu1 %v5419_v63  ;;  %2082 = vmatpush.msra.mxu2 %v5100_v33  ;;  %v5440_v33 = vld [vmem:[#allocation6 + $0x118] sm:$0xff] }
 0x488   :  { %1996 = vmatpush.msra.mxu0 %v5423_v59  ;;  %2103 = vmatpush.msra.mxu3 %v5426_v56 }
 0x489   :  { %1990 = vmatmul.f32.vlgmr.msrb.gmra.mxu3 %v5396_v7  ;;  %2063 = vmatpush.msra.mxu1 %v5430_v42 }
 0x48a   :  { %1997 = vmatpush.msra.mxu0 %v5433_v44  ;;  %2083 = vmatpush.msra.mxu2 %v5108_v23  ;;  %v5451_v23 = vld [vmem:[#allocation9 + $0x108] sm:$0xff] }
 0x48b   :  { %1877 = vmatmul.f32.vlgmr.msrb.gmra.mxu0 %v5394_v15  ;;  %1897 = vmatmul.f32.vlgmr.msrb.gmra.mxu1 %v5394_v15 }
 0x48c   :  { %1970 = vmatmul.f32.vlgmr.msrb.gmra.mxu2 %v5396_v7  ;;  %1998 = vmatpush.msra.mxu0 %v5440_v33 }
 0x48d   :  { %2064 = vmatpush.msra.mxu1 %v5443_v16  ;;  %2084 = vmatpush.msra.mxu2 %v5116_v2  ;;  %v5463_v2 = vld [vmem:[#allocation6 + $0xd0] sm:$0xff] }
 0x48e   :  { %1999 = vmatpush.msra.mxu0 %v5447_v27  ;;  %2104 = vmatpush.msra.mxu3 %v5120_v45 }
 0x48f   :  { %2065 = vmatpush.msra.mxu1 %v5451_v23  ;;  %2085 = vmatpush.msra.mxu2 %v5124_v3  ;;  %v5471_v3 = vld [vmem:[#allocation6 + $0xb8] sm:$0xff] }
 0x490   :  { %2000 = vmatpush.msra.mxu0 %v5455_v61  ;;  %2105 = vmatpush.msra.mxu3 %v5128_v62 }
 0x491   :  { %2066 = vmatpush.msra.mxu1 %v5459_v38  ;;  %2086 = vmatpush.msra.mxu2 %v5132_v60  ;;  %v5479_v60 = vld [vmem:[#allocation6 + $0xa0] sm:$0xff] }
 0x492   :  { %2001 = vmatpush.msra.mxu0 %v5463_v2  ;;  %2106 = vmatpush.msra.mxu3 %v5136_v39 }
 0x493   :  { %2067 = vmatpush.msra.mxu1 %v5467_v57  ;;  %2087 = vmatpush.msra.mxu2 %v5140_v22  ;;  %v5487_v22 = vld [vmem:[#allocation6 + $0x88] sm:$0xff] }
 0x494   :  { %2002 = vmatpush.msra.mxu0 %v5471_v3  ;;  %2107 = vmatpush.msra.mxu3 %v5144_v37 }
 0x495   :  { %2068 = vmatpush.msra.mxu1 %v5475_v54  ;;  %2088 = vmatpush.msra.mxu2 %v5148_v35  ;;  %v5495_v35 = vld [vmem:[#allocation6 + $0x70] sm:$0xff] }
 0x496   :  { %2003 = vmatpush.msra.mxu0 %v5479_v60  ;;  %2108 = vmatpush.msra.mxu3 %v5152_v28  ;;  %6652 = vst [vmem:[#allocation45_spill] sm:$0xff] %v5495_v35 }
 0x497   :  { %2069 = vmatpush.msra.mxu1 %v5483_v34  ;;  %2089 = vmatpush.msra.mxu2 %v5156_v0  ;;  %v5503_v0 = vld [vmem:[#allocation6 + $0x58] sm:$0xff] }
 0x498   :  { %2004 = vmatpush.msra.mxu0 %v5487_v22  ;;  %2109 = vmatpush.msra.mxu3 %v5160_v50  ;;  %6654 = vst [vmem:[#allocation59_spill] sm:$0xff] %v5503_v0 }
 0x499   :  { %2070 = vmatpush.msra.mxu1 %v5491_v17  ;;  %2090 = vmatpush.msra.mxu2 %v5164_v53  ;;  %v5511_v53 = vld [vmem:[#allocation6 + $0x40] sm:$0xff] }
 0x49a   :  { %2005 = vmatpush.msra.mxu0 %v5495_v35  ;;  %2110 = vmatpush.msra.mxu3 %v5168_v41  ;;  %6656 = vst [vmem:[#allocation46_spill] sm:$0xff] %v5511_v53 }
 0x49b   :  { %2071 = vmatpush.msra.mxu1 %v5499_v1  ;;  %2091 = vmatpush.msra.mxu2 %v5172_v11  ;;  %v5519_v11 = vld [vmem:[#allocation6 + $0x28] sm:$0xff] }
 0x49c   :  { %2006 = vmatpush.msra.mxu0 %v5503_v0  ;;  %2111 = vmatpush.msra.mxu3 %v5176_v46  ;;  %6658 = vst [vmem:[#allocation63_spill] sm:$0xff] %v5519_v11 }
 0x49d   :  { %2072 = vmatpush.msra.mxu1 %v5507_v9  ;;  %2092 = vmatpush.msra.mxu2 %v5180_v6  ;;  %v5527_v6 = vld [vmem:[#allocation6 + $0x10] sm:$0xff] }
 0x49e   :  { %2007 = vmatpush.msra.mxu0 %v5511_v53  ;;  %2112 = vmatpush.msra.mxu3 %v5184_v51  ;;  %6660 = vst [vmem:[#allocation49_spill] sm:$0xff] %v5527_v6 }
 0x49f   :  { %2073 = vmatpush.msra.mxu1 %v5515_v14  ;;  %2093 = vmatpush.msra.mxu2 %v5188_v10  ;;  %v5532_v10 = vld [vmem:[#allocation9 + $0x18] sm:$0xff] }
 0x4a0   :  { %2008 = vmatpush.msra.mxu0 %v5519_v11  ;;  %2113 = vmatpush.msra.mxu3 %v5192_v48  ;;  %6661 = vst [vmem:[#allocation56_spill] sm:$0xff] %v5532_v10  ;;  %v1951_v11 = vld [vmem:[#allocation3 + $0x90] sm:$0xff] }
 0x4a1   :  { %2074 = vmatpush.msra.mxu1 %v5523_v21  ;;  %2094 = vmatpush.msra.mxu2 %v5196_v8  ;;  %v5543_v8 = vld [vmem:[#allocation11 + $0x150] sm:$0xff] }
 0x4a2   :  { %2009 = vmatpush.msra.mxu0 %v5527_v6  ;;  %2114 = vmatpush.msra.mxu3 %v5200_v52  ;;  %6664 = vst [vmem:[#allocation94_spill] sm:$0xff] %v5543_v8 }
 0x4a3   :  { %2010 = vmatmul.f32.vlgmr.msra.gmra.mxu0 %v5396_v7  ;;  %2075 = vmatpush.msra.mxu1 %v5532_v10 }
 0x4a4   :  { %2121 = vmatpush.msrb.mxu0 %v5535_v47  ;;  %2095 = vmatpush.msra.mxu2 %v5206_v55  ;;  %v5554_v55 = vld [vmem:[#allocation11 + $0x158] sm:$0xff]  ;;  %v6717_v47 = vld [vmem:[#allocation18_spill] sm:$0xff] }
 0x4a5   :  { %2076 = vmatpush.msra.mxu1 %v5539_v40  ;;  %2115 = vmatpush.msra.mxu3 %v5210_v36  ;;  %6667 = vst [vmem:[#allocation73_spill] sm:$0xff] %v5554_v55 }
 0x4a6   :  { %2122 = vmatpush.msrb.mxu0 %v5543_v8  ;;  %2096 = vmatpush.msra.mxu2 %v5215_v24  ;;  %v6671_v24 = vld [vmem:[#allocation41_spill] sm:$0xff]  ;;  %v6715_v8 = vld [vmem:[#allocation52_spill] sm:$0xff] }
 0x4a7   :  { %2141 = vmatpush.msrb.mxu1 %v5546_v19  ;;  %2116 = vmatpush.msra.mxu3 %v5218_v5 }
 0x4a8   :  { %2123 = vmatpush.msrb.mxu0 %v5551_v13  ;;  %2161 = vmatpush.msrb.mxu2 %v5223_v32  ;;  %v6675_v32 = vld [vmem:[#allocation96_spill] sm:$0xff] }
 0x4a9   :  { %2142 = vmatpush.msrb.mxu1 %v5554_v55  ;;  %2234 = vmatpush.msrb.mxu3 %v6668_v29  ;;  %v6676_v29 = vld [vmem:[#allocation90_spill] sm:$0xff]  ;;  %v5609_v13 = vld [vmem:[#allocation11 + $0x78] sm:$0xff] }
 0x4aa   :  { %2124 = vmatpush.msrb.mxu0 %v5559_v18  ;;  %2162 = vmatpush.msrb.mxu2 %v6671_v24  ;;  %v5575_v18 = vld [vmem:[#allocation11 + $0xf0] sm:$0xff]  ;;  %v6679_v24 = vld [vmem:[#allocation97_spill] sm:$0xff]  ;;  %6693 = vst [vmem:[#allocation54_spill] sm:$0xff] %v5609_v13 }
 0x4ab   :  { %2143 = vmatpush.msrb.mxu1 %v5562_v26  ;;  %2235 = vmatpush.msrb.mxu3 %v6672_v12  ;;  %6677 = vst [vmem:[#allocation64_spill] sm:$0xff] %v5575_v18  ;;  %v5578_v26 = vld [vmem:[#allocation11 + $0x110] sm:$0xff] }
 0x4ac   :  { %2125 = vmatpush.msrb.mxu0 %v5567_v4  ;;  %2163 = vmatpush.msrb.mxu2 %v6675_v32  ;;  %6678 = vst [vmem:[#allocation36_spill] sm:$0xff] %v5578_v26  ;;  %v6680_v12 = vld [vmem:[#allocation91_spill] sm:$0xff]  ;;  %v5583_v4 = vld [vmem:[#allocation11 + $0xd8] sm:$0xff]  ;;  %v6683_v32 = vld [vmem:[#allocation98_spill] sm:$0xff] }
 0x4ad   :  { %2144 = vmatpush.msrb.mxu1 %v5570_v25  ;;  %2236 = vmatpush.msrb.mxu3 %v6676_v29  ;;  %6681 = vst [vmem:[#allocation66_spill] sm:$0xff] %v5583_v4  ;;  %v5586_v25 = vld [vmem:[#allocation11 + $0xf8] sm:$0xff]  ;;  %v3080_v29 = vld [vmem:[#allocation6 + $0x108] sm:$0xff]  ;;  %v3100_v55 = vld [vmem:[#allocation6 + $0x30] sm:$0xff] }
 0x4ae   :  { %2126 = vmatpush.msrb.mxu0 %v5575_v18  ;;  %2164 = vmatpush.msrb.mxu2 %v6679_v24  ;;  %6682 = vst [vmem:[#allocation75_spill] sm:$0xff] %v5586_v25  ;;  %v5590_v18 = vld [vmem:[#allocation11 + $0xc0] sm:$0xff]  ;;  %v6686_v24 = vld [vmem:[#allocation92_spill] sm:$0xff] }
 0x4af   :  { %2145 = vmatpush.msrb.mxu1 %v5578_v26  ;;  %2237 = vmatpush.msrb.mxu3 %v6680_v12  ;;  %6684 = vst [vmem:[#allocation68_spill] sm:$0xff] %v5590_v18  ;;  %v5593_v26 = vld [vmem:[#allocation11 + $0xe0] sm:$0xff]  ;;  %v3083_v12 = vld [vmem:[#allocation6 + $0xf0] sm:$0xff] }
 0x4b0   :  { %2127 = vmatpush.msrb.mxu0 %v5583_v4  ;;  %2165 = vmatpush.msrb.mxu2 %v6683_v32  ;;  %6685 = vst [vmem:[#allocation40_spill] sm:$0xff] %v5593_v26  ;;  %v5597_v4 = vld [vmem:[#allocation11 + $0xa8] sm:$0xff] }
 0x4b1   :  { %2146 = vmatpush.msrb.mxu1 %v5586_v25  ;;  %2238 = vmatpush.msrb.mxu3 %v3080_v29  ;;  %6687 = vst [vmem:[#allocation70_spill] sm:$0xff] %v5597_v4  ;;  %v5600_v25 = vld [vmem:[#allocation11 + $0xc8] sm:$0xff]  ;;  %v3086_v29 = vld [vmem:[#allocation6 + $0xd8] sm:$0xff] }
 0x4b2   :  { %2128 = vmatpush.msrb.mxu0 %v5590_v18  ;;  %2166 = vmatpush.msrb.mxu2 %v6686_v24  ;;  %6688 = vst [vmem:[#allocation77_spill] sm:$0xff] %v5600_v25  ;;  %v6689_v32 = vld [vmem:[#allocation26_spill] sm:$0xff]  ;;  %v5604_v18 = vld [vmem:[#allocation11 + $0x90] sm:$0xff]  ;;  %v6692_v24 = vld [vmem:[#allocation93_spill] sm:$0xff] }
 0x4b3   :  { %2147 = vmatpush.msrb.mxu1 %v5593_v26  ;;  %2239 = vmatpush.msrb.mxu3 %v3083_v12  ;;  %6690 = vst [vmem:[#allocation89_spill] sm:$0xff] %v5604_v18  ;;  %v6691_v26 = vld [vmem:[#allocation99_spill] sm:$0xff]  ;;  %v3088_v12 = vld [vmem:[#allocation6 + $0xc0] sm:$0xff] }
 0x4b4   :  { %2129 = vmatpush.msrb.mxu0 %v5597_v4  ;;  %2167 = vmatpush.msrb.mxu2 %v6689_v32  ;;  %v6694_v4 = vld [vmem:[#allocation100_spill] sm:$0xff]  ;;  %v3090_v32 = vld [vmem:[#allocation6 + $0xa8] sm:$0xff] }
 0x4b5   :  { %2148 = vmatpush.msrb.mxu1 %v5600_v25  ;;  %2240 = vmatpush.msrb.mxu3 %v3086_v29  ;;  %v6695_v25 = vld [vmem:[#allocation29_spill] sm:$0xff] }
 0x4b6   :  { %2130 = vmatpush.msrb.mxu0 %v5604_v18  ;;  %2168 = vmatpush.msrb.mxu2 %v6692_v24  ;;  %v5614_v29 = vld [vmem:[#allocation11 + $0x60] sm:$0xff]  ;;  %v3092_v24 = vld [vmem:[#allocation6 + $0x90] sm:$0xff] }
 0x4b7   :  { %2149 = vmatpush.msrb.mxu1 %v6691_v26  ;;  %2241 = vmatpush.msrb.mxu3 %v3088_v12  ;;  %6696 = vst [vmem:[#allocation85_spill] sm:$0xff] %v5614_v29  ;;  %v6697_v18 = vld [vmem:[#allocation101_spill] sm:$0xff]  ;;  %v6698_v26 = vld [vmem:[#allocation32_spill] sm:$0xff]  ;;  %v5619_v12 = vld [vmem:[#allocation11 + $0x48] sm:$0xff] }
 0x4b8   :  { %2131 = vmatpush.msrb.mxu0 %v5609_v13  ;;  %2169 = vmatpush.msrb.mxu2 %v6695_v25  ;;  %6699 = vst [vmem:[#allocation78_spill] sm:$0xff] %v5619_v12  ;;  %v6700_v13 = vld [vmem:[#allocation47_spill] sm:$0xff] }
 0x4b9   :  { %2150 = vmatpush.msrb.mxu1 %v6694_v4  ;;  %2242 = vmatpush.msrb.mxu3 %v3090_v32  ;;  %v6701_v4 = vld [vmem:[#allocation81_spill] sm:$0xff]  ;;  %v3094_v25 = vld [vmem:[#allocation6 + $0x78] sm:$0xff] }
 0x4ba   :  { %2132 = vmatpush.msrb.mxu0 %v5614_v29  ;;  %2170 = vmatpush.msrb.mxu2 %v6698_v26  ;;  %v5624_v32 = vld [vmem:[#allocation11 + $0x30] sm:$0xff]  ;;  %v3096_v26 = vld [vmem:[#allocation6 + $0x60] sm:$0xff] }
 0x4bb   :  { %2151 = vmatpush.msrb.mxu1 %v6697_v18  ;;  %2243 = vmatpush.msrb.mxu3 %v3092_v24  ;;  %6702 = vst [vmem:[#allocation86_spill] sm:$0xff] %v5624_v32  ;;  %v6703_v29 = vld [vmem:[#allocation31_spill] sm:$0xff]  ;;  %v6704_v18 = vld [vmem:[#allocation65_spill] sm:$0xff]  ;;  %v5629_v24 = vld [vmem:[#allocation11 + $0x18] sm:$0xff] }
 0x4bc   :  { %2133 = vmatpush.msrb.mxu0 %v5619_v12  ;;  %2171 = vmatpush.msrb.mxu2 %v6701_v4  ;;  %6705 = vst [vmem:[#allocation80_spill] sm:$0xff] %v5629_v24  ;;  %v6706_v12 = vld [vmem:[#allocation35_spill] sm:$0xff]  ;;  %v3098_v4 = vld [vmem:[#allocation6 + $0x48] sm:$0xff] }
 0x4bd   :  { %2152 = vmatpush.msrb.mxu1 %v6700_v13  ;;  %2244 = vmatpush.msrb.mxu3 %v3094_v25  ;;  %v6707_v13 = vld [vmem:[#allocation83_spill] sm:$0xff]  ;;  %v5634_v25 = vld [vmem:[#allocation11] sm:$0xff] }
 0x4be   :  { %2134 = vmatpush.msrb.mxu0 %v5624_v32  ;;  %2172 = vmatpush.msrb.mxu2 %v6704_v18  ;;  %6708 = vst [vmem:[#allocation87_spill] sm:$0xff] %v5634_v25  ;;  %v6709_v32 = vld [vmem:[#allocation50_spill] sm:$0xff]  ;;  %v6711_v18 = vld [vmem:[#allocation39_spill] sm:$0xff] }
 0x4bf   :  { %2153 = vmatpush.msrb.mxu1 %v6703_v29  ;;  %2245 = vmatpush.msrb.mxu3 %v3096_v26  ;;  %v6710_v29 = vld [vmem:[#allocation34_spill] sm:$0xff]  ;;  %v6712_v26 = vld [vmem:[#allocation71_spill] sm:$0xff] }
 0x4c0   :  { %2135 = vmatpush.msrb.mxu0 %v5629_v24  ;;  %2173 = vmatpush.msrb.mxu2 %v6707_v13  ;;  %v3101_v24 = vld [vmem:[#allocation6 + $0x158] sm:$0xff] }
 0x4c1   :  { %2154 = vmatpush.msrb.mxu1 %v6706_v12  ;;  %2246 = vmatpush.msrb.mxu3 %v3098_v4  ;;  %v6713_v12 = vld [vmem:[#allocation38_spill] sm:$0xff]  ;;  %v3102_v13 = vld [vmem:[#allocation6 + $0x18] sm:$0xff] }
 0x4c2   :  { %2136 = vmatpush.msrb.mxu0 %v5634_v25  ;;  %2174 = vmatpush.msrb.mxu2 %v6711_v18  ;;  %v6714_v4 = vld [vmem:[#allocation43_spill] sm:$0xff]  ;;  %v3103_v25 = vld [vmem:[#allocation6] sm:$0xff] }
 0x4c3   :  { %2155 = vmatpush.msrb.mxu1 %v6709_v32  ;;  %2247 = vmatpush.msrb.mxu3 %v3100_v55  ;;  %v3104_v32 = vld [vmem:[#allocation6 + $0x128] sm:$0xff]  ;;  %v3106_v18 = vld [vmem:[#allocation6 + $0xf8] sm:$0xff] }
 0x4c4   :  { %2254 = vmatpush.msra.mxu0 %v6710_v29  ;;  %2175 = vmatpush.msrb.mxu2 %v6713_v12  ;;  %v3105_v29 = vld [vmem:[#allocation6 + $0x110] sm:$0xff]  ;;  %v3108_v55 = vld [vmem:[#allocation6 + $0xc8] sm:$0xff]  ;;  %v3110_v12 = vld [vmem:[#allocation6 + $0x98] sm:$0xff] }
 0x4c5   :  { %2156 = vmatpush.msrb.mxu1 %v6712_v26  ;;  %2248 = vmatpush.msrb.mxu3 %v3102_v13  ;;  %v3107_v26 = vld [vmem:[#allocation6 + $0xe0] sm:$0xff] }
 0x4c6   :  { %2255 = vmatpush.msra.mxu0 %v3101_v24  ;;  %2176 = vmatpush.msrb.mxu2 %v6715_v8  ;;  %v3109_v24 = vld [vmem:[#allocation6 + $0xb0] sm:$0xff]  ;;  %v3111_v13 = vld [vmem:[#allocation6 + $0x80] sm:$0xff] }
 0x4c7   :  { %2249 = vmatpush.msrb.mxu3 %v3103_v25  ;;  %v3113_v8 = vld [vmem:[#allocation6 + $0x50] sm:$0xff]  ;;  %v3114_v25 = vld [vmem:[#allocation6 + $0x38] sm:$0xff] }
 0x4c8   :  { %2256 = vmatpush.msra.mxu0 %v6714_v4  ;;  %v3112_v4 = vld [vmem:[#allocation6 + $0x68] sm:$0xff] }
 0x4ca   :  { %2257 = vmatpush.msra.mxu0 %v3104_v32  ;;  %v3115_v32 = vld [vmem:[#allocation6 + $0x20] sm:$0xff] }
 0x4cc   :  { %2258 = vmatpush.msra.mxu0 %v3105_v29  ;;  %v3116_v29 = vld [vmem:[#allocation6 + $0x8] sm:$0xff] }
 0x4ce   :  { %2259 = vmatpush.msra.mxu0 %v3106_v18 }
 0x4d0   :  { %2260 = vmatpush.msra.mxu0 %v3107_v26  ;;  %v6716_v26 = vld [vmem:[#allocation79_spill] sm:$0xff] }
 0x4d2   :  { %2261 = vmatpush.msra.mxu0 %v3108_v55 }
 0x4d4   :  { %2262 = vmatpush.msra.mxu0 %v3109_v24 }
 0x4d6   :  { %2263 = vmatpush.msra.mxu0 %v3110_v12 }
 0x4d8   :  { %2264 = vmatpush.msra.mxu0 %v3111_v13 }
 0x4da   :  { %2265 = vmatpush.msra.mxu0 %v3112_v4 }
 0x4dc   :  { %2266 = vmatpush.msra.mxu0 %v3113_v8  ;;  %v1952_v8 = vld [vmem:[#allocation3 + $0x98] sm:$0xff] }
 0x4de   :  { %2267 = vmatpush.msra.mxu0 %v3114_v25 }
 0x4e0   :  { %2268 = vmatpush.msra.mxu0 %v3115_v32 }
 0x4e2   :  { %2269 = vmatpush.msra.mxu0 %v3116_v29 }
 0x500   :  { %v1798_v18 = vpop.f32.mrf.mxu0  ;;  %v1818_v55 = vpop.f32.mrf.mxu1 }
 0x501   :  { %v1799_v19 = vadd.f32 %v1798_v18, %v6716_v26  ;;  %v1819_v12 = vadd.f32 %v1818_v55, %v6717_v47 }
 0x504   :  { %v1858_v40 = vpop.f32.mrf.mxu3 }
 0x505   :  { %v1901_v24 = vadd.f32 %v1858_v40, %v1799_v19 }
 0x507   :  { %v2555_v10 = vmul.f32 -1.442695, %v1901_v24  ;;  %v1838_v13 = vpop.f32.mrf.mxu2 }
 0x508   :  { %v1878_v6 = vpop.f32.mrf.mxu0 }
 0x509   :  { %2688 = vpow2.f32 %v2555_v10  ;;  %v1902_v4 = vadd.f32 %v1878_v6, %v1819_v12 }
 0x50b   :  { %v2556_v21 = vmul.f32 -1.442695, %v1902_v4 }
 0x50c   :  { %v1991_v25 = vpop.f32.mrf.mxu3 }
 0x50d   :  { %2690 = vpow2.f32 %v2556_v21  ;;  %v2015_v32 = vadd.f32 %v1991_v25, %v1952_v8 }
 0x50f   :  { %v2689_v29 = vpop.eup %2688  ;;  %v2558_v14 = vmul.f32 -1.442695, %v2015_v32  ;;  %v1971_v53 = vpop.f32.mrf.mxu2 }
 0x510   :  { %v1909_v18 = vadd.f32 1.0, %v2689_v29  ;;  %v2014_v26 = vadd.f32 %v1971_v53, %v1951_v11 }
 0x511   :  { %2692 = vpow2.f32 %v2558_v14  ;;  %v1898_v14 = vpop.f32.mrf.mxu1 }
 0x512   :  { %2694 = vrcp.f32 %v1909_v18  ;;  %v2557_v19 = vmul.f32 -1.442695, %v2014_v26  ;;  %v1922_v25 = vand.u32 2147483648, %v1909_v18  ;;  %v1920_v53 = vand.u32 2147483647, %v1909_v18 }
 0x513   :  { %v2691_v40 = vpop.eup %2690  ;;  %vm1916_vm9 = vweird.f32 %v1909_v18 }
 0x514   :  { %v1910_v55 = vadd.f32 1.0, %v2691_v40  ;;  %2696 = vpow2.f32 %v2557_v19  ;;  %v1923_v40 = vor.u32 1.1754944e-38, %v1922_v25  ;;  %vm1921_vm11 = vcmp.eq.f32.partialorder %v1920_v53, 8.507059e+37 }
 0x516   :  { %2698 = vrcp.f32 %v1910_v55  ;;  %vm1931_vm14 = vweird.f32 %v1910_v55 }
 0x517   :  { %v2693_v10 = vpop.eup %2692 }
 0x518   :  { %v2695_v6 = vpop.eup %2694  ;;  %v5646_v21 = vadd.f32 1.0, %v2693_v10  ;;  %v6718_v10 = vld [vmem:[#allocation42_spill] sm:$0xff] }
 0x519   :  { %v1912_v24 = vmul.f32 %v2695_v6, %v1909_v18  ;;  %vm1917_vm8 = vweird.f32 %v2695_v6 }
 0x51a   :  { %v2697_v12 = vpop.eup %2696  ;;  %vm1918_vm10 = vmor %vm1916_vm9, %vm1917_vm8  ;;  %vm2044_vm5 = vweird.f32 %v5646_v21 }
 0x51b   :  { %v1913_v4 = vsub.f32 1.0, %v1912_v24  ;;  %v2022_v32 = vadd.f32 1.0, %v2697_v12  ;;  %v1941_v24 = vadd.f32 %v6718_v10, %v1898_v14  ;;  %v1839_v12 = vadd.f32 %v1838_v13, %v6562_v43 }
 0x51c   :  { %v2699_v8 = vpop.eup %2698 }
 0x51d   :  { %v1927_v47 = vmul.f32 %v2699_v8, %v1910_v55  ;;  %v1914_v29 = vmul.f32 %v2695_v6, %v1913_v4  ;;  %2700 = vrcp.f32 %v2022_v32  ;;  %vm1932_vm12 = vweird.f32 %v2699_v8 }
 0x51e   :  { %2702 = vrcp.f32 %v5646_v21  ;;  %v2035_v25 = vand.u32 2147483648, %v2022_v32  ;;  %v2033_v14 = vand.u32 2147483647, %v2022_v32  ;;  %vm5652_vm15 = vmor %vm1931_vm14, %vm1932_vm12  ;;  %vm2029_vm0 = vweird.f32 %v2022_v32 }
 0x51f   :  { %v1915_v11 = vadd.f32 %v2695_v6, %v1914_v29  ;;  %v1928_v26 = vsub.f32 1.0, %v1927_v47 }
 0x520   :  { %v2011_v13 = vpop.f32.mrf.mxu0  ;;  %vm2034_vm2 = vcmp.eq.f32.partialorder %v2033_v14, 8.507059e+37 }
 0x521   :  { %v1919_v19 = vsel %vm1918_vm10, %v2695_v6, %v1915_v11  ;;  %v1929_v1 = vmul.f32 %v2699_v8, %v1928_v26  ;;  %v1937_v6 = vand.u32 2147483648, %v1910_v55  ;;  %v1935_v11 = vand.u32 2147483647, %v1910_v55 }
 0x522   :  { %v1924_v9 = vsel %vm1921_vm11, %v1923_v40, %v1919_v19 }
 0x523   :  { %v1942_v0 = vmul.f32 %v1941_v24, %v1924_v9  ;;  %v2701_v4 = vpop.eup %2700  ;;  %v1930_v29 = vadd.f32 %v2699_v8, %v1929_v1  ;;  %v1938_v40 = vor.u32 1.1754944e-38, %v1937_v6  ;;  %v5658_v24 = vld [vmem:[#allocation8] ss:$0 sm:$0xff]  ;;  %vm1936_vm3 = vcmp.eq.f32.partialorder %v1935_v11, 8.507059e+37 }
 0x524   :  { %v2703_v35 = vpop.eup %2702  ;;  %v2025_v17 = vmul.f32 %v2701_v4, %v2022_v32  ;;  %vm2030_vm13 = vweird.f32 %v2701_v4  ;;  %v2054_v55 = vadd.f32 %v5658_v24, %v2011_v13  ;;  %v6740_v13 = vld [vmem:[#allocation67_spill] sm:$0xff] }
 0x525   :  { %v1943_v5 = vadd.f32 %v1942_v0, %v1839_v12  ;;  %v2040_v47 = vmul.f32 %v2703_v35, %v5646_v21  ;;  %vm2031_vm1 = vmor %vm2029_vm0, %vm2030_vm13  ;;  %v1934_v1 = vsel %vm5652_vm15, %v2699_v8, %v1930_v29  ;;  %vm2045_vm4 = vweird.f32 %v2703_v35 }
 0x526   :  { %v2026_v18 = vsub.f32 1.0, %v2025_v17  ;;  %v2036_v17 = vor.u32 1.1754944e-38, %v2035_v25  ;;  %vm2046_vm6 = vmor %vm2044_vm5, %vm2045_vm4 }
 0x527   :  { %2704 = vtanh.f32 %v1943_v5  ;;  %v2041_v5 = vsub.f32 1.0, %v2040_v47  ;;  %v1939_v47 = vsel %vm1936_vm3, %v1938_v40, %v1934_v1  ;;  %v3137_v1 = vld [vmem:[#allocation11 + $0x130] sm:$0xff]  ;;  %v6744_v40 = vld [vmem:[#allocation64_spill] sm:$0xff] }
 0x528   :  { %v2027_v53 = vmul.f32 %v2701_v4, %v2026_v18  ;;  %v1953_v18 = vld [vmem:[#allocation3 + $0xa0] sm:$0xff] }
 0x529   :  { %v2042_v43 = vmul.f32 %v2703_v35, %v2041_v5  ;;  %v6741_v5 = vld [vmem:[#allocation51_spill] sm:$0xff] }
 0x52a   :  { %v2028_v0 = vadd.f32 %v2701_v4, %v2027_v53 }
 0x52b   :  { %v2043_v8 = vadd.f32 %v2703_v35, %v2042_v43 }
 0x52c   :  { %v2032_v19 = vsel %vm2031_vm1, %v2701_v4, %v2028_v0  ;;  %v2050_v4 = vand.u32 2147483648, %v5646_v21  ;;  %v3136_v0 = vld [vmem:[#allocation11 + $0x148] sm:$0xff] }
 0x52d   :  { %v2705_v26 = vpop.eup %2704  ;;  %v2037_v53 = vsel %vm2034_vm2, %v2036_v17, %v2032_v19  ;;  %v2047_v29 = vsel %vm2046_vm6, %v2703_v35, %v2043_v8  ;;  %v3135_v35 = vld [vmem:[#allocation11 + $0x160] sm:$0xff]  ;;  %v3138_v19 = vld [vmem:[#allocation11 + $0x118] sm:$0xff]  ;;  %v6750_v8 = vld [vmem:[#allocation70_spill] sm:$0xff] }
 0x52e   :  { %v1945_v12 = vsub.f32 %v5394_v15, %v2705_v26  ;;  %v2055_v32 = vmul.f32 %v2054_v55, %v2037_v53  ;;  %v2048_v15 = vand.u32 2147483647, %v5646_v21  ;;  %v6739_v21 = vld [vmem:[#allocation62_spill] sm:$0xff]  ;;  %v6742_v17 = vld [vmem:[#allocation53_spill] sm:$0xff]  ;;  %v6745_v55 = vld [vmem:[#allocation75_spill] sm:$0xff] }
 0x52f   :  { %v6747_v53 = vld [vmem:[#allocation40_spill] sm:$0xff] }
 0x530   :  { %v1946_v25 = vmul.f32 %v1945_v12, %v1939_v47  ;;  %v2056_v10 = vadd.f32 %v2055_v32, %v1953_v18  ;;  %vm2049_vm7 = vcmp.eq.f32.partialorder %v2048_v15, 8.507059e+37  ;;  %v6746_v12 = vld [vmem:[#allocation66_spill] sm:$0xff]  ;;  %v3139_v18 = vld [vmem:[#allocation11 + $0x100] sm:$0xff]  ;;  %v6748_v32 = vld [vmem:[#allocation68_spill] sm:$0xff] }
 0x531   :  { %v3140_v47 = vld [vmem:[#allocation11 + $0xe8] sm:$0xff]  ;;  %v3142_v15 = vld [vmem:[#allocation11 + $0xb0] sm:$0xff] }
 0x532   :  { %v5662_v9 = vadd.f32 %v2705_v26, %v1946_v25  ;;  %2706 = vtanh.f32 %v2056_v10  ;;  %v2051_v10 = vor.u32 1.1754944e-38, %v2050_v4  ;;  %v6743_v26 = vld [vmem:[#allocation36_spill] sm:$0xff]  ;;  %v6749_v25 = vld [vmem:[#allocation77_spill] sm:$0xff]  ;;  %v3141_v4 = vld [vmem:[#allocation11 + $0xd0] sm:$0xff] }
 0x534   :  { %1949 = vst [vmem:[#allocation12 + $0x28] sm:$0xff] %v5662_v9  ;;  %2137 = vmatmul.f32.vlgmr.msrb.gmra.mxu0 %v5662_v9  ;;  %v2052_v14 = vsel %vm2049_vm7, %v2051_v10, %v2047_v29  ;;  %v6751_v29 = vld [vmem:[#allocation89_spill] sm:$0xff]  ;;  %v3144_v10 = vld [vmem:[#allocation11 + $0x98] sm:$0xff] }
 0x535   :  { %2381 = vmatpush.msrb.mxu0 %v5400_v31 }
 0x537   :  { %2382 = vmatpush.msrb.mxu0 %v5416_v58  ;;  %v6725_v58 = vld [vmem:[#allocation59_spill] sm:$0xff] }
 0x538   :  { %v2707_v6 = vpop.eup %2706 }
 0x539   :  { %2383 = vmatpush.msrb.mxu0 %v5426_v56  ;;  %v2058_v43 = vsub.f32 %v5396_v7, %v2707_v6  ;;  %v6721_v7 = vld [vmem:[#allocation57_spill] sm:$0xff]  ;;  %v6728_v56 = vld [vmem:[#allocation76_spill] sm:$0xff] }
 0x53b   :  { %2384 = vmatpush.msrb.mxu0 %v5120_v45  ;;  %v2059_v11 = vmul.f32 %v2058_v43, %v2052_v14  ;;  %v3118_v45 = vld [vmem:[#allocation9 + $0x170] sm:$0xff]  ;;  %v6752_v43 = vld [vmem:[#allocation54_spill] sm:$0xff]  ;;  %v3145_v14 = vld [vmem:[#allocation11 + $0xa0] sm:$0xff] }
 0x53d   :  { %2385 = vmatpush.msrb.mxu0 %v5128_v62  ;;  %v5675_v31 = vadd.f32 %v2707_v6, %v2059_v11  ;;  %v3119_v62 = vld [vmem:[#allocation9 + $0x158] sm:$0xff]  ;;  %v3146_v11 = vld [vmem:[#allocation11 + $0x80] sm:$0xff] }
 0x53e   :  { %v3143_v6 = vld [vmem:[#allocation11 + $0xb8] sm:$0xff] }
 0x53f   :  { %2386 = vmatpush.msrb.mxu0 %v5136_v39  ;;  %2077 = vmatmul.f32.vlgmr.msra.gmra.mxu1 %v5675_v31  ;;  %v3120_v39 = vld [vmem:[#allocation9 + $0x140] sm:$0xff] }
 0x540   :  { %2097 = vmatmul.f32.vlgmr.msra.gmra.mxu2 %v5675_v31  ;;  %2117 = vmatmul.f32.vlgmr.msra.gmra.mxu3 %v5675_v31 }
 0x541   :  { %2270 = vmatmul.f32.vlgmr.msra.gmra.mxu0 %v5675_v31  ;;  %2274 = vmatpush.msra.mxu1 %v5406_v49  ;;  %v6722_v49 = vld [vmem:[#allocation33_spill] sm:$0xff] }
 0x542   :  { %2341 = vmatpush.msra.mxu2 %v5409_v30  ;;  %2361 = vmatpush.msra.mxu3 %v3118_v45  ;;  %v6723_v30 = vld [vmem:[#allocation45_spill] sm:$0xff] }
 0x543   :  { %2387 = vmatpush.msrb.mxu0 %v5144_v37  ;;  %2275 = vmatpush.msra.mxu1 %v5413_v20  ;;  %v3121_v37 = vld [vmem:[#allocation9 + $0x128] sm:$0xff]  ;;  %v6724_v20 = vld [vmem:[#allocation61_spill] sm:$0xff] }
 0x544   :  { %2342 = vmatpush.msra.mxu2 %v5419_v63  ;;  %2362 = vmatpush.msra.mxu3 %v3119_v62  ;;  %v6726_v63 = vld [vmem:[#allocation95_spill] sm:$0xff]  ;;  %v6753_v45 = vld [vmem:[#allocation85_spill] sm:$0xff]  ;;  %v3147_v62 = vld [vmem:[#allocation11 + $0x88] sm:$0xff] }
 0x545   :  { %2388 = vmatpush.msrb.mxu0 %v5152_v28  ;;  %2276 = vmatpush.msra.mxu1 %v5423_v59  ;;  %v3122_v28 = vld [vmem:[#allocation9 + $0x110] sm:$0xff]  ;;  %v3129_v59 = vld [vmem:[#allocation9 + $0x68] sm:$0xff] }
 0x546   :  { %2343 = vmatpush.msra.mxu2 %v5430_v42  ;;  %2363 = vmatpush.msra.mxu3 %v3120_v39  ;;  %v3130_v42 = vld [vmem:[#allocation9 + $0x50] sm:$0xff]  ;;  %v3148_v39 = vld [vmem:[#allocation11 + $0x68] sm:$0xff] }
 0x547   :  { %2389 = vmatpush.msrb.mxu0 %v5160_v50  ;;  %2277 = vmatpush.msra.mxu1 %v5433_v44  ;;  %v3123_v50 = vld [vmem:[#allocation9 + $0xf8] sm:$0xff]  ;;  %v6729_v44 = vld [vmem:[#allocation63_spill] sm:$0xff] }
 0x548   :  { %2177 = vmatmul.f32.vlgmr.msrb.gmra.mxu2 %v5662_v9  ;;  %2157 = vmatmul.f32.vlgmr.msrb.gmra.mxu1 %v5662_v9 }
 0x549   :  { %2250 = vmatmul.f32.vlgmr.msrb.gmra.mxu3 %v5675_v31  ;;  %2278 = vmatpush.msra.mxu1 %v5440_v33  ;;  %v6730_v33 = vld [vmem:[#allocation55_spill] sm:$0xff] }
 0x54a   :  { %2344 = vmatpush.msra.mxu2 %v5443_v16  ;;  %2364 = vmatpush.msra.mxu3 %v3121_v37  ;;  %v3131_v16 = vld [vmem:[#allocation9 + $0x38] sm:$0xff]  ;;  %v6754_v37 = vld [vmem:[#allocation78_spill] sm:$0xff] }
 0x54b   :  { %2390 = vmatpush.msrb.mxu0 %v5168_v41  ;;  %2279 = vmatpush.msra.mxu1 %v5447_v27  ;;  %v3124_v41 = vld [vmem:[#allocation9 + $0xe0] sm:$0xff] }
 0x54c   :  { %2345 = vmatpush.msra.mxu2 %v5451_v23  ;;  %2365 = vmatpush.msra.mxu3 %v3122_v28  ;;  %v6731_v27 = vld [vmem:[#allocation49_spill] sm:$0xff]  ;;  %v6732_v23 = vld [vmem:[#allocation56_spill] sm:$0xff]  ;;  %v3149_v28 = vld [vmem:[#allocation11 + $0x70] sm:$0xff] }
 0x54d   :  { %2391 = vmatpush.msrb.mxu0 %v5176_v46  ;;  %2280 = vmatpush.msra.mxu1 %v5455_v61  ;;  %v3125_v46 = vld [vmem:[#allocation9 + $0xc8] sm:$0xff]  ;;  %v3132_v61 = vld [vmem:[#allocation9 + $0x20] sm:$0xff] }
 0x54e   :  { %2346 = vmatpush.msra.mxu2 %v5459_v38  ;;  %2366 = vmatpush.msra.mxu3 %v3123_v50  ;;  %v6733_v38 = vld [vmem:[#allocation69_spill] sm:$0xff]  ;;  %v3150_v50 = vld [vmem:[#allocation11 + $0x50] sm:$0xff] }
 0x54f   :  { %2392 = vmatpush.msrb.mxu0 %v5184_v51  ;;  %2281 = vmatpush.msra.mxu1 %v5463_v2  ;;  %v3126_v51 = vld [vmem:[#allocation9 + $0xb0] sm:$0xff]  ;;  %v6734_v2 = vld [vmem:[#allocation58_spill] sm:$0xff] }
 0x550   :  { %2347 = vmatpush.msra.mxu2 %v5467_v57  ;;  %2367 = vmatpush.msra.mxu3 %v3124_v41  ;;  %v3133_v57 = vld [vmem:[#allocation9 + $0x8] sm:$0xff] }
 0x551   :  { %2393 = vmatpush.msrb.mxu0 %v5192_v48  ;;  %2282 = vmatpush.msra.mxu1 %v5471_v3  ;;  %v3127_v48 = vld [vmem:[#allocation9 + $0x98] sm:$0xff]  ;;  %v6755_v41 = vld [vmem:[#allocation86_spill] sm:$0xff] }
 0x552   :  { %2348 = vmatpush.msra.mxu2 %v5475_v54  ;;  %2368 = vmatpush.msra.mxu3 %v3125_v46  ;;  %v6735_v3 = vld [vmem:[#allocation48_spill] sm:$0xff]  ;;  %v6736_v54 = vld [vmem:[#allocation94_spill] sm:$0xff] }
 0x553   :  { %2394 = vmatpush.msrb.mxu0 %v5200_v52  ;;  %2283 = vmatpush.msra.mxu1 %v5479_v60  ;;  %v3128_v52 = vld [vmem:[#allocation9 + $0x80] sm:$0xff]  ;;  %v3134_v60 = vld [vmem:[#allocation11 + $0x178] sm:$0xff] }
 0x554   :  { %2349 = vmatpush.msra.mxu2 %v5483_v34  ;;  %2369 = vmatpush.msra.mxu3 %v3126_v51  ;;  %v6737_v34 = vld [vmem:[#allocation73_spill] sm:$0xff]  ;;  %v3151_v46 = vld [vmem:[#allocation11 + $0x58] sm:$0xff] }
 0x555   :  { %2395 = vmatpush.msrb.mxu0 %v5210_v36  ;;  %2284 = vmatpush.msra.mxu1 %v5487_v22  ;;  %v6727_v36 = vld [vmem:[#allocation46_spill] sm:$0xff]  ;;  %v6738_v22 = vld [vmem:[#allocation60_spill] sm:$0xff] }
 0x556   :  { %2350 = vmatpush.msra.mxu2 %v6721_v7  ;;  %2370 = vmatpush.msra.mxu3 %v3127_v48  ;;  %v3152_v51 = vld [vmem:[#allocation11 + $0x38] sm:$0xff]  ;;  %v3153_v48 = vld [vmem:[#allocation11 + $0x40] sm:$0xff] }
 0x557   :  { %2396 = vmatpush.msrb.mxu0 %v6722_v49  ;;  %2285 = vmatpush.msra.mxu1 %v6723_v30  ;;  %v6756_v7 = vld [vmem:[#allocation80_spill] sm:$0xff]  ;;  %v3154_v49 = vld [vmem:[#allocation11 + $0x20] sm:$0xff]  ;;  %v6757_v30 = vld [vmem:[#allocation87_spill] sm:$0xff] }
 0x558   :  { %2351 = vmatpush.msra.mxu2 %v6724_v20  ;;  %2371 = vmatpush.msra.mxu3 %v3128_v52  ;;  %v3155_v20 = vld [vmem:[#allocation11 + $0x28] sm:$0xff] }
 0x559   :  { %2286 = vmatpush.msra.mxu1 %v6725_v58  ;;  %v3156_v52 = vld [vmem:[#allocation11 + $0x8] sm:$0xff]  ;;  %v3157_v58 = vld [vmem:[#allocation11 + $0x10] sm:$0xff] }
 0x55a   :  { %2352 = vmatpush.msra.mxu2 %v6726_v63  ;;  %2372 = vmatpush.msra.mxu3 %v3129_v59 }
 0x55b   :  { %2287 = vmatpush.msra.mxu1 %v6727_v36  ;;  %v6758_v36 = vld [vmem:[#allocation79_spill] sm:$0xff] }
 0x55c   :  { %2353 = vmatpush.msra.mxu2 %v6728_v56  ;;  %2373 = vmatpush.msra.mxu3 %v3130_v42 }
 0x55d   :  { %2288 = vmatpush.msra.mxu1 %v6729_v44 }
 0x55e   :  { %2354 = vmatpush.msra.mxu2 %v6730_v33  ;;  %2374 = vmatpush.msra.mxu3 %v3131_v16  ;;  %v2232_v16 = vld [vmem:[#allocation3 + $0xb0] sm:$0xff] }
 0x55f   :  { %2289 = vmatpush.msra.mxu1 %v6731_v27 }
 0x560   :  { %2355 = vmatpush.msra.mxu2 %v6732_v23  ;;  %2290 = vmatmul.f32.vlgmr.msra.gmra.mxu1 %v5675_v31  ;;  %v6759_v23 = vld [vmem:[#allocation18_spill] sm:$0xff] }
 0x561   :  { %2375 = vmatpush.msra.mxu3 %v3132_v61  ;;  %2401 = vmatpush.msrb.mxu1 %v6733_v38 }
 0x562   :  { %2356 = vmatpush.msra.mxu2 %v6734_v2 }
 0x563   :  { %2376 = vmatpush.msra.mxu3 %v3133_v57  ;;  %2402 = vmatpush.msrb.mxu1 %v6736_v54 }
 0x564   :  { %2421 = vmatpush.msrb.mxu2 %v6735_v3 }
 0x565   :  { %2441 = vmatpush.msrb.mxu3 %v3134_v60  ;;  %2403 = vmatpush.msrb.mxu1 %v6738_v22 }
 0x566   :  { %2422 = vmatpush.msrb.mxu2 %v6737_v34 }
 0x567   :  { %2442 = vmatpush.msrb.mxu3 %v3135_v35  ;;  %2404 = vmatpush.msrb.mxu1 %v6740_v13  ;;  %v2231_v35 = vld [vmem:[#allocation3 + $0xa8] sm:$0xff] }
 0x568   :  { %2423 = vmatpush.msrb.mxu2 %v6739_v21 }
 0x569   :  { %2443 = vmatpush.msrb.mxu3 %v3136_v0  ;;  %2405 = vmatpush.msrb.mxu1 %v6742_v17 }
 0x56a   :  { %2424 = vmatpush.msrb.mxu2 %v6741_v5 }
 0x56b   :  { %2444 = vmatpush.msrb.mxu3 %v3137_v1  ;;  %2406 = vmatpush.msrb.mxu1 %v6744_v40 }
 0x56c   :  { %2425 = vmatpush.msrb.mxu2 %v6743_v26 }
 0x56d   :  { %2445 = vmatpush.msrb.mxu3 %v3138_v19  ;;  %2407 = vmatpush.msrb.mxu1 %v6746_v12 }
 0x56e   :  { %2426 = vmatpush.msrb.mxu2 %v6745_v55 }
 0x56f   :  { %2446 = vmatpush.msrb.mxu3 %v3139_v18  ;;  %2408 = vmatpush.msrb.mxu1 %v6748_v32 }
 0x570   :  { %2427 = vmatpush.msrb.mxu2 %v6747_v53 }
 0x571   :  { %2447 = vmatpush.msrb.mxu3 %v3140_v47  ;;  %2409 = vmatpush.msrb.mxu1 %v6750_v8 }
 0x572   :  { %2428 = vmatpush.msrb.mxu2 %v6749_v25 }
 0x573   :  { %2448 = vmatpush.msrb.mxu3 %v3141_v4  ;;  %2410 = vmatpush.msrb.mxu1 %v6751_v29 }
 0x574   :  { %2429 = vmatpush.msrb.mxu2 %v3142_v15 }
 0x575   :  { %2449 = vmatpush.msrb.mxu3 %v3143_v6  ;;  %2411 = vmatpush.msrb.mxu1 %v6752_v43  ;;  %v6760_v43 = vld [vmem:[#allocation42_spill] sm:$0xff] }
 0x576   :  { %2430 = vmatpush.msrb.mxu2 %v3144_v10 }
 0x577   :  { %2450 = vmatpush.msrb.mxu3 %v3145_v14  ;;  %2412 = vmatpush.msrb.mxu1 %v6753_v45  ;;  %v6761_v45 = vld [vmem:[#allocation28_spill] sm:$0xff] }
 0x578   :  { %2431 = vmatpush.msrb.mxu2 %v3146_v11 }
 0x579   :  { %2451 = vmatpush.msrb.mxu3 %v3147_v62  ;;  %2413 = vmatpush.msrb.mxu1 %v6754_v37 }
 0x57a   :  { %2432 = vmatpush.msrb.mxu2 %v3148_v39 }
 0x57b   :  { %2452 = vmatpush.msrb.mxu3 %v3149_v28  ;;  %2414 = vmatpush.msrb.mxu1 %v6755_v41 }
 0x57c   :  { %2433 = vmatpush.msrb.mxu2 %v3150_v50 }
 0x57d   :  { %2453 = vmatpush.msrb.mxu3 %v3151_v46  ;;  %2415 = vmatpush.msrb.mxu1 %v6756_v7 }
 0x57e   :  { %2434 = vmatpush.msrb.mxu2 %v3152_v51 }
 0x57f   :  { %2454 = vmatpush.msrb.mxu3 %v3153_v48  ;;  %2416 = vmatpush.msrb.mxu1 %v6757_v30 }
 0x580   :  { %2435 = vmatpush.msrb.mxu2 %v3154_v49 }
 0x581   :  { %2455 = vmatpush.msrb.mxu3 %v3155_v20 }
 0x582   :  { %2436 = vmatpush.msrb.mxu2 %v3156_v52 }
 0x583   :  { %2456 = vmatpush.msrb.mxu3 %v3157_v58 }
 0x5b1   :  { %v2138_v63 = vpop.f32.mrf.mxu0 }
 0x5bc   :  { %v2078_v59 = vpop.f32.mrf.mxu1 }
 0x5bd   :  { %v2079_v56 = vadd.f32 %v2078_v59, %v6758_v36 }
 0x5be   :  { %v2271_v27 = vpop.f32.mrf.mxu0 }
 0x5bf   :  { %v2181_v42 = vadd.f32 %v2138_v63, %v2079_v56  ;;  %v2295_v57 = vadd.f32 %v2271_v27, %v2232_v16 }
 0x5c1   :  { %v2559_v44 = vmul.f32 -1.442695, %v2181_v42  ;;  %v2562_v22 = vmul.f32 -1.442695, %v2295_v57  ;;  %v2233_v57 = vld [vmem:[#allocation3 + $0xb8] sm:$0xff] }
 0x5c3   :  { %v2098_v33 = vpop.f32.mrf.mxu2  ;;  %2708 = vpow2.f32 %v2559_v44  ;;  %v2118_v38 = vpop.f32.mrf.mxu3 }
 0x5c4   :  { %v2099_v61 = vadd.f32 %v2098_v33, %v6759_v23  ;;  %v2119_v62 = vadd.f32 %v2118_v38, %v6761_v45 }
 0x5c5   :  { %v2158_v2 = vpop.f32.mrf.mxu1 }
 0x5c6   :  { %v2182_v3 = vadd.f32 %v2158_v2, %v2099_v61 }
 0x5c8   :  { %v2560_v54 = vmul.f32 -1.442695, %v2182_v3 }
 0x5c9   :  { %v2709_v60 = vpop.eup %2708 }
 0x5ca   :  { %v2189_v34 = vadd.f32 1.0, %v2709_v60  ;;  %2710 = vpow2.f32 %v2560_v54 }
 0x5cb   :  { %v2178_v8 = vpop.f32.mrf.mxu2 }
 0x5cc   :  { %v2251_v21 = vpop.f32.mrf.mxu3  ;;  %2712 = vrcp.f32 %v2189_v34  ;;  %v2202_v18 = vand.u32 2147483648, %v2189_v34  ;;  %v2200_v32 = vand.u32 2147483647, %v2189_v34  ;;  %vm2196_vm9 = vweird.f32 %v2189_v34 }
 0x5cd   :  { %v2294_v13 = vadd.f32 %v2251_v21, %v2231_v35  ;;  %2714 = vpow2.f32 %v2562_v22  ;;  %v2221_v14 = vadd.f32 %v6760_v43, %v2178_v8 }
 0x5ce   :  { %v2203_v29 = vor.u32 1.1754944e-38, %v2202_v18  ;;  %vm2201_vm11 = vcmp.eq.f32.partialorder %v2200_v32, 8.507059e+37 }
 0x5cf   :  { %v2561_v0 = vmul.f32 -1.442695, %v2294_v13 }
 0x5d0   :  { %v2711_v5 = vpop.eup %2710 }
 0x5d1   :  { %v2190_v17 = vadd.f32 1.0, %v2711_v5  ;;  %2716 = vpow2.f32 %v2561_v0 }
 0x5d2   :  { %v2713_v1 = vpop.eup %2712 }
 0x5d3   :  { %2718 = vrcp.f32 %v2190_v17  ;;  %v2715_v26 = vpop.eup %2714  ;;  %v2192_v40 = vmul.f32 %v2713_v1, %v2189_v34  ;;  %vm2197_vm8 = vweird.f32 %v2713_v1  ;;  %v2215_v49 = vand.u32 2147483647, %v2190_v17 }
 0x5d4   :  { %v5754_v12 = vadd.f32 1.0, %v2715_v26  ;;  %vm2198_vm10 = vmor %vm2196_vm9, %vm2197_vm8  ;;  %v2217_v30 = vand.u32 2147483648, %v2190_v17  ;;  %vm2211_vm13 = vweird.f32 %v2190_v17 }
 0x5d5   :  { %v2193_v19 = vsub.f32 1.0, %v2192_v40  ;;  %vm2216_vm1 = vcmp.eq.f32.partialorder %v2215_v49, 8.507059e+37 }
 0x5d6   :  { %v2218_v16 = vor.u32 1.1754944e-38, %v2217_v30  ;;  %vm2324_vm5 = vweird.f32 %v5754_v12 }
 0x5d7   :  { %v2717_v55 = vpop.eup %2716  ;;  %v2194_v53 = vmul.f32 %v2713_v1, %v2193_v19 }
 0x5d8   :  { %v2302_v47 = vadd.f32 1.0, %v2717_v55 }
 0x5d9   :  { %v2719_v25 = vpop.eup %2718  ;;  %v2195_v15 = vadd.f32 %v2713_v1, %v2194_v53 }
 0x5da   :  { %v2207_v4 = vmul.f32 %v2719_v25, %v2190_v17  ;;  %2720 = vrcp.f32 %v2302_v47  ;;  %vm2212_vm12 = vweird.f32 %v2719_v25  ;;  %v2315_v20 = vand.u32 2147483648, %v2302_v47 }
 0x5db   :  { %2722 = vrcp.f32 %v5754_v12  ;;  %v2199_v10 = vsel %vm2198_vm10, %v2713_v1, %v2195_v15  ;;  %v2313_v58 = vand.u32 2147483647, %v2302_v47  ;;  %vm5760_vm15 = vmor %vm2211_vm13, %vm2212_vm12  ;;  %vm2309_vm0 = vweird.f32 %v2302_v47 }
 0x5dc   :  { %v2208_v6 = vsub.f32 1.0, %v2207_v4  ;;  %v2204_v11 = vsel %vm2201_vm11, %v2203_v29, %v2199_v10  ;;  %v2316_v27 = vor.u32 1.1754944e-38, %v2315_v20 }
 0x5dd   :  { %v2222_v39 = vmul.f32 %v2221_v14, %v2204_v11  ;;  %v2291_v59 = vpop.f32.mrf.mxu1  ;;  %vm2314_vm3 = vcmp.eq.f32.partialorder %v2313_v58, 8.507059e+37 }
 0x5de   :  { %v2209_v37 = vmul.f32 %v2719_v25, %v2208_v6  ;;  %v2334_v2 = vadd.f32 %v5658_v24, %v2291_v59  ;;  %v2328_v24 = vand.u32 2147483647, %v5754_v12 }
 0x5df   :  { %v2223_v50 = vadd.f32 %v2222_v39, %v2119_v62 }
 0x5e0   :  { %v2721_v28 = vpop.eup %2720  ;;  %v2210_v51 = vadd.f32 %v2719_v25, %v2209_v37  ;;  %vm2329_vm7 = vcmp.eq.f32.partialorder %v2328_v24, 8.507059e+37 }
 0x5e1   :  { %v2723_v41 = vpop.eup %2722  ;;  %v2305_v46 = vmul.f32 %v2721_v28, %v2302_v47  ;;  %2724 = vtanh.f32 %v2223_v50  ;;  %vm2310_vm14 = vweird.f32 %v2721_v28 }
 0x5e2   :  { %v2320_v48 = vmul.f32 %v2723_v41, %v5754_v12  ;;  %v2214_v42 = vsel %vm5760_vm15, %v2719_v25, %v2210_v51  ;;  %vm2311_vm2 = vmor %vm2309_vm0, %vm2310_vm14  ;;  %vm2325_vm4 = vweird.f32 %v2723_v41 }
 0x5e3   :  { %v2306_v7 = vsub.f32 1.0, %v2305_v46  ;;  %v2219_v54 = vsel %vm2216_vm1, %v2218_v16, %v2214_v42  ;;  %vm2326_vm6 = vmor %vm2324_vm5, %vm2325_vm4 }
 0x5e4   :  { %v2321_v33 = vsub.f32 1.0, %v2320_v48  ;;  %v3158_v48 = vld [vmem:[%s5794_s6] ss:$0 sm:$0xff]  ;;  %s3319_s6 = smov [#allocation12]  }
 0x5e5   :  { %v2307_v52 = vmul.f32 %v2721_v28, %v2306_v7  ;;  %s2516_s9 = sshll.u32 %s3319_s6, 4  ;;  %s2517_s9 = int_to_ptr.vmem [resolvable:$true] %s2516_s9 }
 0x5e6   :  { %v2322_v22 = vmul.f32 %v2723_v41, %v2321_v33 }
 0x5e7   :  { %v2308_v56 = vadd.f32 %v2721_v28, %v2307_v52  ;;  %v2725_v44 = vpop.eup %2724 }
 0x5e8   :  { %v2225_v61 = vsub.f32 %v5662_v9, %v2725_v44  ;;  %v2323_v13 = vadd.f32 %v2723_v41, %v2322_v22  ;;  %v2330_v9 = vand.u32 2147483648, %v5754_v12 }
 0x5e9   :  { %v2312_v38 = vsel %vm2311_vm2, %v2721_v28, %v2308_v56 }
 0x5ea   :  { %v2317_v3 = vsel %vm2314_vm3, %v2316_v27, %v2312_v38  ;;  %v2226_v34 = vmul.f32 %v2225_v61, %v2219_v54  ;;  %v2327_v0 = vsel %vm2326_vm6, %v2723_v41, %v2323_v13  ;;  %v2331_v17 = vor.u32 1.1754944e-38, %v2330_v9 }
 0x5eb   :  { %v2335_v60 = vmul.f32 %v2334_v2, %v2317_v3 }
 0x5ec   :  { %v5768_v21 = vadd.f32 %v2725_v44, %v2226_v34  ;;  %v2332_v26 = vsel %vm2329_vm7, %v2331_v17, %v2327_v0 }
 0x5ed   :  { %v2336_v35 = vadd.f32 %v2335_v60, %v2233_v57 }
 0x5ee   :  { %2229 = vst [vmem:[#allocation12 + $0x30] sm:$0xff] %v5768_v21  ;;  %2417 = vmatmul.f32.vlgmr.msrb.gmra.mxu1 %v5768_v21 }
 0x5ef   :  { %2726 = vtanh.f32 %v2336_v35 }
 0x5f5   :  { %v2727_v5 = vpop.eup %2726 }
 0x5f6   :  { %v2338_v1 = vsub.f32 %v5675_v31, %v2727_v5 }
 0x5f8   :  { %v2339_v40 = vmul.f32 %v2338_v1, %v2332_v26 }
 0x5fa   :  { %v2340_v19 = vadd.f32 %v2727_v5, %v2339_v40 }
 0x5fc   :  { %2357 = vmatmul.f32.vlgmr.msra.gmra.mxu2 %v2340_v19  ;;  %2377 = vmatmul.f32.vlgmr.msra.gmra.mxu3 %v2340_v19 }
 0x5fd   :  { %2397 = vmatmul.f32.vlgmr.msrb.gmra.mxu0 %v2340_v19 }
 0x604   :  { %2437 = vmatmul.f32.vlgmr.msrb.gmra.mxu2 %v5768_v21  ;;  %2457 = vmatmul.f32.vlgmr.msrb.gmra.mxu3 %v5768_v21 }
 0x66b   :  { %v2418_v18 = vpop.f32.mrf.mxu1 }
 0x67a   :  { %v2398_v41 = vpop.f32.mrf.mxu0 }
 0x67b   :  { %v2399_v20 = vadd.f32 %v2398_v41, %v6761_v45 }
 0x67f   :  { %v2358_v55 = vpop.f32.mrf.mxu2  ;;  %v2378_v32 = vpop.f32.mrf.mxu3 }
 0x680   :  { %v2359_v12 = vadd.f32 %v2358_v55, %v6758_v36  ;;  %v2379_v31 = vadd.f32 %v2378_v32, %v6759_v23 }
 0x682   :  { %v2461_v53 = vadd.f32 %v2418_v18, %v2359_v12 }
 0x684   :  { %v2563_v47 = vmul.f32 -1.442695, %v2461_v53 }
 0x686   :  { %2728 = vpow2.f32 %v2563_v47 }
 0x687   :  { %v2438_v25 = vpop.f32.mrf.mxu2  ;;  %v2458_v28 = vpop.f32.mrf.mxu3 }
 0x688   :  { %v2462_v8 = vadd.f32 %v2438_v25, %v2379_v31  ;;  %v2501_v49 = vadd.f32 %v3158_v48, %v2458_v28 }
 0x68a   :  { %v2564_v4 = vmul.f32 -1.442695, %v2462_v8 }
 0x68c   :  { %v2729_v15 = vpop.eup %2728  ;;  %2730 = vpow2.f32 %v2564_v4 }
 0x68d   :  { %v2469_v29 = vadd.f32 1.0, %v2729_v15 }
 0x68f   :  { %2732 = vrcp.f32 %v2469_v29  ;;  %v2482_v11 = vand.u32 2147483648, %v2469_v29  ;;  %v2480_v39 = vand.u32 2147483647, %v2469_v29  ;;  %vm2476_vm9 = vweird.f32 %v2469_v29 }
 0x691   :  { %v2483_v46 = vor.u32 1.1754944e-38, %v2482_v11  ;;  %vm2481_vm11 = vcmp.eq.f32.partialorder %v2480_v39, 8.507059e+37 }
 0x692   :  { %v2731_v6 = vpop.eup %2730 }
 0x693   :  { %v2470_v10 = vadd.f32 1.0, %v2731_v6 }
 0x695   :  { %v2733_v43 = vpop.eup %2732  ;;  %2734 = vrcp.f32 %v2470_v10  ;;  %v2497_v56 = vand.u32 2147483648, %v2470_v10  ;;  %vm2491_vm13 = vweird.f32 %v2470_v10  ;;  %v2495_v42 = vand.u32 2147483647, %v2470_v10 }
 0x696   :  { %v2472_v14 = vmul.f32 %v2733_v43, %v2469_v29  ;;  %vm2477_vm8 = vweird.f32 %v2733_v43 }
 0x697   :  { %vm2478_vm10 = vmor %vm2476_vm9, %vm2477_vm8  ;;  %v2498_v16 = vor.u32 1.1754944e-38, %v2497_v56  ;;  %vm2496_vm15 = vcmp.eq.f32.partialorder %v2495_v42, 8.507059e+37 }
 0x698   :  { %v2473_v36 = vsub.f32 1.0, %v2472_v14 }
 0x69a   :  { %v2474_v62 = vmul.f32 %v2733_v43, %v2473_v36 }
 0x69b   :  { %v2735_v37 = vpop.eup %2734 }
 0x69c   :  { %v2487_v23 = vmul.f32 %v2735_v37, %v2470_v10  ;;  %v2475_v50 = vadd.f32 %v2733_v43, %v2474_v62  ;;  %vm2492_vm12 = vweird.f32 %v2735_v37 }
 0x69d   :  { %vm2493_vm14 = vmor %vm2491_vm13, %vm2492_vm12 }
 0x69e   :  { %v2488_v51 = vsub.f32 1.0, %v2487_v23  ;;  %v2479_v7 = vsel %vm2478_vm10, %v2733_v43, %v2475_v50 }
 0x69f   :  { %v2484_v30 = vsel %vm2481_vm11, %v2483_v46, %v2479_v7 }
 0x6a0   :  { %v2502_v52 = vmul.f32 %v2501_v49, %v2484_v30  ;;  %v2489_v58 = vmul.f32 %v2735_v37, %v2488_v51 }
 0x6a2   :  { %v2503_v63 = vadd.f32 %v2502_v52, %v2399_v20  ;;  %v2490_v59 = vadd.f32 %v2735_v37, %v2489_v58 }
 0x6a4   :  { %2736 = vtanh.f32 %v2503_v63  ;;  %v2494_v44 = vsel %vm2493_vm14, %v2735_v37, %v2490_v59 }
 0x6a5   :  { %v2499_v45 = vsel %vm2496_vm15, %v2498_v16, %v2494_v44 }
 0x6aa   :  { %v2737_v33 = vpop.eup %2736 }
 0x6ab   :  { %v2505_v27 = vsub.f32 %v5768_v21, %v2737_v33 }
 0x6ad   :  { %v2506_v61 = vmul.f32 %v2505_v27, %v2499_v45 }
 0x6af   :  { %v2507_v38 = vadd.f32 %v2737_v33, %v2506_v61 }
 0x6b1   :  { %2509 = vst [vmem:[#allocation12 + $0x38] sm:$0xff] %v2507_v38 }
 0x6b2   :  { %2524 = dma.vmem_to_hbm [thread:$0]  %s2517_s9, 1024, %s2519_s12, [#allocation5], %s3320_s13, %s3320_s13, %s3321_s14  }
 0x6b3   :  { %3309 = dma.done.wait [#allocation5], 1024  }
 0x6b4   :  { %3310 = vsyncadd [#allocation5], 4294966272 }
 0x6b5   :  { %2529 = vsyncpa [#allocation4], 1 }
 0x6b6   :  { %2530 = vsyncpa [#allocation7], 1 }
 0x6b7   :  { %2531 = vsyncpa [#allocation10], 1 }
 0x6b8   :  { %2532 = vsyncpa [#allocation5], 1 }

</bundles_post_ra>
